<compile_context>
chip_gen: v5e
topology: v5e:2x2
jax: 0.10.0
libtpu: 0.0.40
codegen_flags: <defaults>
</compile_context>

<pallas_src>
import functools

import jax
import jax.numpy as jnp
from jax.experimental import pallas as pl
from jax.experimental.pallas import tpu as pltpu

C_IN, C_HIDDEN, C_OUT = 4, 8, 3
HEADS, EDGE_DIM, LSTM_STEPS, NUM_LAYERS = 4, 1, 10, 2

NEG = -1e30        # additive mask value (Python float -> jaxpr literal, never a captured const)
LEAKY_GAT = 0.2    # GATConv attention leaky_relu slope
LEAKY = 0.01       # F.leaky_relu default slope


# ----------------------------------------------------------------------------
# The single fused forward kernel
# ----------------------------------------------------------------------------


def _fused_forward_kernel(
    # scalars (SMEM)
    eatt_ref,                                    # (2*H,)  per-head edge-att scale, [gat1 | gat2]
    # graph tensors (VMEM)
    x_ref,                                       # [N, C_IN]
    adjb_ref,                                    # [N, N]  0 where edge (incl. self loop), NEG otherwise
    ea_ref,                                      # [N, N]  dense edge attribute (edge_dim == 1)
    agcn_ref,                                    # [N, N]  D^-1/2 (A + I) D^-1/2
    maskb_ref,                                   # [B, N]  0 where node belongs to graph b, NEG otherwise
    # gat1 / gat2 (att vectors folded into the projection, conv bias folded into BN shift)
    w1_ref, sc1_ref, sh1_ref,                    # [C_IN, H*C+2H], [1, H*C], [1, H*C]
    w2_ref, sc2_ref, sh2_ref,                    # [H*C,  H*C+2H], [1, C],   [1, C]
    # GCN residual blocks (stacked over layers)
    wg_ref, scg_ref, shg_ref,                    # [L, C, C], [L, 1, C], [L, 1, C]
    # Set2Set LSTM (folded) + MLP head
    wl_ref, bl_ref,                              # [2C, 4C], [1, 4C]
    w_l1_ref, b_l1_ref,                          # [2C, C],  [1, C]
    w_l2_ref, b_l2_ref,                          # [C, C_OUT], [1, C_OUT]
    # output
    o_ref,                                       # [B, C_OUT]
    *, heads, c_hid, n_gcn, steps):
    hc = heads * c_hid
    adj_bias = adjb_ref[...]
    ea = ea_ref[...]

    # Tiny identity used to transpose a_src with one MXU A@B^T push (instead of 4 per-head
    # one-hot matmuls, and instead of lax.transpose which Mosaic may reject at these shapes).
    eye_h = (jax.lax.broadcasted_iota(jnp.int32, (heads, heads), 0)
             == jax.lax.broadcasted_iota(jnp.int32, (heads, heads), 1)).astype(jnp.float32)

    def gat(x, w_ref, sc_ref, sh_ref, eatt_off, concat):
        # single fused projection: [node proj | att_src fold | att_dst fold]
        proj = jnp.dot(x, w_ref[...], preferred_element_type=jnp.float32)   # [N, H*C + 2H]
        xp = proj[:, :hc]
        a_src = proj[:, hc:hc + heads]                                       # [N, H]
        a_dst = proj[:, hc + heads:hc + 2 * heads]                           # [N, H]
        a_src_t = jax.lax.dot_general(eye_h, a_src, (((1,), (1,)), ((), ())),
                                      preferred_element_type=jnp.float32)    # [H, N] == a_src.T
        outs, acc = [], None
        for h in range(heads):                                               # static unroll
            logits = a_dst[:, h:h + 1] + a_src_t[h:h + 1, :] + ea * eatt_ref[eatt_off + h]
            logits = jnp.where(logits > 0, logits, LEAKY_GAT * logits)       # leaky_relu(0.2)
            s = logits + adj_bias                                            # mask non-edges
            m = jnp.max(s, axis=-1, keepdims=True)
            p = jnp.exp(s - m)                                               # masked entries underflow to 0
            alpha = p / jnp.sum(p, axis=-1, keepdims=True)                   # exact edge softmax
            agg = jnp.dot(alpha, xp[:, h * c_hid:(h + 1) * c_hid],
                          preferred_element_type=jnp.float32)                # [N, C]
            if concat:
                outs.append(agg)
            else:
                acc = agg if acc is None else acc + agg
        y = jnp.concatenate(outs, axis=1) if concat else acc * (1.0 / heads)
        return y * sc_ref[...] + sh_ref[...]      # eval BatchNorm affine (conv bias folded in)

    # gat1 + bn1   (reference's nn.ELU(x, inplace=True) is constructor-only -> no-op;
    #               dropout in eval mode -> identity)
    h1 = gat(x_ref[...], w1_ref, sc1_ref, sh1_ref, 0, True)                  # [N, H*C]
    # gat2 (head mean) + bn2
    xg = gat(h1, w2_ref, sc2_ref, sh2_ref, heads, False)                     # [N, C]

    # GCN residual blocks: leaky_relu(BN(A_hat @ (x W) + b) + x)
    a_hat = agcn_ref[...]
    for l in range(n_gcn):                                                   # static unroll
        xw = jnp.dot(xg, wg_ref[l], preferred_element_type=jnp.float32)
        y = jnp.dot(a_hat, xw, preferred_element_type=jnp.float32)
        y = y * scg_ref[l] + shg_ref[l] + xg
        xg = jnp.where(y > 0, y, LEAKY * y)

    # Set2Set: all LSTM steps + per-graph masked softmax pooling; carries live in vregs.
    maskb = maskb_ref[...]
    nb = maskb.shape[0]
    wl = wl_ref[...]
    bl = bl_ref[...]
    q = jnp.zeros((nb, c_hid), jnp.float32)
    r = jnp.zeros((nb, c_hid), jnp.float32)
    c = jnp.zeros((nb, c_hid), jnp.float32)
    for _ in range(steps):                                                   # static unroll (serial chain)
        gates = jnp.dot(jnp.concatenate([q, r], axis=1), wl,
                        preferred_element_type=jnp.float32) + bl             # ONE gate matmul / step
        gi = jax.nn.sigmoid(gates[:, :c_hid])
        gf = jax.nn.sigmoid(gates[:, c_hid:2 * c_hid])
        gg = jnp.tanh(gates[:, 2 * c_hid:3 * c_hid])
        go = jax.nn.sigmoid(gates[:, 3 * c_hid:])
        c = gf * c + gi * gg
        q = go * jnp.tanh(c)                                                 # LSTM output == hidden state
        s = jax.lax.dot_general(q, xg, (((1,), (1,)), ((), ())),
                                preferred_element_type=jnp.float32) + maskb  # [B, N]
        m = jnp.max(s, axis=-1, keepdims=True)
        p = jnp.exp(s - m)
        att = p / jnp.sum(p, axis=-1, keepdims=True)                         # per-graph softmax
        r = jnp.dot(att, xg, preferred_element_type=jnp.float32)             # [B, C]

    # MLP head: lin2(leaky_relu(lin1([q | r])))   (eval dropout -> identity)
    z = jnp.dot(jnp.concatenate([q, r], axis=1), w_l1_ref[...],
                preferred_element_type=jnp.float32) + b_l1_ref[...]
    z = jnp.where(z > 0, z, LEAKY * z)
    o_ref[...] = jnp.dot(z, w_l2_ref[...], preferred_element_type=jnp.float32) + b_l2_ref[...]


# ----------------------------------------------------------------------------
# Wrapper: graph preprocessing + parameter folding (plain JAX, runs once under jit)
# ----------------------------------------------------------------------------


def _bn_affine(bn_p):
    scale = bn_p["weight"] * jax.lax.rsqrt(bn_p["var"] + 1e-5)
    shift = bn_p["bias"] - bn_p["mean"] * scale
    return scale, shift


def _gat_fold(p, bn_p, heads, out_ch):
    """Fold att_src/att_dst into the node projection, conv bias into the BN shift."""
    w = p["w"]                                                    # [Fin, H*C]
    w3 = w.reshape(w.shape[0], heads, out_ch)
    wa_src = jnp.einsum("fhc,hc->fh", w3, p["att_src"])           # [Fin, H]
    wa_dst = jnp.einsum("fhc,hc->fh", w3, p["att_dst"])           # [Fin, H]
    w_cat = jnp.concatenate([w, wa_src, wa_dst], axis=1)          # [Fin, H*C + 2H]
    we3 = p["w_edge"].reshape(p["w_edge"].shape[0], heads, out_ch)
    eatt = jnp.einsum("dhc,hc->dh", we3, p["att_edge"])[0]        # [H]   (edge_dim == 1)
    scale, shift = _bn_affine(bn_p)
    shift = p["bias"] * scale + shift                             # BN(y + b) = y*scale + (b*scale+shift)
    return w_cat, eatt, scale.reshape(1, -1), shift.reshape(1, -1)


def _build_graph(num_nodes, edge_index, edge_attr):
    """Dense graph tensors shared by every layer (built once per forward, plain JAX scatters)."""
    n = num_nodes
    src, dst = edge_index[0], edge_index[1]
    ed = edge_attr.shape[1]
    loop = jnp.arange(n, dtype=src.dtype)

    # GAT self loops with fill_value='mean': per-node mean of incoming edge attrs.
    sums = jnp.zeros((n, ed), jnp.float32).at[dst].add(edge_attr)
    cnts = jnp.zeros((n,), jnp.float32).at[dst].add(1.0)
    loop_attr = sums / jnp.maximum(cnts, 1.0)[:, None]
    src_f = jnp.concatenate([src, loop])
    dst_f = jnp.concatenate([dst, loop])
    ea_f = jnp.concatenate([edge_attr[:, 0], loop_attr[:, 0]])

    # TODO(synk): duplicate (src,dst) edges clobber with .set (dense approximation); PyG's
    # edge-level softmax treats parallel edges as separate edges.
    adj = jnp.zeros((n, n), jnp.float32).at[dst_f, src_f].set(1.0)
    adj_bias = jnp.where(adj > 0, 0.0, NEG).astype(jnp.float32)
    ea_dense = jnp.zeros((n, n), jnp.float32).at[dst_f, src_f].set(ea_f)

    # GCN: self loops weight 1, symmetric normalization D^-1/2 (A + I) D^-1/2.
    edge_weight = edge_attr[:, 0]
    w_gcn = jnp.concatenate([edge_weight, jnp.ones((n,), jnp.float32)])
    deg = jnp.zeros((n,), jnp.float32).at[dst_f].add(w_gcn)
    dinv = jnp.where(deg > 0, jax.lax.rsqrt(deg), 0.0)
    norm = dinv[src_f] * w_gcn * dinv[dst_f]
    a_gcn = jnp.zeros((n, n), jnp.float32).at[dst_f, src_f].add(norm)
    return adj_bias, ea_dense, a_gcn


def forward(params, x, edge_index, edge_attr, batch_idx, num_graphs):
    n = x.shape[0]
    b = num_graphs
    heads, c = HEADS, C_HIDDEN
    n_gcn = NUM_LAYERS - 1

    adj_bias, ea_dense, a_gcn = _build_graph(n, edge_index, edge_attr)
    maskb = jnp.where(batch_idx[None, :] == jnp.arange(b)[:, None], 0.0, NEG).astype(jnp.float32)

    w1_cat, eatt1, sc1, sh1 = _gat_fold(params["gat1"], params["bn1"], heads, c)
    w2_cat, eatt2, sc2, sh2 = _gat_fold(params["gat2"], params["bn2"], heads, c)
    eatt = jnp.concatenate([eatt1, eatt2]).astype(jnp.float32)               # (2H,) SMEM scalars

    gcn_w = jnp.stack([p["w"] for p in params["gcn"]])                       # [L, C, C]
    gcn_sc, gcn_sh = [], []
    for p, bn in zip(params["gcn"], params["bn_gcn"]):
        scale, shift = _bn_affine(bn)
        gcn_sc.append(scale.reshape(1, -1))
        gcn_sh.append((p["bias"] * scale + shift).reshape(1, -1))
    gcn_sc = jnp.stack(gcn_sc)                                               # [L, 1, C]
    gcn_sh = jnp.stack(gcn_sh)                                               # [L, 1, C]

    # Set2Set LSTM: hidden state always equals the previous output q, so fold w_hh into the
    # q-half of w_ih -> a single [2C, 4C] gate weight (one matmul per step).
    w_ih, w_hh = params["lstm"]["w_ih"], params["lstm"]["w_hh"]
    w_lstm = jnp.concatenate([w_ih[:c] + w_hh, w_ih[c:]], axis=0)            # [2C, 4C]
    b_lstm = (params["lstm"]["b_ih"] + params["lstm"]["b_hh"]).reshape(1, -1)

    w_l1, b_l1 = params["lin1"]["w"], params["lin1"]["b"].reshape(1, -1)
    w_l2, b_l2 = params["lin2"]["w"], params["lin2"]["b"].reshape(1, -1)

    kernel = functools.partial(_fused_forward_kernel, heads=heads, c_hid=c,
                               n_gcn=n_gcn, steps=LSTM_STEPS)
    n_vmem_inputs = 20
    return pl.pallas_call(
        kernel,
        out_shape=jax.ShapeDtypeStruct((b, C_OUT), jnp.float32),
        in_specs=([pl.BlockSpec(memory_space=pltpu.MemorySpace.SMEM)]
                  + [pl.BlockSpec(memory_space=pltpu.MemorySpace.VMEM)
                     for _ in range(n_vmem_inputs)]),
        out_specs=pl.BlockSpec(memory_space=pltpu.MemorySpace.VMEM),
    )(eatt,
      x.astype(jnp.float32), adj_bias, ea_dense, a_gcn, maskb,
      w1_cat, sc1, sh1,
      w2_cat, sc2, sh2,
      gcn_w, gcn_sc, gcn_sh,
      w_lstm, b_lstm, w_l1, b_l1, w_l2, b_l2)


# ----------------------------------------------------------------------------
# Parameter init
# ----------------------------------------------------------------------------


def _glorot(key, shape):
    limit = (6.0 / (shape[0] + shape[1])) ** 0.5
    return jax.random.uniform(key, shape, jnp.float32, -limit, limit)


def _uniform(key, shape, bound):
    return jax.random.uniform(key, shape, jnp.float32, -bound, bound)


def init_params(key):
    ks = iter(jax.random.split(key, 32))
    h, c = HEADS, C_HIDDEN

    def bn(dim):
        return {
            "weight": jnp.ones((dim,), jnp.float32),
            "bias": jnp.zeros((dim,), jnp.float32),
            "mean": jnp.zeros((dim,), jnp.float32),
            "var": jnp.ones((dim,), jnp.float32),
        }

    return {
        "gat1": {
            "w": _glorot(next(ks), (C_IN, h * c)),
            "w_edge": _glorot(next(ks), (EDGE_DIM, h * c)),
            "att_src": _glorot(next(ks), (h, c)),
            "att_dst": _glorot(next(ks), (h, c)),
            "att_edge": _glorot(next(ks), (h, c)),
            "bias": jnp.zeros((h * c,), jnp.float32),
        },
        "bn1": bn(h * c),
        "gat2": {
            "w": _glorot(next(ks), (h * c, h * c)),
            "w_edge": _glorot(next(ks), (EDGE_DIM, h * c)),
            "att_src": _glorot(next(ks), (h, c)),
            "att_dst": _glorot(next(ks), (h, c)),
            "att_edge": _glorot(next(ks), (h, c)),
            "bias": jnp.zeros((c,), jnp.float32),
        },
        "bn2": bn(c),
        "gcn": [
            {"w": _glorot(next(ks), (c, c)), "bias": jnp.zeros((c,), jnp.float32)}
            for _ in range(NUM_LAYERS - 1)
        ],
        "bn_gcn": [bn(c) for _ in range(NUM_LAYERS - 1)],
        "lstm": {
            "w_ih": _uniform(next(ks), (2 * c, 4 * c), 1.0 / c ** 0.5),
            "w_hh": _uniform(next(ks), (c, 4 * c), 1.0 / c ** 0.5),
            "b_ih": _uniform(next(ks), (4 * c,), 1.0 / c ** 0.5),
            "b_hh": _uniform(next(ks), (4 * c,), 1.0 / c ** 0.5),
        },
        "lin1": {
            "w": _uniform(next(ks), (2 * c, c), 1.0 / (2 * c) ** 0.5),
            "b": _uniform(next(ks), (c,), 1.0 / (2 * c) ** 0.5),
        },
        "lin2": {
            "w": _uniform(next(ks), (c, C_OUT), 1.0 / c ** 0.5),
            "b": _uniform(next(ks), (C_OUT,), 1.0 / c ** 0.5),
        },
    }


if __name__ == "__main__":
    key = jax.random.PRNGKey(0)
    k_param, k_x, k_e = jax.random.split(key, 3)

    # Two graphs of 8 nodes each (nodes 0-7 -> graph 0, 8-15 -> graph 1),
    # bidirectional chain edges within each graph.
    N, B = 16, 2
    x = jax.random.normal(k_x, (N, C_IN), jnp.float32)
    src_list, dst_list = [], []
    for base in (0, 8):
        for i in range(7):
            src_list += [base + i, base + i + 1]
            dst_list += [base + i + 1, base + i]
    edge_index = jnp.array([src_list, dst_list], dtype=jnp.int32)            # [2, 28]
    E = edge_index.shape[1]
    edge_attr = jax.random.uniform(k_e, (E, EDGE_DIM), jnp.float32, 0.5, 1.5)
    batch_idx = jnp.array([0] * 8 + [1] * 8, dtype=jnp.int32)

    params = init_params(k_param)

    fwd = jax.jit(functools.partial(forward, num_graphs=B))
    out = fwd(params, x, edge_index, edge_attr, batch_idx)
    jax.block_until_ready(out)
    assert out.shape == (B, C_OUT), out.shape
    assert bool(jnp.all(jnp.isfinite(out)))
    print("KERNEL_OK")
</pallas_src>

<mosaic_0001>
module attributes {stable_mosaic.version = 11 : i64} {
  func.func @_fused_forward_kernel(%arg0: memref<8xf32, #tpu.memory_space<smem>>, %arg1: memref<16x4xf32, #tpu.memory_space<vmem>>, %arg2: memref<16x16xf32, #tpu.memory_space<vmem>>, %arg3: memref<16x16xf32, #tpu.memory_space<vmem>>, %arg4: memref<16x16xf32, #tpu.memory_space<vmem>>, %arg5: memref<2x16xf32, #tpu.memory_space<vmem>>, %arg6: memref<4x40xf32, #tpu.memory_space<vmem>>, %arg7: memref<1x32xf32, #tpu.memory_space<vmem>>, %arg8: memref<1x32xf32, #tpu.memory_space<vmem>>, %arg9: memref<32x40xf32, #tpu.memory_space<vmem>>, %arg10: memref<1x8xf32, #tpu.memory_space<vmem>>, %arg11: memref<1x8xf32, #tpu.memory_space<vmem>>, %arg12: memref<1x8x8xf32, #tpu.memory_space<vmem>>, %arg13: memref<1x1x8xf32, #tpu.memory_space<vmem>>, %arg14: memref<1x1x8xf32, #tpu.memory_space<vmem>>, %arg15: memref<16x32xf32, #tpu.memory_space<vmem>>, %arg16: memref<1x32xf32, #tpu.memory_space<vmem>>, %arg17: memref<16x8xf32, #tpu.memory_space<vmem>>, %arg18: memref<1x8xf32, #tpu.memory_space<vmem>>, %arg19: memref<8x3xf32, #tpu.memory_space<vmem>>, %arg20: memref<1x3xf32, #tpu.memory_space<vmem>>, %arg21: memref<2x3xf32, #tpu.memory_space<vmem>>) attributes {dimension_semantics = [], scalar_prefetch = 0 : i64, scratch_operands = 0 : i64, tpu.core_type = #tpu.core_type<tc>} {
    %c0 = arith.constant 0 : index
    %c0_0 = arith.constant 0 : index
    %0 = vector.load %arg2[%c0, %c0_0] : memref<16x16xf32, #tpu.memory_space<vmem>>, vector<16x16xf32>
    %c0_1 = arith.constant 0 : index
    %c0_2 = arith.constant 0 : index
    %1 = vector.load %arg3[%c0_1, %c0_2] : memref<16x16xf32, #tpu.memory_space<vmem>>, vector<16x16xf32>
    %2 = tpu.iota {dimensions = array<i32: 0>} : vector<4x4xi32>
    %3 = tpu.iota {dimensions = array<i32: 1>} : vector<4x4xi32>
    %4 = arith.cmpi eq, %2, %3 : vector<4x4xi32>
    %5 = arith.extui %4 : vector<4x4xi1> to vector<4x4xi32>
    %6 = arith.sitofp %5 : vector<4x4xi32> to vector<4x4xf32>
    %c0_3 = arith.constant 0 : index
    %c0_4 = arith.constant 0 : index
    %7 = vector.load %arg1[%c0_3, %c0_4] : memref<16x4xf32, #tpu.memory_space<vmem>>, vector<16x4xf32>
    %c0_5 = arith.constant 0 : index
    %c0_6 = arith.constant 0 : index
    %8 = vector.load %arg6[%c0_5, %c0_6] : memref<4x40xf32, #tpu.memory_space<vmem>>, vector<4x40xf32>
    %cst = arith.constant dense<0.000000e+00> : vector<16x40xf32>
    %9 = tpu.matmul %7, %8, %cst {dimension_numbers = #tpu.dot_dimension_numbers<[1], [0], [0], [1], [0, 0, 1, 1], [], []>} : vector<16x4xf32>, vector<4x40xf32>, vector<16x40xf32> -> vector<16x40xf32>
    %10 = vector.extract_strided_slice %9 {offsets = [0, 0], sizes = [16, 32], strides = [1, 1]} : vector<16x40xf32> to vector<16x32xf32>
    %11 = vector.extract_strided_slice %9 {offsets = [0, 32], sizes = [16, 4], strides = [1, 1]} : vector<16x40xf32> to vector<16x4xf32>
    %12 = vector.extract_strided_slice %9 {offsets = [0, 36], sizes = [16, 4], strides = [1, 1]} : vector<16x40xf32> to vector<16x4xf32>
    %cst_7 = arith.constant dense<0.000000e+00> : vector<4x16xf32>
    %13 = tpu.matmul %6, %11, %cst_7 {dimension_numbers = #tpu.dot_dimension_numbers<[1], [1], [0], [0], [0, 0, 1, 0], [], []>} : vector<4x4xf32>, vector<16x4xf32>, vector<4x16xf32> -> vector<4x16xf32>
    %14 = vector.extract_strided_slice %12 {offsets = [0, 0], sizes = [16, 1], strides = [1, 1]} : vector<16x4xf32> to vector<16x1xf32>
    %15 = vector.extract_strided_slice %13 {offsets = [0, 0], sizes = [1, 16], strides = [1, 1]} : vector<4x16xf32> to vector<1x16xf32>
    %16 = vector.broadcast %14 : vector<16x1xf32> to vector<16x16xf32>
    %17 = vector.broadcast %15 : vector<1x16xf32> to vector<16x16xf32>
    %18 = arith.addf %16, %17 : vector<16x16xf32>
    %c0_8 = arith.constant 0 : index
    %19 = memref.load %arg0[%c0_8] : memref<8xf32, #tpu.memory_space<smem>>
    %20 = vector.broadcast %19 : f32 to vector<16x16xf32>
    %21 = arith.mulf %1, %20 : vector<16x16xf32>
    %22 = arith.addf %18, %21 : vector<16x16xf32>
    %cst_9 = arith.constant 0.000000e+00 : f32
    %23 = vector.broadcast %cst_9 : f32 to vector<16x16xf32>
    %24 = arith.cmpf ogt, %22, %23 : vector<16x16xf32>
    %cst_10 = arith.constant 2.000000e-01 : f32
    %25 = vector.broadcast %cst_10 : f32 to vector<16x16xf32>
    %26 = arith.mulf %25, %22 : vector<16x16xf32>
    %27 = arith.select %24, %22, %26 : vector<16x16xi1>, vector<16x16xf32>
    %28 = arith.addf %27, %0 : vector<16x16xf32>
    %cst_11 = arith.constant dense<0xFF800000> : vector<16xf32>
    %29 = vector.multi_reduction <maximumf>, %28, %cst_11 [1] : vector<16x16xf32> to vector<16xf32>
    %30 = vector.shape_cast %29 : vector<16xf32> to vector<16x1xf32>
    %31 = vector.broadcast %30 : vector<16x1xf32> to vector<16x16xf32>
    %32 = arith.subf %28, %31 : vector<16x16xf32>
    %33 = math.exp %32 : vector<16x16xf32>
    %cst_12 = arith.constant dense<0.000000e+00> : vector<16xf32>
    %34 = vector.multi_reduction <add>, %33, %cst_12 [1] : vector<16x16xf32> to vector<16xf32>
    %35 = vector.shape_cast %34 : vector<16xf32> to vector<16x1xf32>
    %36 = vector.broadcast %35 : vector<16x1xf32> to vector<16x16xf32>
    %37 = arith.divf %33, %36 : vector<16x16xf32>
    %38 = vector.extract_strided_slice %10 {offsets = [0, 0], sizes = [16, 8], strides = [1, 1]} : vector<16x32xf32> to vector<16x8xf32>
    %cst_13 = arith.constant dense<0.000000e+00> : vector<16x8xf32>
    %39 = tpu.matmul %37, %38, %cst_13 {dimension_numbers = #tpu.dot_dimension_numbers<[1], [0], [0], [1], [0, 0, 1, 1], [], []>} : vector<16x16xf32>, vector<16x8xf32>, vector<16x8xf32> -> vector<16x8xf32>
    %40 = vector.extract_strided_slice %12 {offsets = [0, 1], sizes = [16, 1], strides = [1, 1]} : vector<16x4xf32> to vector<16x1xf32>
    %41 = vector.extract_strided_slice %13 {offsets = [1, 0], sizes = [1, 16], strides = [1, 1]} : vector<4x16xf32> to vector<1x16xf32>
    %42 = vector.broadcast %40 : vector<16x1xf32> to vector<16x16xf32>
    %43 = vector.broadcast %41 : vector<1x16xf32> to vector<16x16xf32>
    %44 = arith.addf %42, %43 : vector<16x16xf32>
    %c1 = arith.constant 1 : index
    %45 = memref.load %arg0[%c1] : memref<8xf32, #tpu.memory_space<smem>>
    %46 = vector.broadcast %45 : f32 to vector<16x16xf32>
    %47 = arith.mulf %1, %46 : vector<16x16xf32>
    %48 = arith.addf %44, %47 : vector<16x16xf32>
    %cst_14 = arith.constant 0.000000e+00 : f32
    %49 = vector.broadcast %cst_14 : f32 to vector<16x16xf32>
    %50 = arith.cmpf ogt, %48, %49 : vector<16x16xf32>
    %cst_15 = arith.constant 2.000000e-01 : f32
    %51 = vector.broadcast %cst_15 : f32 to vector<16x16xf32>
    %52 = arith.mulf %51, %48 : vector<16x16xf32>
    %53 = arith.select %50, %48, %52 : vector<16x16xi1>, vector<16x16xf32>
    %54 = arith.addf %53, %0 : vector<16x16xf32>
    %cst_16 = arith.constant dense<0xFF800000> : vector<16xf32>
    %55 = vector.multi_reduction <maximumf>, %54, %cst_16 [1] : vector<16x16xf32> to vector<16xf32>
    %56 = vector.shape_cast %55 : vector<16xf32> to vector<16x1xf32>
    %57 = vector.broadcast %56 : vector<16x1xf32> to vector<16x16xf32>
    %58 = arith.subf %54, %57 : vector<16x16xf32>
    %59 = math.exp %58 : vector<16x16xf32>
    %cst_17 = arith.constant dense<0.000000e+00> : vector<16xf32>
    %60 = vector.multi_reduction <add>, %59, %cst_17 [1] : vector<16x16xf32> to vector<16xf32>
    %61 = vector.shape_cast %60 : vector<16xf32> to vector<16x1xf32>
    %62 = vector.broadcast %61 : vector<16x1xf32> to vector<16x16xf32>
    %63 = arith.divf %59, %62 : vector<16x16xf32>
    %64 = vector.extract_strided_slice %10 {offsets = [0, 8], sizes = [16, 8], strides = [1, 1]} : vector<16x32xf32> to vector<16x8xf32>
    %cst_18 = arith.constant dense<0.000000e+00> : vector<16x8xf32>
    %65 = tpu.matmul %63, %64, %cst_18 {dimension_numbers = #tpu.dot_dimension_numbers<[1], [0], [0], [1], [0, 0, 1, 1], [], []>} : vector<16x16xf32>, vector<16x8xf32>, vector<16x8xf32> -> vector<16x8xf32>
    %66 = vector.extract_strided_slice %12 {offsets = [0, 2], sizes = [16, 1], strides = [1, 1]} : vector<16x4xf32> to vector<16x1xf32>
    %67 = vector.extract_strided_slice %13 {offsets = [2, 0], sizes = [1, 16], strides = [1, 1]} : vector<4x16xf32> to vector<1x16xf32>
    %68 = vector.broadcast %66 : vector<16x1xf32> to vector<16x16xf32>
    %69 = vector.broadcast %67 : vector<1x16xf32> to vector<16x16xf32>
    %70 = arith.addf %68, %69 : vector<16x16xf32>
    %c2 = arith.constant 2 : index
    %71 = memref.load %arg0[%c2] : memref<8xf32, #tpu.memory_space<smem>>
    %72 = vector.broadcast %71 : f32 to vector<16x16xf32>
    %73 = arith.mulf %1, %72 : vector<16x16xf32>
    %74 = arith.addf %70, %73 : vector<16x16xf32>
    %cst_19 = arith.constant 0.000000e+00 : f32
    %75 = vector.broadcast %cst_19 : f32 to vector<16x16xf32>
    %76 = arith.cmpf ogt, %74, %75 : vector<16x16xf32>
    %cst_20 = arith.constant 2.000000e-01 : f32
    %77 = vector.broadcast %cst_20 : f32 to vector<16x16xf32>
    %78 = arith.mulf %77, %74 : vector<16x16xf32>
    %79 = arith.select %76, %74, %78 : vector<16x16xi1>, vector<16x16xf32>
    %80 = arith.addf %79, %0 : vector<16x16xf32>
    %cst_21 = arith.constant dense<0xFF800000> : vector<16xf32>
    %81 = vector.multi_reduction <maximumf>, %80, %cst_21 [1] : vector<16x16xf32> to vector<16xf32>
    %82 = vector.shape_cast %81 : vector<16xf32> to vector<16x1xf32>
    %83 = vector.broadcast %82 : vector<16x1xf32> to vector<16x16xf32>
    %84 = arith.subf %80, %83 : vector<16x16xf32>
    %85 = math.exp %84 : vector<16x16xf32>
    %cst_22 = arith.constant dense<0.000000e+00> : vector<16xf32>
    %86 = vector.multi_reduction <add>, %85, %cst_22 [1] : vector<16x16xf32> to vector<16xf32>
    %87 = vector.shape_cast %86 : vector<16xf32> to vector<16x1xf32>
    %88 = vector.broadcast %87 : vector<16x1xf32> to vector<16x16xf32>
    %89 = arith.divf %85, %88 : vector<16x16xf32>
    %90 = vector.extract_strided_slice %10 {offsets = [0, 16], sizes = [16, 8], strides = [1, 1]} : vector<16x32xf32> to vector<16x8xf32>
    %cst_23 = arith.constant dense<0.000000e+00> : vector<16x8xf32>
    %91 = tpu.matmul %89, %90, %cst_23 {dimension_numbers = #tpu.dot_dimension_numbers<[1], [0], [0], [1], [0, 0, 1, 1], [], []>} : vector<16x16xf32>, vector<16x8xf32>, vector<16x8xf32> -> vector<16x8xf32>
    %92 = vector.extract_strided_slice %12 {offsets = [0, 3], sizes = [16, 1], strides = [1, 1]} : vector<16x4xf32> to vector<16x1xf32>
    %93 = vector.extract_strided_slice %13 {offsets = [3, 0], sizes = [1, 16], strides = [1, 1]} : vector<4x16xf32> to vector<1x16xf32>
    %94 = vector.broadcast %92 : vector<16x1xf32> to vector<16x16xf32>
    %95 = vector.broadcast %93 : vector<1x16xf32> to vector<16x16xf32>
    %96 = arith.addf %94, %95 : vector<16x16xf32>
    %c3 = arith.constant 3 : index
    %97 = memref.load %arg0[%c3] : memref<8xf32, #tpu.memory_space<smem>>
    %98 = vector.broadcast %97 : f32 to vector<16x16xf32>
    %99 = arith.mulf %1, %98 : vector<16x16xf32>
    %100 = arith.addf %96, %99 : vector<16x16xf32>
    %cst_24 = arith.constant 0.000000e+00 : f32
    %101 = vector.broadcast %cst_24 : f32 to vector<16x16xf32>
    %102 = arith.cmpf ogt, %100, %101 : vector<16x16xf32>
    %cst_25 = arith.constant 2.000000e-01 : f32
    %103 = vector.broadcast %cst_25 : f32 to vector<16x16xf32>
    %104 = arith.mulf %103, %100 : vector<16x16xf32>
    %105 = arith.select %102, %100, %104 : vector<16x16xi1>, vector<16x16xf32>
    %106 = arith.addf %105, %0 : vector<16x16xf32>
    %cst_26 = arith.constant dense<0xFF800000> : vector<16xf32>
    %107 = vector.multi_reduction <maximumf>, %106, %cst_26 [1] : vector<16x16xf32> to vector<16xf32>
    %108 = vector.shape_cast %107 : vector<16xf32> to vector<16x1xf32>
    %109 = vector.broadcast %108 : vector<16x1xf32> to vector<16x16xf32>
    %110 = arith.subf %106, %109 : vector<16x16xf32>
    %111 = math.exp %110 : vector<16x16xf32>
    %cst_27 = arith.constant dense<0.000000e+00> : vector<16xf32>
    %112 = vector.multi_reduction <add>, %111, %cst_27 [1] : vector<16x16xf32> to vector<16xf32>
    %113 = vector.shape_cast %112 : vector<16xf32> to vector<16x1xf32>
    %114 = vector.broadcast %113 : vector<16x1xf32> to vector<16x16xf32>
    %115 = arith.divf %111, %114 : vector<16x16xf32>
    %116 = vector.extract_strided_slice %10 {offsets = [0, 24], sizes = [16, 8], strides = [1, 1]} : vector<16x32xf32> to vector<16x8xf32>
    %cst_28 = arith.constant dense<0.000000e+00> : vector<16x8xf32>
    %117 = tpu.matmul %115, %116, %cst_28 {dimension_numbers = #tpu.dot_dimension_numbers<[1], [0], [0], [1], [0, 0, 1, 1], [], []>} : vector<16x16xf32>, vector<16x8xf32>, vector<16x8xf32> -> vector<16x8xf32>
    %118 = tpu.concatenate %39, %65, %91, %117 in 1 : vector<16x8xf32>, vector<16x8xf32>, vector<16x8xf32>, vector<16x8xf32> -> vector<16x32xf32>
    %c0_29 = arith.constant 0 : index
    %c0_30 = arith.constant 0 : index
    %119 = vector.load %arg7[%c0_29, %c0_30] : memref<1x32xf32, #tpu.memory_space<vmem>>, vector<1x32xf32>
    %120 = vector.broadcast %119 : vector<1x32xf32> to vector<16x32xf32>
    %121 = arith.mulf %118, %120 : vector<16x32xf32>
    %c0_31 = arith.constant 0 : index
    %c0_32 = arith.constant 0 : index
    %122 = vector.load %arg8[%c0_31, %c0_32] : memref<1x32xf32, #tpu.memory_space<vmem>>, vector<1x32xf32>
    %123 = vector.broadcast %122 : vector<1x32xf32> to vector<16x32xf32>
    %124 = arith.addf %121, %123 : vector<16x32xf32>
    %c0_33 = arith.constant 0 : index
    %c0_34 = arith.constant 0 : index
    %125 = vector.load %arg9[%c0_33, %c0_34] : memref<32x40xf32, #tpu.memory_space<vmem>>, vector<32x40xf32>
    %cst_35 = arith.constant dense<0.000000e+00> : vector<16x40xf32>
    %126 = tpu.matmul %124, %125, %cst_35 {dimension_numbers = #tpu.dot_dimension_numbers<[1], [0], [0], [1], [0, 0, 1, 1], [], []>} : vector<16x32xf32>, vector<32x40xf32>, vector<16x40xf32> -> vector<16x40xf32>
    %127 = vector.extract_strided_slice %126 {offsets = [0, 0], sizes = [16, 32], strides = [1, 1]} : vector<16x40xf32> to vector<16x32xf32>
    %128 = vector.extract_strided_slice %126 {offsets = [0, 32], sizes = [16, 4], strides = [1, 1]} : vector<16x40xf32> to vector<16x4xf32>
    %129 = vector.extract_strided_slice %126 {offsets = [0, 36], sizes = [16, 4], strides = [1, 1]} : vector<16x40xf32> to vector<16x4xf32>
    %cst_36 = arith.constant dense<0.000000e+00> : vector<4x16xf32>
    %130 = tpu.matmul %6, %128, %cst_36 {dimension_numbers = #tpu.dot_dimension_numbers<[1], [1], [0], [0], [0, 0, 1, 0], [], []>} : vector<4x4xf32>, vector<16x4xf32>, vector<4x16xf32> -> vector<4x16xf32>
    %131 = vector.extract_strided_slice %129 {offsets = [0, 0], sizes = [16, 1], strides = [1, 1]} : vector<16x4xf32> to vector<16x1xf32>
    %132 = vector.extract_strided_slice %130 {offsets = [0, 0], sizes = [1, 16], strides = [1, 1]} : vector<4x16xf32> to vector<1x16xf32>
    %133 = vector.broadcast %131 : vector<16x1xf32> to vector<16x16xf32>
    %134 = vector.broadcast %132 : vector<1x16xf32> to vector<16x16xf32>
    %135 = arith.addf %133, %134 : vector<16x16xf32>
    %c4 = arith.constant 4 : index
    %136 = memref.load %arg0[%c4] : memref<8xf32, #tpu.memory_space<smem>>
    %137 = vector.broadcast %136 : f32 to vector<16x16xf32>
    %138 = arith.mulf %1, %137 : vector<16x16xf32>
    %139 = arith.addf %135, %138 : vector<16x16xf32>
    %cst_37 = arith.constant 0.000000e+00 : f32
    %140 = vector.broadcast %cst_37 : f32 to vector<16x16xf32>
    %141 = arith.cmpf ogt, %139, %140 : vector<16x16xf32>
    %cst_38 = arith.constant 2.000000e-01 : f32
    %142 = vector.broadcast %cst_38 : f32 to vector<16x16xf32>
    %143 = arith.mulf %142, %139 : vector<16x16xf32>
    %144 = arith.select %141, %139, %143 : vector<16x16xi1>, vector<16x16xf32>
    %145 = arith.addf %144, %0 : vector<16x16xf32>
    %cst_39 = arith.constant dense<0xFF800000> : vector<16xf32>
    %146 = vector.multi_reduction <maximumf>, %145, %cst_39 [1] : vector<16x16xf32> to vector<16xf32>
    %147 = vector.shape_cast %146 : vector<16xf32> to vector<16x1xf32>
    %148 = vector.broadcast %147 : vector<16x1xf32> to vector<16x16xf32>
    %149 = arith.subf %145, %148 : vector<16x16xf32>
    %150 = math.exp %149 : vector<16x16xf32>
    %cst_40 = arith.constant dense<0.000000e+00> : vector<16xf32>
    %151 = vector.multi_reduction <add>, %150, %cst_40 [1] : vector<16x16xf32> to vector<16xf32>
    %152 = vector.shape_cast %151 : vector<16xf32> to vector<16x1xf32>
    %153 = vector.broadcast %152 : vector<16x1xf32> to vector<16x16xf32>
    %154 = arith.divf %150, %153 : vector<16x16xf32>
    %155 = vector.extract_strided_slice %127 {offsets = [0, 0], sizes = [16, 8], strides = [1, 1]} : vector<16x32xf32> to vector<16x8xf32>
    %cst_41 = arith.constant dense<0.000000e+00> : vector<16x8xf32>
    %156 = tpu.matmul %154, %155, %cst_41 {dimension_numbers = #tpu.dot_dimension_numbers<[1], [0], [0], [1], [0, 0, 1, 1], [], []>} : vector<16x16xf32>, vector<16x8xf32>, vector<16x8xf32> -> vector<16x8xf32>
    %157 = vector.extract_strided_slice %129 {offsets = [0, 1], sizes = [16, 1], strides = [1, 1]} : vector<16x4xf32> to vector<16x1xf32>
    %158 = vector.extract_strided_slice %130 {offsets = [1, 0], sizes = [1, 16], strides = [1, 1]} : vector<4x16xf32> to vector<1x16xf32>
    %159 = vector.broadcast %157 : vector<16x1xf32> to vector<16x16xf32>
    %160 = vector.broadcast %158 : vector<1x16xf32> to vector<16x16xf32>
    %161 = arith.addf %159, %160 : vector<16x16xf32>
    %c5 = arith.constant 5 : index
    %162 = memref.load %arg0[%c5] : memref<8xf32, #tpu.memory_space<smem>>
    %163 = vector.broadcast %162 : f32 to vector<16x16xf32>
    %164 = arith.mulf %1, %163 : vector<16x16xf32>
    %165 = arith.addf %161, %164 : vector<16x16xf32>
    %cst_42 = arith.constant 0.000000e+00 : f32
    %166 = vector.broadcast %cst_42 : f32 to vector<16x16xf32>
    %167 = arith.cmpf ogt, %165, %166 : vector<16x16xf32>
    %cst_43 = arith.constant 2.000000e-01 : f32
    %168 = vector.broadcast %cst_43 : f32 to vector<16x16xf32>
    %169 = arith.mulf %168, %165 : vector<16x16xf32>
    %170 = arith.select %167, %165, %169 : vector<16x16xi1>, vector<16x16xf32>
    %171 = arith.addf %170, %0 : vector<16x16xf32>
    %cst_44 = arith.constant dense<0xFF800000> : vector<16xf32>
    %172 = vector.multi_reduction <maximumf>, %171, %cst_44 [1] : vector<16x16xf32> to vector<16xf32>
    %173 = vector.shape_cast %172 : vector<16xf32> to vector<16x1xf32>
    %174 = vector.broadcast %173 : vector<16x1xf32> to vector<16x16xf32>
    %175 = arith.subf %171, %174 : vector<16x16xf32>
    %176 = math.exp %175 : vector<16x16xf32>
    %cst_45 = arith.constant dense<0.000000e+00> : vector<16xf32>
    %177 = vector.multi_reduction <add>, %176, %cst_45 [1] : vector<16x16xf32> to vector<16xf32>
    %178 = vector.shape_cast %177 : vector<16xf32> to vector<16x1xf32>
    %179 = vector.broadcast %178 : vector<16x1xf32> to vector<16x16xf32>
    %180 = arith.divf %176, %179 : vector<16x16xf32>
    %181 = vector.extract_strided_slice %127 {offsets = [0, 8], sizes = [16, 8], strides = [1, 1]} : vector<16x32xf32> to vector<16x8xf32>
    %cst_46 = arith.constant dense<0.000000e+00> : vector<16x8xf32>
    %182 = tpu.matmul %180, %181, %cst_46 {dimension_numbers = #tpu.dot_dimension_numbers<[1], [0], [0], [1], [0, 0, 1, 1], [], []>} : vector<16x16xf32>, vector<16x8xf32>, vector<16x8xf32> -> vector<16x8xf32>
    %183 = arith.addf %156, %182 : vector<16x8xf32>
    %184 = vector.extract_strided_slice %129 {offsets = [0, 2], sizes = [16, 1], strides = [1, 1]} : vector<16x4xf32> to vector<16x1xf32>
    %185 = vector.extract_strided_slice %130 {offsets = [2, 0], sizes = [1, 16], strides = [1, 1]} : vector<4x16xf32> to vector<1x16xf32>
    %186 = vector.broadcast %184 : vector<16x1xf32> to vector<16x16xf32>
    %187 = vector.broadcast %185 : vector<1x16xf32> to vector<16x16xf32>
    %188 = arith.addf %186, %187 : vector<16x16xf32>
    %c6 = arith.constant 6 : index
    %189 = memref.load %arg0[%c6] : memref<8xf32, #tpu.memory_space<smem>>
    %190 = vector.broadcast %189 : f32 to vector<16x16xf32>
    %191 = arith.mulf %1, %190 : vector<16x16xf32>
    %192 = arith.addf %188, %191 : vector<16x16xf32>
    %cst_47 = arith.constant 0.000000e+00 : f32
    %193 = vector.broadcast %cst_47 : f32 to vector<16x16xf32>
    %194 = arith.cmpf ogt, %192, %193 : vector<16x16xf32>
    %cst_48 = arith.constant 2.000000e-01 : f32
    %195 = vector.broadcast %cst_48 : f32 to vector<16x16xf32>
    %196 = arith.mulf %195, %192 : vector<16x16xf32>
    %197 = arith.select %194, %192, %196 : vector<16x16xi1>, vector<16x16xf32>
    %198 = arith.addf %197, %0 : vector<16x16xf32>
    %cst_49 = arith.constant dense<0xFF800000> : vector<16xf32>
    %199 = vector.multi_reduction <maximumf>, %198, %cst_49 [1] : vector<16x16xf32> to vector<16xf32>
    %200 = vector.shape_cast %199 : vector<16xf32> to vector<16x1xf32>
    %201 = vector.broadcast %200 : vector<16x1xf32> to vector<16x16xf32>
    %202 = arith.subf %198, %201 : vector<16x16xf32>
    %203 = math.exp %202 : vector<16x16xf32>
    %cst_50 = arith.constant dense<0.000000e+00> : vector<16xf32>
    %204 = vector.multi_reduction <add>, %203, %cst_50 [1] : vector<16x16xf32> to vector<16xf32>
    %205 = vector.shape_cast %204 : vector<16xf32> to vector<16x1xf32>
    %206 = vector.broadcast %205 : vector<16x1xf32> to vector<16x16xf32>
    %207 = arith.divf %203, %206 : vector<16x16xf32>
    %208 = vector.extract_strided_slice %127 {offsets = [0, 16], sizes = [16, 8], strides = [1, 1]} : vector<16x32xf32> to vector<16x8xf32>
    %cst_51 = arith.constant dense<0.000000e+00> : vector<16x8xf32>
    %209 = tpu.matmul %207, %208, %cst_51 {dimension_numbers = #tpu.dot_dimension_numbers<[1], [0], [0], [1], [0, 0, 1, 1], [], []>} : vector<16x16xf32>, vector<16x8xf32>, vector<16x8xf32> -> vector<16x8xf32>
    %210 = arith.addf %183, %209 : vector<16x8xf32>
    %211 = vector.extract_strided_slice %129 {offsets = [0, 3], sizes = [16, 1], strides = [1, 1]} : vector<16x4xf32> to vector<16x1xf32>
    %212 = vector.extract_strided_slice %130 {offsets = [3, 0], sizes = [1, 16], strides = [1, 1]} : vector<4x16xf32> to vector<1x16xf32>
    %213 = vector.broadcast %211 : vector<16x1xf32> to vector<16x16xf32>
    %214 = vector.broadcast %212 : vector<1x16xf32> to vector<16x16xf32>
    %215 = arith.addf %213, %214 : vector<16x16xf32>
    %c7 = arith.constant 7 : index
    %216 = memref.load %arg0[%c7] : memref<8xf32, #tpu.memory_space<smem>>
    %217 = vector.broadcast %216 : f32 to vector<16x16xf32>
    %218 = arith.mulf %1, %217 : vector<16x16xf32>
    %219 = arith.addf %215, %218 : vector<16x16xf32>
    %cst_52 = arith.constant 0.000000e+00 : f32
    %220 = vector.broadcast %cst_52 : f32 to vector<16x16xf32>
    %221 = arith.cmpf ogt, %219, %220 : vector<16x16xf32>
    %cst_53 = arith.constant 2.000000e-01 : f32
    %222 = vector.broadcast %cst_53 : f32 to vector<16x16xf32>
    %223 = arith.mulf %222, %219 : vector<16x16xf32>
    %224 = arith.select %221, %219, %223 : vector<16x16xi1>, vector<16x16xf32>
    %225 = arith.addf %224, %0 : vector<16x16xf32>
    %cst_54 = arith.constant dense<0xFF800000> : vector<16xf32>
    %226 = vector.multi_reduction <maximumf>, %225, %cst_54 [1] : vector<16x16xf32> to vector<16xf32>
    %227 = vector.shape_cast %226 : vector<16xf32> to vector<16x1xf32>
    %228 = vector.broadcast %227 : vector<16x1xf32> to vector<16x16xf32>
    %229 = arith.subf %225, %228 : vector<16x16xf32>
    %230 = math.exp %229 : vector<16x16xf32>
    %cst_55 = arith.constant dense<0.000000e+00> : vector<16xf32>
    %231 = vector.multi_reduction <add>, %230, %cst_55 [1] : vector<16x16xf32> to vector<16xf32>
    %232 = vector.shape_cast %231 : vector<16xf32> to vector<16x1xf32>
    %233 = vector.broadcast %232 : vector<16x1xf32> to vector<16x16xf32>
    %234 = arith.divf %230, %233 : vector<16x16xf32>
    %235 = vector.extract_strided_slice %127 {offsets = [0, 24], sizes = [16, 8], strides = [1, 1]} : vector<16x32xf32> to vector<16x8xf32>
    %cst_56 = arith.constant dense<0.000000e+00> : vector<16x8xf32>
    %236 = tpu.matmul %234, %235, %cst_56 {dimension_numbers = #tpu.dot_dimension_numbers<[1], [0], [0], [1], [0, 0, 1, 1], [], []>} : vector<16x16xf32>, vector<16x8xf32>, vector<16x8xf32> -> vector<16x8xf32>
    %237 = arith.addf %210, %236 : vector<16x8xf32>
    %cst_57 = arith.constant 2.500000e-01 : f32
    %238 = vector.broadcast %cst_57 : f32 to vector<16x8xf32>
    %239 = arith.mulf %237, %238 : vector<16x8xf32>
    %c0_58 = arith.constant 0 : index
    %c0_59 = arith.constant 0 : index
    %240 = vector.load %arg10[%c0_58, %c0_59] : memref<1x8xf32, #tpu.memory_space<vmem>>, vector<1x8xf32>
    %241 = vector.broadcast %240 : vector<1x8xf32> to vector<16x8xf32>
    %242 = arith.mulf %239, %241 : vector<16x8xf32>
    %c0_60 = arith.constant 0 : index
    %c0_61 = arith.constant 0 : index
    %243 = vector.load %arg11[%c0_60, %c0_61] : memref<1x8xf32, #tpu.memory_space<vmem>>, vector<1x8xf32>
    %244 = vector.broadcast %243 : vector<1x8xf32> to vector<16x8xf32>
    %245 = arith.addf %242, %244 : vector<16x8xf32>
    %c0_62 = arith.constant 0 : index
    %c0_63 = arith.constant 0 : index
    %246 = vector.load %arg4[%c0_62, %c0_63] : memref<16x16xf32, #tpu.memory_space<vmem>>, vector<16x16xf32>
    %c0_64 = arith.constant 0 : index
    %c0_65 = arith.constant 0 : index
    %c0_66 = arith.constant 0 : index
    %247 = vector.load %arg12[%c0_64, %c0_65, %c0_66] : memref<1x8x8xf32, #tpu.memory_space<vmem>>, vector<1x8x8xf32>
    %248 = vector.shape_cast %247 : vector<1x8x8xf32> to vector<8x8xf32>
    %cst_67 = arith.constant dense<0.000000e+00> : vector<16x8xf32>
    %249 = tpu.matmul %245, %248, %cst_67 {dimension_numbers = #tpu.dot_dimension_numbers<[1], [0], [0], [1], [0, 0, 1, 1], [], []>} : vector<16x8xf32>, vector<8x8xf32>, vector<16x8xf32> -> vector<16x8xf32>
    %cst_68 = arith.constant dense<0.000000e+00> : vector<16x8xf32>
    %250 = tpu.matmul %246, %249, %cst_68 {dimension_numbers = #tpu.dot_dimension_numbers<[1], [0], [0], [1], [0, 0, 1, 1], [], []>} : vector<16x16xf32>, vector<16x8xf32>, vector<16x8xf32> -> vector<16x8xf32>
    %c0_69 = arith.constant 0 : index
    %c0_70 = arith.constant 0 : index
    %c0_71 = arith.constant 0 : index
    %251 = vector.load %arg13[%c0_69, %c0_70, %c0_71] : memref<1x1x8xf32, #tpu.memory_space<vmem>>, vector<1x1x8xf32>
    %252 = vector.shape_cast %251 : vector<1x1x8xf32> to vector<1x8xf32>
    %253 = vector.broadcast %252 : vector<1x8xf32> to vector<16x8xf32>
    %254 = arith.mulf %250, %253 : vector<16x8xf32>
    %c0_72 = arith.constant 0 : index
    %c0_73 = arith.constant 0 : index
    %c0_74 = arith.constant 0 : index
    %255 = vector.load %arg14[%c0_72, %c0_73, %c0_74] : memref<1x1x8xf32, #tpu.memory_space<vmem>>, vector<1x1x8xf32>
    %256 = vector.shape_cast %255 : vector<1x1x8xf32> to vector<1x8xf32>
    %257 = vector.broadcast %256 : vector<1x8xf32> to vector<16x8xf32>
    %258 = arith.addf %254, %257 : vector<16x8xf32>
    %259 = arith.addf %258, %245 : vector<16x8xf32>
    %cst_75 = arith.constant 0.000000e+00 : f32
    %260 = vector.broadcast %cst_75 : f32 to vector<16x8xf32>
    %261 = arith.cmpf ogt, %259, %260 : vector<16x8xf32>
    %cst_76 = arith.constant 0.00999999977 : f32
    %262 = vector.broadcast %cst_76 : f32 to vector<16x8xf32>
    %263 = arith.mulf %262, %259 : vector<16x8xf32>
    %264 = arith.select %261, %259, %263 : vector<16x8xi1>, vector<16x8xf32>
    %c0_77 = arith.constant 0 : index
    %c0_78 = arith.constant 0 : index
    %265 = vector.load %arg5[%c0_77, %c0_78] : memref<2x16xf32, #tpu.memory_space<vmem>>, vector<2x16xf32>
    %c0_79 = arith.constant 0 : index
    %c0_80 = arith.constant 0 : index
    %266 = vector.load %arg15[%c0_79, %c0_80] : memref<16x32xf32, #tpu.memory_space<vmem>>, vector<16x32xf32>
    %c0_81 = arith.constant 0 : index
    %c0_82 = arith.constant 0 : index
    %267 = vector.load %arg16[%c0_81, %c0_82] : memref<1x32xf32, #tpu.memory_space<vmem>>, vector<1x32xf32>
    %cst_83 = arith.constant 0.000000e+00 : f32
    %268 = vector.broadcast %cst_83 : f32 to vector<2x8xf32>
    %cst_84 = arith.constant 0.000000e+00 : f32
    %269 = vector.broadcast %cst_84 : f32 to vector<2x8xf32>
    %cst_85 = arith.constant 0.000000e+00 : f32
    %270 = vector.broadcast %cst_85 : f32 to vector<2x8xf32>
    %271 = tpu.concatenate %268, %269 in 1 : vector<2x8xf32>, vector<2x8xf32> -> vector<2x16xf32>
    %cst_86 = arith.constant dense<0.000000e+00> : vector<2x32xf32>
    %272 = tpu.matmul %271, %266, %cst_86 {dimension_numbers = #tpu.dot_dimension_numbers<[1], [0], [0], [1], [0, 0, 1, 1], [], []>} : vector<2x16xf32>, vector<16x32xf32>, vector<2x32xf32> -> vector<2x32xf32>
    %273 = vector.broadcast %267 : vector<1x32xf32> to vector<2x32xf32>
    %274 = arith.addf %272, %273 : vector<2x32xf32>
    %275 = vector.extract_strided_slice %274 {offsets = [0, 0], sizes = [2, 8], strides = [1, 1]} : vector<2x32xf32> to vector<2x8xf32>
    %276 = arith.negf %275 : vector<2x8xf32>
    %277 = math.exp %276 : vector<2x8xf32>
    %cst_87 = arith.constant 1.000000e+00 : f32
    %278 = vector.broadcast %cst_87 : f32 to vector<2x8xf32>
    %279 = arith.addf %278, %277 : vector<2x8xf32>
    %280 = arith.divf %278, %279 : vector<2x8xf32>
    %281 = vector.extract_strided_slice %274 {offsets = [0, 8], sizes = [2, 8], strides = [1, 1]} : vector<2x32xf32> to vector<2x8xf32>
    %282 = arith.negf %281 : vector<2x8xf32>
    %283 = math.exp %282 : vector<2x8xf32>
    %cst_88 = arith.constant 1.000000e+00 : f32
    %284 = vector.broadcast %cst_88 : f32 to vector<2x8xf32>
    %285 = arith.addf %284, %283 : vector<2x8xf32>
    %286 = arith.divf %284, %285 : vector<2x8xf32>
    %287 = vector.extract_strided_slice %274 {offsets = [0, 16], sizes = [2, 8], strides = [1, 1]} : vector<2x32xf32> to vector<2x8xf32>
    %288 = math.tanh %287 : vector<2x8xf32>
    %289 = vector.extract_strided_slice %274 {offsets = [0, 24], sizes = [2, 8], strides = [1, 1]} : vector<2x32xf32> to vector<2x8xf32>
    %290 = arith.negf %289 : vector<2x8xf32>
    %291 = math.exp %290 : vector<2x8xf32>
    %cst_89 = arith.constant 1.000000e+00 : f32
    %292 = vector.broadcast %cst_89 : f32 to vector<2x8xf32>
    %293 = arith.addf %292, %291 : vector<2x8xf32>
    %294 = arith.divf %292, %293 : vector<2x8xf32>
    %295 = arith.mulf %286, %270 : vector<2x8xf32>
    %296 = arith.mulf %280, %288 : vector<2x8xf32>
    %297 = arith.addf %295, %296 : vector<2x8xf32>
    %298 = math.tanh %297 : vector<2x8xf32>
    %299 = arith.mulf %294, %298 : vector<2x8xf32>
    %cst_90 = arith.constant dense<0.000000e+00> : vector<2x16xf32>
    %300 = tpu.matmul %299, %264, %cst_90 {dimension_numbers = #tpu.dot_dimension_numbers<[1], [1], [0], [0], [0, 0, 1, 0], [], []>} : vector<2x8xf32>, vector<16x8xf32>, vector<2x16xf32> -> vector<2x16xf32>
    %301 = arith.addf %300, %265 : vector<2x16xf32>
    %cst_91 = arith.constant dense<0xFF800000> : vector<2xf32>
    %302 = vector.multi_reduction <maximumf>, %301, %cst_91 [1] : vector<2x16xf32> to vector<2xf32>
    %303 = vector.shape_cast %302 : vector<2xf32> to vector<2x1xf32>
    %304 = vector.broadcast %303 : vector<2x1xf32> to vector<2x16xf32>
    %305 = arith.subf %301, %304 : vector<2x16xf32>
    %306 = math.exp %305 : vector<2x16xf32>
    %cst_92 = arith.constant dense<0.000000e+00> : vector<2xf32>
    %307 = vector.multi_reduction <add>, %306, %cst_92 [1] : vector<2x16xf32> to vector<2xf32>
    %308 = vector.shape_cast %307 : vector<2xf32> to vector<2x1xf32>
    %309 = vector.broadcast %308 : vector<2x1xf32> to vector<2x16xf32>
    %310 = arith.divf %306, %309 : vector<2x16xf32>
    %cst_93 = arith.constant dense<0.000000e+00> : vector<2x8xf32>
    %311 = tpu.matmul %310, %264, %cst_93 {dimension_numbers = #tpu.dot_dimension_numbers<[1], [0], [0], [1], [0, 0, 1, 1], [], []>} : vector<2x16xf32>, vector<16x8xf32>, vector<2x8xf32> -> vector<2x8xf32>
    %312 = tpu.concatenate %299, %311 in 1 : vector<2x8xf32>, vector<2x8xf32> -> vector<2x16xf32>
    %cst_94 = arith.constant dense<0.000000e+00> : vector<2x32xf32>
    %313 = tpu.matmul %312, %266, %cst_94 {dimension_numbers = #tpu.dot_dimension_numbers<[1], [0], [0], [1], [0, 0, 1, 1], [], []>} : vector<2x16xf32>, vector<16x32xf32>, vector<2x32xf32> -> vector<2x32xf32>
    %314 = vector.broadcast %267 : vector<1x32xf32> to vector<2x32xf32>
    %315 = arith.addf %313, %314 : vector<2x32xf32>
    %316 = vector.extract_strided_slice %315 {offsets = [0, 0], sizes = [2, 8], strides = [1, 1]} : vector<2x32xf32> to vector<2x8xf32>
    %317 = arith.negf %316 : vector<2x8xf32>
    %318 = math.exp %317 : vector<2x8xf32>
    %cst_95 = arith.constant 1.000000e+00 : f32
    %319 = vector.broadcast %cst_95 : f32 to vector<2x8xf32>
    %320 = arith.addf %319, %318 : vector<2x8xf32>
    %321 = arith.divf %319, %320 : vector<2x8xf32>
    %322 = vector.extract_strided_slice %315 {offsets = [0, 8], sizes = [2, 8], strides = [1, 1]} : vector<2x32xf32> to vector<2x8xf32>
    %323 = arith.negf %322 : vector<2x8xf32>
    %324 = math.exp %323 : vector<2x8xf32>
    %cst_96 = arith.constant 1.000000e+00 : f32
    %325 = vector.broadcast %cst_96 : f32 to vector<2x8xf32>
    %326 = arith.addf %325, %324 : vector<2x8xf32>
    %327 = arith.divf %325, %326 : vector<2x8xf32>
    %328 = vector.extract_strided_slice %315 {offsets = [0, 16], sizes = [2, 8], strides = [1, 1]} : vector<2x32xf32> to vector<2x8xf32>
    %329 = math.tanh %328 : vector<2x8xf32>
    %330 = vector.extract_strided_slice %315 {offsets = [0, 24], sizes = [2, 8], strides = [1, 1]} : vector<2x32xf32> to vector<2x8xf32>
    %331 = arith.negf %330 : vector<2x8xf32>
    %332 = math.exp %331 : vector<2x8xf32>
    %cst_97 = arith.constant 1.000000e+00 : f32
    %333 = vector.broadcast %cst_97 : f32 to vector<2x8xf32>
    %334 = arith.addf %333, %332 : vector<2x8xf32>
    %335 = arith.divf %333, %334 : vector<2x8xf32>
    %336 = arith.mulf %327, %297 : vector<2x8xf32>
    %337 = arith.mulf %321, %329 : vector<2x8xf32>
    %338 = arith.addf %336, %337 : vector<2x8xf32>
    %339 = math.tanh %338 : vector<2x8xf32>
    %340 = arith.mulf %335, %339 : vector<2x8xf32>
    %cst_98 = arith.constant dense<0.000000e+00> : vector<2x16xf32>
    %341 = tpu.matmul %340, %264, %cst_98 {dimension_numbers = #tpu.dot_dimension_numbers<[1], [1], [0], [0], [0, 0, 1, 0], [], []>} : vector<2x8xf32>, vector<16x8xf32>, vector<2x16xf32> -> vector<2x16xf32>
    %342 = arith.addf %341, %265 : vector<2x16xf32>
    %cst_99 = arith.constant dense<0xFF800000> : vector<2xf32>
    %343 = vector.multi_reduction <maximumf>, %342, %cst_99 [1] : vector<2x16xf32> to vector<2xf32>
    %344 = vector.shape_cast %343 : vector<2xf32> to vector<2x1xf32>
    %345 = vector.broadcast %344 : vector<2x1xf32> to vector<2x16xf32>
    %346 = arith.subf %342, %345 : vector<2x16xf32>
    %347 = math.exp %346 : vector<2x16xf32>
    %cst_100 = arith.constant dense<0.000000e+00> : vector<2xf32>
    %348 = vector.multi_reduction <add>, %347, %cst_100 [1] : vector<2x16xf32> to vector<2xf32>
    %349 = vector.shape_cast %348 : vector<2xf32> to vector<2x1xf32>
    %350 = vector.broadcast %349 : vector<2x1xf32> to vector<2x16xf32>
    %351 = arith.divf %347, %350 : vector<2x16xf32>
    %cst_101 = arith.constant dense<0.000000e+00> : vector<2x8xf32>
    %352 = tpu.matmul %351, %264, %cst_101 {dimension_numbers = #tpu.dot_dimension_numbers<[1], [0], [0], [1], [0, 0, 1, 1], [], []>} : vector<2x16xf32>, vector<16x8xf32>, vector<2x8xf32> -> vector<2x8xf32>
    %353 = tpu.concatenate %340, %352 in 1 : vector<2x8xf32>, vector<2x8xf32> -> vector<2x16xf32>
    %cst_102 = arith.constant dense<0.000000e+00> : vector<2x32xf32>
    %354 = tpu.matmul %353, %266, %cst_102 {dimension_numbers = #tpu.dot_dimension_numbers<[1], [0], [0], [1], [0, 0, 1, 1], [], []>} : vector<2x16xf32>, vector<16x32xf32>, vector<2x32xf32> -> vector<2x32xf32>
    %355 = vector.broadcast %267 : vector<1x32xf32> to vector<2x32xf32>
    %356 = arith.addf %354, %355 : vector<2x32xf32>
    %357 = vector.extract_strided_slice %356 {offsets = [0, 0], sizes = [2, 8], strides = [1, 1]} : vector<2x32xf32> to vector<2x8xf32>
    %358 = arith.negf %357 : vector<2x8xf32>
    %359 = math.exp %358 : vector<2x8xf32>
    %cst_103 = arith.constant 1.000000e+00 : f32
    %360 = vector.broadcast %cst_103 : f32 to vector<2x8xf32>
    %361 = arith.addf %360, %359 : vector<2x8xf32>
    %362 = arith.divf %360, %361 : vector<2x8xf32>
    %363 = vector.extract_strided_slice %356 {offsets = [0, 8], sizes = [2, 8], strides = [1, 1]} : vector<2x32xf32> to vector<2x8xf32>
    %364 = arith.negf %363 : vector<2x8xf32>
    %365 = math.exp %364 : vector<2x8xf32>
    %cst_104 = arith.constant 1.000000e+00 : f32
    %366 = vector.broadcast %cst_104 : f32 to vector<2x8xf32>
    %367 = arith.addf %366, %365 : vector<2x8xf32>
    %368 = arith.divf %366, %367 : vector<2x8xf32>
    %369 = vector.extract_strided_slice %356 {offsets = [0, 16], sizes = [2, 8], strides = [1, 1]} : vector<2x32xf32> to vector<2x8xf32>
    %370 = math.tanh %369 : vector<2x8xf32>
    %371 = vector.extract_strided_slice %356 {offsets = [0, 24], sizes = [2, 8], strides = [1, 1]} : vector<2x32xf32> to vector<2x8xf32>
    %372 = arith.negf %371 : vector<2x8xf32>
    %373 = math.exp %372 : vector<2x8xf32>
    %cst_105 = arith.constant 1.000000e+00 : f32
    %374 = vector.broadcast %cst_105 : f32 to vector<2x8xf32>
    %375 = arith.addf %374, %373 : vector<2x8xf32>
    %376 = arith.divf %374, %375 : vector<2x8xf32>
    %377 = arith.mulf %368, %338 : vector<2x8xf32>
    %378 = arith.mulf %362, %370 : vector<2x8xf32>
    %379 = arith.addf %377, %378 : vector<2x8xf32>
    %380 = math.tanh %379 : vector<2x8xf32>
    %381 = arith.mulf %376, %380 : vector<2x8xf32>
    %cst_106 = arith.constant dense<0.000000e+00> : vector<2x16xf32>
    %382 = tpu.matmul %381, %264, %cst_106 {dimension_numbers = #tpu.dot_dimension_numbers<[1], [1], [0], [0], [0, 0, 1, 0], [], []>} : vector<2x8xf32>, vector<16x8xf32>, vector<2x16xf32> -> vector<2x16xf32>
    %383 = arith.addf %382, %265 : vector<2x16xf32>
    %cst_107 = arith.constant dense<0xFF800000> : vector<2xf32>
    %384 = vector.multi_reduction <maximumf>, %383, %cst_107 [1] : vector<2x16xf32> to vector<2xf32>
    %385 = vector.shape_cast %384 : vector<2xf32> to vector<2x1xf32>
    %386 = vector.broadcast %385 : vector<2x1xf32> to vector<2x16xf32>
    %387 = arith.subf %383, %386 : vector<2x16xf32>
    %388 = math.exp %387 : vector<2x16xf32>
    %cst_108 = arith.constant dense<0.000000e+00> : vector<2xf32>
    %389 = vector.multi_reduction <add>, %388, %cst_108 [1] : vector<2x16xf32> to vector<2xf32>
    %390 = vector.shape_cast %389 : vector<2xf32> to vector<2x1xf32>
    %391 = vector.broadcast %390 : vector<2x1xf32> to vector<2x16xf32>
    %392 = arith.divf %388, %391 : vector<2x16xf32>
    %cst_109 = arith.constant dense<0.000000e+00> : vector<2x8xf32>
    %393 = tpu.matmul %392, %264, %cst_109 {dimension_numbers = #tpu.dot_dimension_numbers<[1], [0], [0], [1], [0, 0, 1, 1], [], []>} : vector<2x16xf32>, vector<16x8xf32>, vector<2x8xf32> -> vector<2x8xf32>
    %394 = tpu.concatenate %381, %393 in 1 : vector<2x8xf32>, vector<2x8xf32> -> vector<2x16xf32>
    %cst_110 = arith.constant dense<0.000000e+00> : vector<2x32xf32>
    %395 = tpu.matmul %394, %266, %cst_110 {dimension_numbers = #tpu.dot_dimension_numbers<[1], [0], [0], [1], [0, 0, 1, 1], [], []>} : vector<2x16xf32>, vector<16x32xf32>, vector<2x32xf32> -> vector<2x32xf32>
    %396 = vector.broadcast %267 : vector<1x32xf32> to vector<2x32xf32>
    %397 = arith.addf %395, %396 : vector<2x32xf32>
    %398 = vector.extract_strided_slice %397 {offsets = [0, 0], sizes = [2, 8], strides = [1, 1]} : vector<2x32xf32> to vector<2x8xf32>
    %399 = arith.negf %398 : vector<2x8xf32>
    %400 = math.exp %399 : vector<2x8xf32>
    %cst_111 = arith.constant 1.000000e+00 : f32
    %401 = vector.broadcast %cst_111 : f32 to vector<2x8xf32>
    %402 = arith.addf %401, %400 : vector<2x8xf32>
    %403 = arith.divf %401, %402 : vector<2x8xf32>
    %404 = vector.extract_strided_slice %397 {offsets = [0, 8], sizes = [2, 8], strides = [1, 1]} : vector<2x32xf32> to vector<2x8xf32>
    %405 = arith.negf %404 : vector<2x8xf32>
    %406 = math.exp %405 : vector<2x8xf32>
    %cst_112 = arith.constant 1.000000e+00 : f32
    %407 = vector.broadcast %cst_112 : f32 to vector<2x8xf32>
    %408 = arith.addf %407, %406 : vector<2x8xf32>
    %409 = arith.divf %407, %408 : vector<2x8xf32>
    %410 = vector.extract_strided_slice %397 {offsets = [0, 16], sizes = [2, 8], strides = [1, 1]} : vector<2x32xf32> to vector<2x8xf32>
    %411 = math.tanh %410 : vector<2x8xf32>
    %412 = vector.extract_strided_slice %397 {offsets = [0, 24], sizes = [2, 8], strides = [1, 1]} : vector<2x32xf32> to vector<2x8xf32>
    %413 = arith.negf %412 : vector<2x8xf32>
    %414 = math.exp %413 : vector<2x8xf32>
    %cst_113 = arith.constant 1.000000e+00 : f32
    %415 = vector.broadcast %cst_113 : f32 to vector<2x8xf32>
    %416 = arith.addf %415, %414 : vector<2x8xf32>
    %417 = arith.divf %415, %416 : vector<2x8xf32>
    %418 = arith.mulf %409, %379 : vector<2x8xf32>
    %419 = arith.mulf %403, %411 : vector<2x8xf32>
    %420 = arith.addf %418, %419 : vector<2x8xf32>
    %421 = math.tanh %420 : vector<2x8xf32>
    %422 = arith.mulf %417, %421 : vector<2x8xf32>
    %cst_114 = arith.constant dense<0.000000e+00> : vector<2x16xf32>
    %423 = tpu.matmul %422, %264, %cst_114 {dimension_numbers = #tpu.dot_dimension_numbers<[1], [1], [0], [0], [0, 0, 1, 0], [], []>} : vector<2x8xf32>, vector<16x8xf32>, vector<2x16xf32> -> vector<2x16xf32>
    %424 = arith.addf %423, %265 : vector<2x16xf32>
    %cst_115 = arith.constant dense<0xFF800000> : vector<2xf32>
    %425 = vector.multi_reduction <maximumf>, %424, %cst_115 [1] : vector<2x16xf32> to vector<2xf32>
    %426 = vector.shape_cast %425 : vector<2xf32> to vector<2x1xf32>
    %427 = vector.broadcast %426 : vector<2x1xf32> to vector<2x16xf32>
    %428 = arith.subf %424, %427 : vector<2x16xf32>
    %429 = math.exp %428 : vector<2x16xf32>
    %cst_116 = arith.constant dense<0.000000e+00> : vector<2xf32>
    %430 = vector.multi_reduction <add>, %429, %cst_116 [1] : vector<2x16xf32> to vector<2xf32>
    %431 = vector.shape_cast %430 : vector<2xf32> to vector<2x1xf32>
    %432 = vector.broadcast %431 : vector<2x1xf32> to vector<2x16xf32>
    %433 = arith.divf %429, %432 : vector<2x16xf32>
    %cst_117 = arith.constant dense<0.000000e+00> : vector<2x8xf32>
    %434 = tpu.matmul %433, %264, %cst_117 {dimension_numbers = #tpu.dot_dimension_numbers<[1], [0], [0], [1], [0, 0, 1, 1], [], []>} : vector<2x16xf32>, vector<16x8xf32>, vector<2x8xf32> -> vector<2x8xf32>
    %435 = tpu.concatenate %422, %434 in 1 : vector<2x8xf32>, vector<2x8xf32> -> vector<2x16xf32>
    %cst_118 = arith.constant dense<0.000000e+00> : vector<2x32xf32>
    %436 = tpu.matmul %435, %266, %cst_118 {dimension_numbers = #tpu.dot_dimension_numbers<[1], [0], [0], [1], [0, 0, 1, 1], [], []>} : vector<2x16xf32>, vector<16x32xf32>, vector<2x32xf32> -> vector<2x32xf32>
    %437 = vector.broadcast %267 : vector<1x32xf32> to vector<2x32xf32>
    %438 = arith.addf %436, %437 : vector<2x32xf32>
    %439 = vector.extract_strided_slice %438 {offsets = [0, 0], sizes = [2, 8], strides = [1, 1]} : vector<2x32xf32> to vector<2x8xf32>
    %440 = arith.negf %439 : vector<2x8xf32>
    %441 = math.exp %440 : vector<2x8xf32>
    %cst_119 = arith.constant 1.000000e+00 : f32
    %442 = vector.broadcast %cst_119 : f32 to vector<2x8xf32>
    %443 = arith.addf %442, %441 : vector<2x8xf32>
    %444 = arith.divf %442, %443 : vector<2x8xf32>
    %445 = vector.extract_strided_slice %438 {offsets = [0, 8], sizes = [2, 8], strides = [1, 1]} : vector<2x32xf32> to vector<2x8xf32>
    %446 = arith.negf %445 : vector<2x8xf32>
    %447 = math.exp %446 : vector<2x8xf32>
    %cst_120 = arith.constant 1.000000e+00 : f32
    %448 = vector.broadcast %cst_120 : f32 to vector<2x8xf32>
    %449 = arith.addf %448, %447 : vector<2x8xf32>
    %450 = arith.divf %448, %449 : vector<2x8xf32>
    %451 = vector.extract_strided_slice %438 {offsets = [0, 16], sizes = [2, 8], strides = [1, 1]} : vector<2x32xf32> to vector<2x8xf32>
    %452 = math.tanh %451 : vector<2x8xf32>
    %453 = vector.extract_strided_slice %438 {offsets = [0, 24], sizes = [2, 8], strides = [1, 1]} : vector<2x32xf32> to vector<2x8xf32>
    %454 = arith.negf %453 : vector<2x8xf32>
    %455 = math.exp %454 : vector<2x8xf32>
    %cst_121 = arith.constant 1.000000e+00 : f32
    %456 = vector.broadcast %cst_121 : f32 to vector<2x8xf32>
    %457 = arith.addf %456, %455 : vector<2x8xf32>
    %458 = arith.divf %456, %457 : vector<2x8xf32>
    %459 = arith.mulf %450, %420 : vector<2x8xf32>
    %460 = arith.mulf %444, %452 : vector<2x8xf32>
    %461 = arith.addf %459, %460 : vector<2x8xf32>
    %462 = math.tanh %461 : vector<2x8xf32>
    %463 = arith.mulf %458, %462 : vector<2x8xf32>
    %cst_122 = arith.constant dense<0.000000e+00> : vector<2x16xf32>
    %464 = tpu.matmul %463, %264, %cst_122 {dimension_numbers = #tpu.dot_dimension_numbers<[1], [1], [0], [0], [0, 0, 1, 0], [], []>} : vector<2x8xf32>, vector<16x8xf32>, vector<2x16xf32> -> vector<2x16xf32>
    %465 = arith.addf %464, %265 : vector<2x16xf32>
    %cst_123 = arith.constant dense<0xFF800000> : vector<2xf32>
    %466 = vector.multi_reduction <maximumf>, %465, %cst_123 [1] : vector<2x16xf32> to vector<2xf32>
    %467 = vector.shape_cast %466 : vector<2xf32> to vector<2x1xf32>
    %468 = vector.broadcast %467 : vector<2x1xf32> to vector<2x16xf32>
    %469 = arith.subf %465, %468 : vector<2x16xf32>
    %470 = math.exp %469 : vector<2x16xf32>
    %cst_124 = arith.constant dense<0.000000e+00> : vector<2xf32>
    %471 = vector.multi_reduction <add>, %470, %cst_124 [1] : vector<2x16xf32> to vector<2xf32>
    %472 = vector.shape_cast %471 : vector<2xf32> to vector<2x1xf32>
    %473 = vector.broadcast %472 : vector<2x1xf32> to vector<2x16xf32>
    %474 = arith.divf %470, %473 : vector<2x16xf32>
    %cst_125 = arith.constant dense<0.000000e+00> : vector<2x8xf32>
    %475 = tpu.matmul %474, %264, %cst_125 {dimension_numbers = #tpu.dot_dimension_numbers<[1], [0], [0], [1], [0, 0, 1, 1], [], []>} : vector<2x16xf32>, vector<16x8xf32>, vector<2x8xf32> -> vector<2x8xf32>
    %476 = tpu.concatenate %463, %475 in 1 : vector<2x8xf32>, vector<2x8xf32> -> vector<2x16xf32>
    %cst_126 = arith.constant dense<0.000000e+00> : vector<2x32xf32>
    %477 = tpu.matmul %476, %266, %cst_126 {dimension_numbers = #tpu.dot_dimension_numbers<[1], [0], [0], [1], [0, 0, 1, 1], [], []>} : vector<2x16xf32>, vector<16x32xf32>, vector<2x32xf32> -> vector<2x32xf32>
    %478 = vector.broadcast %267 : vector<1x32xf32> to vector<2x32xf32>
    %479 = arith.addf %477, %478 : vector<2x32xf32>
    %480 = vector.extract_strided_slice %479 {offsets = [0, 0], sizes = [2, 8], strides = [1, 1]} : vector<2x32xf32> to vector<2x8xf32>
    %481 = arith.negf %480 : vector<2x8xf32>
    %482 = math.exp %481 : vector<2x8xf32>
    %cst_127 = arith.constant 1.000000e+00 : f32
    %483 = vector.broadcast %cst_127 : f32 to vector<2x8xf32>
    %484 = arith.addf %483, %482 : vector<2x8xf32>
    %485 = arith.divf %483, %484 : vector<2x8xf32>
    %486 = vector.extract_strided_slice %479 {offsets = [0, 8], sizes = [2, 8], strides = [1, 1]} : vector<2x32xf32> to vector<2x8xf32>
    %487 = arith.negf %486 : vector<2x8xf32>
    %488 = math.exp %487 : vector<2x8xf32>
    %cst_128 = arith.constant 1.000000e+00 : f32
    %489 = vector.broadcast %cst_128 : f32 to vector<2x8xf32>
    %490 = arith.addf %489, %488 : vector<2x8xf32>
    %491 = arith.divf %489, %490 : vector<2x8xf32>
    %492 = vector.extract_strided_slice %479 {offsets = [0, 16], sizes = [2, 8], strides = [1, 1]} : vector<2x32xf32> to vector<2x8xf32>
    %493 = math.tanh %492 : vector<2x8xf32>
    %494 = vector.extract_strided_slice %479 {offsets = [0, 24], sizes = [2, 8], strides = [1, 1]} : vector<2x32xf32> to vector<2x8xf32>
    %495 = arith.negf %494 : vector<2x8xf32>
    %496 = math.exp %495 : vector<2x8xf32>
    %cst_129 = arith.constant 1.000000e+00 : f32
    %497 = vector.broadcast %cst_129 : f32 to vector<2x8xf32>
    %498 = arith.addf %497, %496 : vector<2x8xf32>
    %499 = arith.divf %497, %498 : vector<2x8xf32>
    %500 = arith.mulf %491, %461 : vector<2x8xf32>
    %501 = arith.mulf %485, %493 : vector<2x8xf32>
    %502 = arith.addf %500, %501 : vector<2x8xf32>
    %503 = math.tanh %502 : vector<2x8xf32>
    %504 = arith.mulf %499, %503 : vector<2x8xf32>
    %cst_130 = arith.constant dense<0.000000e+00> : vector<2x16xf32>
    %505 = tpu.matmul %504, %264, %cst_130 {dimension_numbers = #tpu.dot_dimension_numbers<[1], [1], [0], [0], [0, 0, 1, 0], [], []>} : vector<2x8xf32>, vector<16x8xf32>, vector<2x16xf32> -> vector<2x16xf32>
    %506 = arith.addf %505, %265 : vector<2x16xf32>
    %cst_131 = arith.constant dense<0xFF800000> : vector<2xf32>
    %507 = vector.multi_reduction <maximumf>, %506, %cst_131 [1] : vector<2x16xf32> to vector<2xf32>
    %508 = vector.shape_cast %507 : vector<2xf32> to vector<2x1xf32>
    %509 = vector.broadcast %508 : vector<2x1xf32> to vector<2x16xf32>
    %510 = arith.subf %506, %509 : vector<2x16xf32>
    %511 = math.exp %510 : vector<2x16xf32>
    %cst_132 = arith.constant dense<0.000000e+00> : vector<2xf32>
    %512 = vector.multi_reduction <add>, %511, %cst_132 [1] : vector<2x16xf32> to vector<2xf32>
    %513 = vector.shape_cast %512 : vector<2xf32> to vector<2x1xf32>
    %514 = vector.broadcast %513 : vector<2x1xf32> to vector<2x16xf32>
    %515 = arith.divf %511, %514 : vector<2x16xf32>
    %cst_133 = arith.constant dense<0.000000e+00> : vector<2x8xf32>
    %516 = tpu.matmul %515, %264, %cst_133 {dimension_numbers = #tpu.dot_dimension_numbers<[1], [0], [0], [1], [0, 0, 1, 1], [], []>} : vector<2x16xf32>, vector<16x8xf32>, vector<2x8xf32> -> vector<2x8xf32>
    %517 = tpu.concatenate %504, %516 in 1 : vector<2x8xf32>, vector<2x8xf32> -> vector<2x16xf32>
    %cst_134 = arith.constant dense<0.000000e+00> : vector<2x32xf32>
    %518 = tpu.matmul %517, %266, %cst_134 {dimension_numbers = #tpu.dot_dimension_numbers<[1], [0], [0], [1], [0, 0, 1, 1], [], []>} : vector<2x16xf32>, vector<16x32xf32>, vector<2x32xf32> -> vector<2x32xf32>
    %519 = vector.broadcast %267 : vector<1x32xf32> to vector<2x32xf32>
    %520 = arith.addf %518, %519 : vector<2x32xf32>
    %521 = vector.extract_strided_slice %520 {offsets = [0, 0], sizes = [2, 8], strides = [1, 1]} : vector<2x32xf32> to vector<2x8xf32>
    %522 = arith.negf %521 : vector<2x8xf32>
    %523 = math.exp %522 : vector<2x8xf32>
    %cst_135 = arith.constant 1.000000e+00 : f32
    %524 = vector.broadcast %cst_135 : f32 to vector<2x8xf32>
    %525 = arith.addf %524, %523 : vector<2x8xf32>
    %526 = arith.divf %524, %525 : vector<2x8xf32>
    %527 = vector.extract_strided_slice %520 {offsets = [0, 8], sizes = [2, 8], strides = [1, 1]} : vector<2x32xf32> to vector<2x8xf32>
    %528 = arith.negf %527 : vector<2x8xf32>
    %529 = math.exp %528 : vector<2x8xf32>
    %cst_136 = arith.constant 1.000000e+00 : f32
    %530 = vector.broadcast %cst_136 : f32 to vector<2x8xf32>
    %531 = arith.addf %530, %529 : vector<2x8xf32>
    %532 = arith.divf %530, %531 : vector<2x8xf32>
    %533 = vector.extract_strided_slice %520 {offsets = [0, 16], sizes = [2, 8], strides = [1, 1]} : vector<2x32xf32> to vector<2x8xf32>
    %534 = math.tanh %533 : vector<2x8xf32>
    %535 = vector.extract_strided_slice %520 {offsets = [0, 24], sizes = [2, 8], strides = [1, 1]} : vector<2x32xf32> to vector<2x8xf32>
    %536 = arith.negf %535 : vector<2x8xf32>
    %537 = math.exp %536 : vector<2x8xf32>
    %cst_137 = arith.constant 1.000000e+00 : f32
    %538 = vector.broadcast %cst_137 : f32 to vector<2x8xf32>
    %539 = arith.addf %538, %537 : vector<2x8xf32>
    %540 = arith.divf %538, %539 : vector<2x8xf32>
    %541 = arith.mulf %532, %502 : vector<2x8xf32>
    %542 = arith.mulf %526, %534 : vector<2x8xf32>
    %543 = arith.addf %541, %542 : vector<2x8xf32>
    %544 = math.tanh %543 : vector<2x8xf32>
    %545 = arith.mulf %540, %544 : vector<2x8xf32>
    %cst_138 = arith.constant dense<0.000000e+00> : vector<2x16xf32>
    %546 = tpu.matmul %545, %264, %cst_138 {dimension_numbers = #tpu.dot_dimension_numbers<[1], [1], [0], [0], [0, 0, 1, 0], [], []>} : vector<2x8xf32>, vector<16x8xf32>, vector<2x16xf32> -> vector<2x16xf32>
    %547 = arith.addf %546, %265 : vector<2x16xf32>
    %cst_139 = arith.constant dense<0xFF800000> : vector<2xf32>
    %548 = vector.multi_reduction <maximumf>, %547, %cst_139 [1] : vector<2x16xf32> to vector<2xf32>
    %549 = vector.shape_cast %548 : vector<2xf32> to vector<2x1xf32>
    %550 = vector.broadcast %549 : vector<2x1xf32> to vector<2x16xf32>
    %551 = arith.subf %547, %550 : vector<2x16xf32>
    %552 = math.exp %551 : vector<2x16xf32>
    %cst_140 = arith.constant dense<0.000000e+00> : vector<2xf32>
    %553 = vector.multi_reduction <add>, %552, %cst_140 [1] : vector<2x16xf32> to vector<2xf32>
    %554 = vector.shape_cast %553 : vector<2xf32> to vector<2x1xf32>
    %555 = vector.broadcast %554 : vector<2x1xf32> to vector<2x16xf32>
    %556 = arith.divf %552, %555 : vector<2x16xf32>
    %cst_141 = arith.constant dense<0.000000e+00> : vector<2x8xf32>
    %557 = tpu.matmul %556, %264, %cst_141 {dimension_numbers = #tpu.dot_dimension_numbers<[1], [0], [0], [1], [0, 0, 1, 1], [], []>} : vector<2x16xf32>, vector<16x8xf32>, vector<2x8xf32> -> vector<2x8xf32>
    %558 = tpu.concatenate %545, %557 in 1 : vector<2x8xf32>, vector<2x8xf32> -> vector<2x16xf32>
    %cst_142 = arith.constant dense<0.000000e+00> : vector<2x32xf32>
    %559 = tpu.matmul %558, %266, %cst_142 {dimension_numbers = #tpu.dot_dimension_numbers<[1], [0], [0], [1], [0, 0, 1, 1], [], []>} : vector<2x16xf32>, vector<16x32xf32>, vector<2x32xf32> -> vector<2x32xf32>
    %560 = vector.broadcast %267 : vector<1x32xf32> to vector<2x32xf32>
    %561 = arith.addf %559, %560 : vector<2x32xf32>
    %562 = vector.extract_strided_slice %561 {offsets = [0, 0], sizes = [2, 8], strides = [1, 1]} : vector<2x32xf32> to vector<2x8xf32>
    %563 = arith.negf %562 : vector<2x8xf32>
    %564 = math.exp %563 : vector<2x8xf32>
    %cst_143 = arith.constant 1.000000e+00 : f32
    %565 = vector.broadcast %cst_143 : f32 to vector<2x8xf32>
    %566 = arith.addf %565, %564 : vector<2x8xf32>
    %567 = arith.divf %565, %566 : vector<2x8xf32>
    %568 = vector.extract_strided_slice %561 {offsets = [0, 8], sizes = [2, 8], strides = [1, 1]} : vector<2x32xf32> to vector<2x8xf32>
    %569 = arith.negf %568 : vector<2x8xf32>
    %570 = math.exp %569 : vector<2x8xf32>
    %cst_144 = arith.constant 1.000000e+00 : f32
    %571 = vector.broadcast %cst_144 : f32 to vector<2x8xf32>
    %572 = arith.addf %571, %570 : vector<2x8xf32>
    %573 = arith.divf %571, %572 : vector<2x8xf32>
    %574 = vector.extract_strided_slice %561 {offsets = [0, 16], sizes = [2, 8], strides = [1, 1]} : vector<2x32xf32> to vector<2x8xf32>
    %575 = math.tanh %574 : vector<2x8xf32>
    %576 = vector.extract_strided_slice %561 {offsets = [0, 24], sizes = [2, 8], strides = [1, 1]} : vector<2x32xf32> to vector<2x8xf32>
    %577 = arith.negf %576 : vector<2x8xf32>
    %578 = math.exp %577 : vector<2x8xf32>
    %cst_145 = arith.constant 1.000000e+00 : f32
    %579 = vector.broadcast %cst_145 : f32 to vector<2x8xf32>
    %580 = arith.addf %579, %578 : vector<2x8xf32>
    %581 = arith.divf %579, %580 : vector<2x8xf32>
    %582 = arith.mulf %573, %543 : vector<2x8xf32>
    %583 = arith.mulf %567, %575 : vector<2x8xf32>
    %584 = arith.addf %582, %583 : vector<2x8xf32>
    %585 = math.tanh %584 : vector<2x8xf32>
    %586 = arith.mulf %581, %585 : vector<2x8xf32>
    %cst_146 = arith.constant dense<0.000000e+00> : vector<2x16xf32>
    %587 = tpu.matmul %586, %264, %cst_146 {dimension_numbers = #tpu.dot_dimension_numbers<[1], [1], [0], [0], [0, 0, 1, 0], [], []>} : vector<2x8xf32>, vector<16x8xf32>, vector<2x16xf32> -> vector<2x16xf32>
    %588 = arith.addf %587, %265 : vector<2x16xf32>
    %cst_147 = arith.constant dense<0xFF800000> : vector<2xf32>
    %589 = vector.multi_reduction <maximumf>, %588, %cst_147 [1] : vector<2x16xf32> to vector<2xf32>
    %590 = vector.shape_cast %589 : vector<2xf32> to vector<2x1xf32>
    %591 = vector.broadcast %590 : vector<2x1xf32> to vector<2x16xf32>
    %592 = arith.subf %588, %591 : vector<2x16xf32>
    %593 = math.exp %592 : vector<2x16xf32>
    %cst_148 = arith.constant dense<0.000000e+00> : vector<2xf32>
    %594 = vector.multi_reduction <add>, %593, %cst_148 [1] : vector<2x16xf32> to vector<2xf32>
    %595 = vector.shape_cast %594 : vector<2xf32> to vector<2x1xf32>
    %596 = vector.broadcast %595 : vector<2x1xf32> to vector<2x16xf32>
    %597 = arith.divf %593, %596 : vector<2x16xf32>
    %cst_149 = arith.constant dense<0.000000e+00> : vector<2x8xf32>
    %598 = tpu.matmul %597, %264, %cst_149 {dimension_numbers = #tpu.dot_dimension_numbers<[1], [0], [0], [1], [0, 0, 1, 1], [], []>} : vector<2x16xf32>, vector<16x8xf32>, vector<2x8xf32> -> vector<2x8xf32>
    %599 = tpu.concatenate %586, %598 in 1 : vector<2x8xf32>, vector<2x8xf32> -> vector<2x16xf32>
    %cst_150 = arith.constant dense<0.000000e+00> : vector<2x32xf32>
    %600 = tpu.matmul %599, %266, %cst_150 {dimension_numbers = #tpu.dot_dimension_numbers<[1], [0], [0], [1], [0, 0, 1, 1], [], []>} : vector<2x16xf32>, vector<16x32xf32>, vector<2x32xf32> -> vector<2x32xf32>
    %601 = vector.broadcast %267 : vector<1x32xf32> to vector<2x32xf32>
    %602 = arith.addf %600, %601 : vector<2x32xf32>
    %603 = vector.extract_strided_slice %602 {offsets = [0, 0], sizes = [2, 8], strides = [1, 1]} : vector<2x32xf32> to vector<2x8xf32>
    %604 = arith.negf %603 : vector<2x8xf32>
    %605 = math.exp %604 : vector<2x8xf32>
    %cst_151 = arith.constant 1.000000e+00 : f32
    %606 = vector.broadcast %cst_151 : f32 to vector<2x8xf32>
    %607 = arith.addf %606, %605 : vector<2x8xf32>
    %608 = arith.divf %606, %607 : vector<2x8xf32>
    %609 = vector.extract_strided_slice %602 {offsets = [0, 8], sizes = [2, 8], strides = [1, 1]} : vector<2x32xf32> to vector<2x8xf32>
    %610 = arith.negf %609 : vector<2x8xf32>
    %611 = math.exp %610 : vector<2x8xf32>
    %cst_152 = arith.constant 1.000000e+00 : f32
    %612 = vector.broadcast %cst_152 : f32 to vector<2x8xf32>
    %613 = arith.addf %612, %611 : vector<2x8xf32>
    %614 = arith.divf %612, %613 : vector<2x8xf32>
    %615 = vector.extract_strided_slice %602 {offsets = [0, 16], sizes = [2, 8], strides = [1, 1]} : vector<2x32xf32> to vector<2x8xf32>
    %616 = math.tanh %615 : vector<2x8xf32>
    %617 = vector.extract_strided_slice %602 {offsets = [0, 24], sizes = [2, 8], strides = [1, 1]} : vector<2x32xf32> to vector<2x8xf32>
    %618 = arith.negf %617 : vector<2x8xf32>
    %619 = math.exp %618 : vector<2x8xf32>
    %cst_153 = arith.constant 1.000000e+00 : f32
    %620 = vector.broadcast %cst_153 : f32 to vector<2x8xf32>
    %621 = arith.addf %620, %619 : vector<2x8xf32>
    %622 = arith.divf %620, %621 : vector<2x8xf32>
    %623 = arith.mulf %614, %584 : vector<2x8xf32>
    %624 = arith.mulf %608, %616 : vector<2x8xf32>
    %625 = arith.addf %623, %624 : vector<2x8xf32>
    %626 = math.tanh %625 : vector<2x8xf32>
    %627 = arith.mulf %622, %626 : vector<2x8xf32>
    %cst_154 = arith.constant dense<0.000000e+00> : vector<2x16xf32>
    %628 = tpu.matmul %627, %264, %cst_154 {dimension_numbers = #tpu.dot_dimension_numbers<[1], [1], [0], [0], [0, 0, 1, 0], [], []>} : vector<2x8xf32>, vector<16x8xf32>, vector<2x16xf32> -> vector<2x16xf32>
    %629 = arith.addf %628, %265 : vector<2x16xf32>
    %cst_155 = arith.constant dense<0xFF800000> : vector<2xf32>
    %630 = vector.multi_reduction <maximumf>, %629, %cst_155 [1] : vector<2x16xf32> to vector<2xf32>
    %631 = vector.shape_cast %630 : vector<2xf32> to vector<2x1xf32>
    %632 = vector.broadcast %631 : vector<2x1xf32> to vector<2x16xf32>
    %633 = arith.subf %629, %632 : vector<2x16xf32>
    %634 = math.exp %633 : vector<2x16xf32>
    %cst_156 = arith.constant dense<0.000000e+00> : vector<2xf32>
    %635 = vector.multi_reduction <add>, %634, %cst_156 [1] : vector<2x16xf32> to vector<2xf32>
    %636 = vector.shape_cast %635 : vector<2xf32> to vector<2x1xf32>
    %637 = vector.broadcast %636 : vector<2x1xf32> to vector<2x16xf32>
    %638 = arith.divf %634, %637 : vector<2x16xf32>
    %cst_157 = arith.constant dense<0.000000e+00> : vector<2x8xf32>
    %639 = tpu.matmul %638, %264, %cst_157 {dimension_numbers = #tpu.dot_dimension_numbers<[1], [0], [0], [1], [0, 0, 1, 1], [], []>} : vector<2x16xf32>, vector<16x8xf32>, vector<2x8xf32> -> vector<2x8xf32>
    %640 = tpu.concatenate %627, %639 in 1 : vector<2x8xf32>, vector<2x8xf32> -> vector<2x16xf32>
    %cst_158 = arith.constant dense<0.000000e+00> : vector<2x32xf32>
    %641 = tpu.matmul %640, %266, %cst_158 {dimension_numbers = #tpu.dot_dimension_numbers<[1], [0], [0], [1], [0, 0, 1, 1], [], []>} : vector<2x16xf32>, vector<16x32xf32>, vector<2x32xf32> -> vector<2x32xf32>
    %642 = vector.broadcast %267 : vector<1x32xf32> to vector<2x32xf32>
    %643 = arith.addf %641, %642 : vector<2x32xf32>
    %644 = vector.extract_strided_slice %643 {offsets = [0, 0], sizes = [2, 8], strides = [1, 1]} : vector<2x32xf32> to vector<2x8xf32>
    %645 = arith.negf %644 : vector<2x8xf32>
    %646 = math.exp %645 : vector<2x8xf32>
    %cst_159 = arith.constant 1.000000e+00 : f32
    %647 = vector.broadcast %cst_159 : f32 to vector<2x8xf32>
    %648 = arith.addf %647, %646 : vector<2x8xf32>
    %649 = arith.divf %647, %648 : vector<2x8xf32>
    %650 = vector.extract_strided_slice %643 {offsets = [0, 8], sizes = [2, 8], strides = [1, 1]} : vector<2x32xf32> to vector<2x8xf32>
    %651 = arith.negf %650 : vector<2x8xf32>
    %652 = math.exp %651 : vector<2x8xf32>
    %cst_160 = arith.constant 1.000000e+00 : f32
    %653 = vector.broadcast %cst_160 : f32 to vector<2x8xf32>
    %654 = arith.addf %653, %652 : vector<2x8xf32>
    %655 = arith.divf %653, %654 : vector<2x8xf32>
    %656 = vector.extract_strided_slice %643 {offsets = [0, 16], sizes = [2, 8], strides = [1, 1]} : vector<2x32xf32> to vector<2x8xf32>
    %657 = math.tanh %656 : vector<2x8xf32>
    %658 = vector.extract_strided_slice %643 {offsets = [0, 24], sizes = [2, 8], strides = [1, 1]} : vector<2x32xf32> to vector<2x8xf32>
    %659 = arith.negf %658 : vector<2x8xf32>
    %660 = math.exp %659 : vector<2x8xf32>
    %cst_161 = arith.constant 1.000000e+00 : f32
    %661 = vector.broadcast %cst_161 : f32 to vector<2x8xf32>
    %662 = arith.addf %661, %660 : vector<2x8xf32>
    %663 = arith.divf %661, %662 : vector<2x8xf32>
    %664 = arith.mulf %655, %625 : vector<2x8xf32>
    %665 = arith.mulf %649, %657 : vector<2x8xf32>
    %666 = arith.addf %664, %665 : vector<2x8xf32>
    %667 = math.tanh %666 : vector<2x8xf32>
    %668 = arith.mulf %663, %667 : vector<2x8xf32>
    %cst_162 = arith.constant dense<0.000000e+00> : vector<2x16xf32>
    %669 = tpu.matmul %668, %264, %cst_162 {dimension_numbers = #tpu.dot_dimension_numbers<[1], [1], [0], [0], [0, 0, 1, 0], [], []>} : vector<2x8xf32>, vector<16x8xf32>, vector<2x16xf32> -> vector<2x16xf32>
    %670 = arith.addf %669, %265 : vector<2x16xf32>
    %cst_163 = arith.constant dense<0xFF800000> : vector<2xf32>
    %671 = vector.multi_reduction <maximumf>, %670, %cst_163 [1] : vector<2x16xf32> to vector<2xf32>
    %672 = vector.shape_cast %671 : vector<2xf32> to vector<2x1xf32>
    %673 = vector.broadcast %672 : vector<2x1xf32> to vector<2x16xf32>
    %674 = arith.subf %670, %673 : vector<2x16xf32>
    %675 = math.exp %674 : vector<2x16xf32>
    %cst_164 = arith.constant dense<0.000000e+00> : vector<2xf32>
    %676 = vector.multi_reduction <add>, %675, %cst_164 [1] : vector<2x16xf32> to vector<2xf32>
    %677 = vector.shape_cast %676 : vector<2xf32> to vector<2x1xf32>
    %678 = vector.broadcast %677 : vector<2x1xf32> to vector<2x16xf32>
    %679 = arith.divf %675, %678 : vector<2x16xf32>
    %cst_165 = arith.constant dense<0.000000e+00> : vector<2x8xf32>
    %680 = tpu.matmul %679, %264, %cst_165 {dimension_numbers = #tpu.dot_dimension_numbers<[1], [0], [0], [1], [0, 0, 1, 1], [], []>} : vector<2x16xf32>, vector<16x8xf32>, vector<2x8xf32> -> vector<2x8xf32>
    %681 = tpu.concatenate %668, %680 in 1 : vector<2x8xf32>, vector<2x8xf32> -> vector<2x16xf32>
    %c0_166 = arith.constant 0 : index
    %c0_167 = arith.constant 0 : index
    %682 = vector.load %arg17[%c0_166, %c0_167] : memref<16x8xf32, #tpu.memory_space<vmem>>, vector<16x8xf32>
    %cst_168 = arith.constant dense<0.000000e+00> : vector<2x8xf32>
    %683 = tpu.matmul %681, %682, %cst_168 {dimension_numbers = #tpu.dot_dimension_numbers<[1], [0], [0], [1], [0, 0, 1, 1], [], []>} : vector<2x16xf32>, vector<16x8xf32>, vector<2x8xf32> -> vector<2x8xf32>
    %c0_169 = arith.constant 0 : index
    %c0_170 = arith.constant 0 : index
    %684 = vector.load %arg18[%c0_169, %c0_170] : memref<1x8xf32, #tpu.memory_space<vmem>>, vector<1x8xf32>
    %685 = vector.broadcast %684 : vector<1x8xf32> to vector<2x8xf32>
    %686 = arith.addf %683, %685 : vector<2x8xf32>
    %cst_171 = arith.constant 0.000000e+00 : f32
    %687 = vector.broadcast %cst_171 : f32 to vector<2x8xf32>
    %688 = arith.cmpf ogt, %686, %687 : vector<2x8xf32>
    %cst_172 = arith.constant 0.00999999977 : f32
    %689 = vector.broadcast %cst_172 : f32 to vector<2x8xf32>
    %690 = arith.mulf %689, %686 : vector<2x8xf32>
    %691 = arith.select %688, %686, %690 : vector<2x8xi1>, vector<2x8xf32>
    %c0_173 = arith.constant 0 : index
    %c0_174 = arith.constant 0 : index
    %692 = vector.load %arg19[%c0_173, %c0_174] : memref<8x3xf32, #tpu.memory_space<vmem>>, vector<8x3xf32>
    %cst_175 = arith.constant dense<0.000000e+00> : vector<2x3xf32>
    %693 = tpu.matmul %691, %692, %cst_175 {dimension_numbers = #tpu.dot_dimension_numbers<[1], [0], [0], [1], [0, 0, 1, 1], [], []>} : vector<2x8xf32>, vector<8x3xf32>, vector<2x3xf32> -> vector<2x3xf32>
    %c0_176 = arith.constant 0 : index
    %c0_177 = arith.constant 0 : index
    %694 = vector.load %arg20[%c0_176, %c0_177] : memref<1x3xf32, #tpu.memory_space<vmem>>, vector<1x3xf32>
    %695 = vector.broadcast %694 : vector<1x3xf32> to vector<2x3xf32>
    %696 = arith.addf %693, %695 : vector<2x3xf32>
    %c0_178 = arith.constant 0 : index
    %c0_179 = arith.constant 0 : index
    %697 = vector.load %arg21[%c0_178, %c0_179] : memref<2x3xf32, #tpu.memory_space<vmem>>, vector<2x3xf32>
    tpu.vector_store %arg21[%c0_178, %c0_179], %696 {strides = array<i32>} : memref<2x3xf32, #tpu.memory_space<vmem>>, vector<2x3xf32>,
    return
  }
}

</mosaic_0001>

<bundles_post_ra>
// kernel: forward.1
= control target key start
LH: loop header
LB: loop body
LE: loop exit
PB: predicated region body
PF: predicated region fallthrough
CT: control target
= control target key end

     0   :  { %s4061_s0 = inlined_call_operand.vmem [shape: f32[8], index: 0, kind: input, shape index: {}]   ;;  %s4062_s1 = inlined_call_operand.vmem [shape: f32[16,4], index: 1, kind: input, shape index: {}]   ;;  %s4063_s2 = inlined_call_operand.vmem [shape: f32[16,16], index: 2, kind: input, shape index: {}]   ;;  %s4064_s3 = inlined_call_operand.vmem [shape: f32[16,16], index: 3, kind: input, shape index: {}]   ;;  %s4065_s4 = inlined_call_operand.vmem [shape: f32[16,16], index: 4, kind: input, shape index: {}]   ;;  %s4066_s5 = inlined_call_operand.vmem [shape: f32[2,16], index: 5, kind: input, shape index: {}]   ;;  %s4067_s6 = inlined_call_operand.vmem [shape: f32[4,40], index: 6, kind: input, shape index: {}]   ;;  %s4068_s7 = inlined_call_operand.vmem [shape: f32[1,32], index: 7, kind: input, shape index: {}]   ;;  %s4069_s8 = inlined_call_operand.vmem [shape: f32[1,32], index: 8, kind: input, shape index: {}]   ;;  %s4070_s9 = inlined_call_operand.vmem [shape: f32[32,40], index: 9, kind: input, shape index: {}]   ;;  %s4071_s10 = inlined_call_operand.vmem [shape: f32[1,8], index: 10, kind: input, shape index: {}]   ;;  %s4072_s11 = inlined_call_operand.vmem [shape: f32[1,8], index: 11, kind: input, shape index: {}]   ;;  %s4073_s12 = inlined_call_operand.vmem [shape: f32[1,8,8], index: 12, kind: input, shape index: {}]   ;;  %s4074_s13 = inlined_call_operand.vmem [shape: f32[1,1,8], index: 13, kind: input, shape index: {}]   ;;  %s4075_s14 = inlined_call_operand.vmem [shape: f32[1,1,8], index: 14, kind: input, shape index: {}]   ;;  %s4076_s15 = inlined_call_operand.vmem [shape: f32[16,32], index: 15, kind: input, shape index: {}]   ;;  %s4077_s16 = inlined_call_operand.vmem [shape: f32[1,32], index: 16, kind: input, shape index: {}]   ;;  %s4078_s17 = inlined_call_operand.vmem [shape: f32[16,8], index: 17, kind: input, shape index: {}]   ;;  %s4079_s18 = inlined_call_operand.vmem [shape: f32[1,8], index: 18, kind: input, shape index: {}]   ;;  %s4080_s19 = inlined_call_operand.vmem [shape: f32[8,3], index: 19, kind: input, shape index: {}]   ;;  %s4081_s20 = inlined_call_operand.vmem [shape: f32[1,3], index: 20, kind: input, shape index: {}]   ;;  %s4082_s21 = inlined_call_operand.hbm [shape: f32[2,3], index: 21, kind: output, shape index: {}]  }
   0x1   :  { %4088 = sst [smem:[#allocation8_spill]] %s4061_s0 }
   0x2   :  { %4089 = sst [smem:[#allocation9_spill]] %s4062_s1 }
   0x3   :  { %4090 = sst [smem:[#allocation10_spill]] %s4063_s2 }
   0x4   :  { %4091 = sst [smem:[#allocation11_spill]] %s4064_s3 }
   0x5   :  { %4092 = sst [smem:[#allocation12_spill]] %s4065_s4 }
   0x6   :  { %4093 = sst [smem:[#allocation13_spill]] %s4066_s5 }
   0x7   :  { %26 = vsyncpa [#allocation4], 0 }
   0x8   :  { %27 = vsyncpa [#allocation3], 0  ;;  %s4094_s26 = sld [smem:[#allocation8_spill]]  ;;  %s3091_s3 = smov [#allocation2]  }
   0xe   :  { %s33_s27 = sshll.u32 %s4094_s26, 4  ;;  %s34_s27 = int_to_ptr.vmem [resolvable:$true] %s33_s27 }
   0xf   :  { %36 = dma.vmem_to_smem %s34_s27, 16, %s3091_s3, [#allocation4]  }
  0x10   :  { %3087 = dma.done.wait [#allocation4], 16  }
  0x11   :  { %3088 = vsyncadd [#allocation4], 4294967280 }
  0x12   :  { %81 = sfence }
  0x13   :  { %v95_v0 = vld [vmem:[%s4067_s6] sm:$0xf]  ;;  %vm103_vm0 = vcmask 1043456   ;;  %s4095_s30 = sld [smem:[#allocation9_spill]]  ;;  %vm96_vm1 = vcmask 31744   ;;  %v3092_v2 = vmov 37   ;;  %v86_v9 = vlaneseq }
  0x14   :  { %2697 = vmatpush.msk.msra.mxu0 %vm103_vm0, %v95_v0  ;;  %2810 = vset.pattern.permute.xlu1 %v3092_v2  ;;  %v3093_v4 = vmov 38   ;;  %s3094_s6 = smov 96   ;;  %v3095_v7 = vmov 39   ;;  %v3096_v8 = vmov 36   ;;  %v3097_v14 = vmov 0.0   ;;  %s2705_s23 = sld [smem:[#allocation2 + $0x1]] }
  0x15   :  { %2812 = vset.pattern.permute.xlu2 %v3092_v2  ;;  %2814 = vset.pattern.permute.xlu0 %v3093_v4  ;;  %v87_v11 = vshrl.u32 %v86_v9, 7  ;;  %v89_v12 = vand.u32 127, %v86_v9  ;;  %s3258_s1 = sld [smem:[#allocation2 + $0x2]]  ;;  %vm188_vm3 = vcmask 130048   ;;  %s3098_s22 = smov 120  }
  0x16   :  { %s2711_s24 = sld [smem:[#allocation2 + $0x3]]  ;;  %s3103_s25 = smov 8  }
  0x17   :  { %vm90_vm2 = vcmp.eq.s32.totalorder %v87_v11, %v89_v12  ;;  %s3260_s2 = sld [smem:[#allocation2]] }
  0x18   :  { %v3254_v15 = vsel %vm90_vm2, 1.0, %v3097_v14  ;;  %s4096_s27 = sld [smem:[#allocation11_spill]] }
  0x19   :  { %v93_v1 = vld [vmem:[%s4095_s30] sm:$0xff]  ;;  %v94_v3 = vld [vmem:[%s4095_s30 + $0x8] sm:$0xff]  ;;  %s4097_s4 = sld [smem:[#allocation10_spill]] }
  0x1a   :  { %2698 = vmatmul.msk.f32.vlgmr.msra.gmra.mxu0 %vm96_vm1, %v93_v1  ;;  %v278_v21 = vstv %s2705_s23  ;;  %s3099_s23 = smov 104   ;;  %s4117_s29 = sld [smem:[#allocation13_spill]] }
  0x1b   :  { %v386_v23 = vstv %s3258_s1  ;;  %s3100_s1 = smov 112  }
  0x1c   :  { %v494_v24 = vstv %s2711_s24  ;;  %s3101_s24 = smov 16  }
  0x1d   :  { %v175_v25 = vstv %s3260_s2  ;;  %s3102_s2 = smov 24  }
  0x1e   :  { %v3265_v20 = vld [vmem:[%s4096_s27 + $0x8] sm:$0xff]  ;;  %v3270_v22 = vld [vmem:[%s4096_s27] sm:$0xff] }
  0x1f   :  { %v280_v27 = vmul.f32 %v278_v21, %v3265_v20  ;;  %v279_v28 = vmul.f32 %v278_v21, %v3270_v22  ;;  %v387_v34 = vmul.f32 %v386_v23, %v3270_v22  ;;  %v496_v35 = vmul.f32 %v494_v24, %v3265_v20  ;;  %v3291_v47 = vld [vmem:[%s4097_s4 + $0x8] sm:$0xff]  ;;  %v3296_v48 = vld [vmem:[%s4097_s4] sm:$0xff] }
  0x20   :  { %v495_v36 = vmul.f32 %v494_v24, %v3270_v22  ;;  %v176_v37 = vmul.f32 %v175_v25, %v3270_v22  ;;  %v388_v58 = vmul.f32 %v386_v23, %v3265_v20 }
  0x22   :  { %2699 = vmatmul.msk.f32.gmra.mxu0 %vm96_vm1, %v94_v3 }
  0x97   :  { %v3230_v5 = vpop.f32.mrf.mxu0 }
  0x98   :  { %267 = vperm.xlu1 %2810, %v3230_v5  }
  0x9f   :  { %v3233_v6 = vpop.f32.mrf.mxu0 }
  0xa0   :  { %2811 = vset.pattern.permute.xlu1 %v3093_v4  ;;  %271 = vperm.xlu2 %2812, %v3233_v6  }
  0xa1   :  { %134 = vrot.lane.b32.xlu0 %v3233_v6, %s3094_s6  ;;  %257 = vmatpush.msra.mxu2 %v3233_v6 }
  0xa2   :  { %375 = vperm.xlu1 %2811, %v3230_v5  }
  0xa3   :  { %258 = vmatpush.msra.mxu2 %v3230_v5 }
  0xa8   :  { %2813 = vset.pattern.permute.xlu2 %v3095_v7 }
  0xa9   :  { %132 = vrot.lane.b32.xlu0 %v3230_v5, %s3094_s6  ;;  %483 = vperm.xlu2 %2813, %v3230_v5  }
  0xaa   :  { %2815 = vset.pattern.permute.xlu1 %v3095_v7 }
  0xab   :  { %487 = vperm.xlu1 %2815, %v3233_v6  }
  0xb1   :  { %379 = vperm.xlu0 %2814, %v3233_v6   ;;  %2816 = vset.pattern.permute.xlu2 %v3096_v8 }
  0xb2   :  { %164 = vperm.xlu2 %2816, %v3230_v5  }
  0xb3   :  { %2817 = vset.pattern.permute.xlu1 %v3096_v8 }
  0xb4   :  { %168 = vperm.xlu1 %2817, %v3233_v6  }
  0xb9   :  { %2834 = vset.pattern.permute.xlu0 %v3095_v7 }
  0xba   :  { %2833 = vset.pattern.permute.xlu2 %v3092_v2 }
  0xbc   :  { %2837 = vset.pattern.permute.xlu1 %v3092_v2 }
  0xfa   :  { %v272_v16 = vpop.permute.xlu2 %271 }
 0x103   :  { %v484_v18 = vpop.permute.xlu2 %483 }
 0x10a   :  { %v268_v17 = vpop.permute.xlu1 %267 }
 0x10c   :  { %v165_v33 = vpop.permute.xlu2 %164 }
 0x113   :  { %v135_v10 = vpop.permute.xlu0 %134 }
 0x114   :  { %2700 = vmatpush.xpose.msk.msra.mxu1 %vm96_vm1, %v135_v10  ;;  %v376_v19 = vpop.permute.xlu1 %375 }
 0x11b   :  { %v133_v13 = vpop.permute.xlu0 %132 }
 0x11c   :  { %2701 = vmatpush.xpose.msk.msra.mxu1 %vm96_vm1, %v133_v13 }
 0x11d   :  { %v488_v38 = vpop.permute.xlu1 %487 }
 0x11f   :  { %2702 = vmatmul.msk.f32.vlgmr.msra.gmra.mxu1 %vm96_vm1, %v3254_v15 }
 0x123   :  { %v380_v53 = vpop.permute.xlu0 %379 }
 0x19c   :  { %v3274_v26 = vpop.f32.mrf.mxu1 }
 0x19d   :  { %v171_v29 = vperm.slane %v3274_v26, 0  ;;  %v274_v30 = vperm.slane %v3274_v26, 1  ;;  %v382_v31 = vperm.slane %v3274_v26, 2  ;;  %v490_v32 = vperm.slane %v3274_v26, 3 }
 0x19e   :  { %v177_v26 = vmul.f32 %v175_v25, %v3265_v20 }
 0x19f   :  { %v172_v39 = vadd.f32 %v171_v29, %v165_v33  ;;  %v275_v40 = vadd.f32 %v274_v30, %v268_v17  ;;  %v276_v41 = vadd.f32 %v274_v30, %v272_v16  ;;  %v383_v42 = vadd.f32 %v382_v31, %v376_v19  ;;  %v169_v17 = vpop.permute.xlu1 %168 }
 0x1a0   :  { %v491_v43 = vadd.f32 %v490_v32, %v484_v18  ;;  %v492_v44 = vadd.f32 %v490_v32, %v488_v38  ;;  %v384_v56 = vadd.f32 %v382_v31, %v380_v53  ;;  %v173_v21 = vadd.f32 %v171_v29, %v169_v17 }
 0x1a1   :  { %v282_v45 = vadd.f32 %v280_v27, %v276_v41  ;;  %v281_v46 = vadd.f32 %v279_v28, %v275_v40  ;;  %v389_v49 = vadd.f32 %v387_v34, %v383_v42  ;;  %v178_v52 = vadd.f32 %v176_v37, %v172_v39 }
 0x1a2   :  { %v498_v50 = vadd.f32 %v496_v35, %v492_v44  ;;  %v497_v51 = vadd.f32 %v495_v36, %v491_v43  ;;  %v390_v12 = vadd.f32 %v388_v58, %v384_v56  ;;  %v179_v32 = vadd.f32 %v177_v26, %v173_v21 }
 0x1a3   :  { %vm284_vm4 = vcmp.gt.f32.partialorder %v282_v45, 0.0  ;;  %v286_v54 = vmul.f32 0.2, %v282_v45  ;;  %vm283_vm5 = vcmp.gt.f32.partialorder %v281_v46, 0.0  ;;  %v285_v55 = vmul.f32 0.2, %v281_v46 }
 0x1a4   :  { %vm391_vm6 = vcmp.gt.f32.partialorder %v389_v49, 0.0  ;;  %v393_v57 = vmul.f32 0.2, %v389_v49  ;;  %v502_v61 = vmul.f32 0.2, %v498_v50  ;;  %vm499_vm7 = vcmp.gt.f32.partialorder %v497_v51, 0.0 }
 0x1a5   :  { %v288_v59 = vsel %vm284_vm4, %v282_v45, %v286_v54  ;;  %v287_v60 = vsel %vm283_vm5, %v281_v46, %v285_v55  ;;  %v501_v62 = vmul.f32 0.2, %v497_v51  ;;  %vm500_vm8 = vcmp.gt.f32.partialorder %v498_v50, 0.0 }
 0x1a6   :  { %v290_v63 = vadd.f32 %v288_v59, %v3291_v47  ;;  %v395_v0 = vsel %vm391_vm6, %v389_v49, %v393_v57  ;;  %v289_v1 = vadd.f32 %v287_v60, %v3296_v48  ;;  %vm180_vm9 = vcmp.gt.f32.partialorder %v178_v52, 0.0 }
 0x1a7   :  { %v397_v2 = vadd.f32 %v395_v0, %v3296_v48  ;;  %v182_v9 = vmul.f32 0.2, %v178_v52  ;;  %v503_v11 = vsel %vm499_vm7, %v497_v51, %v501_v62  ;;  %v504_v13 = vsel %vm500_vm8, %v498_v50, %v502_v61 }
 0x1a8   :  { %v294_v3 = vsel %vm188_vm3, %v290_v63, -inf  ;;  %v291_v7 = vsel %vm188_vm3, %v289_v1, -inf  ;;  %v505_v18 = vadd.f32 %v503_v11, %v3296_v48  ;;  %v506_v23 = vadd.f32 %v504_v13, %v3291_v47 }
 0x1a9   :  { %295 = vmax.xlane.f32.xlu1 %v294_v3  ;;  %v399_v10 = vsel %vm188_vm3, %v397_v2, -inf  ;;  %292 = vmax.xlane.f32.xlu2 %v291_v7  ;;  %v184_v16 = vsel %vm180_vm9, %v178_v52, %v182_v9  ;;  %v394_v24 = vmul.f32 0.2, %v390_v12  ;;  %vm392_vm10 = vcmp.gt.f32.partialorder %v390_v12, 0.0 }
 0x1aa   :  { %400 = vmax.xlane.f32.xlu0 %v399_v10  ;;  %v3307_v19 = vadd.f32 %v184_v16, %v3296_v48  ;;  %v507_v27 = vsel %vm188_vm3, %v505_v18, -inf  ;;  %v510_v30 = vsel %vm188_vm3, %v506_v23, -inf  ;;  %v183_v33 = vmul.f32 0.2, %v179_v32 }
 0x1ab   :  { %v396_v31 = vsel %vm392_vm10, %v390_v12, %v394_v24  ;;  %vm181_vm11 = vcmp.gt.f32.partialorder %v179_v32, 0.0  ;;  %v2818_v9 = vpack.i.bf16 %v3230_v5, %v3233_v6 }
 0x1ac   :  { %v189_v28 = vsel %vm188_vm3, %v3307_v19, -inf  ;;  %v398_v29 = vadd.f32 %v396_v31, %v3291_v47  ;;  %v185_v25 = vsel %vm181_vm11, %v179_v32, %v183_v33 }
 0x1ad   :  { %v187_v35 = vadd.f32 %v185_v25, %v3291_v47 }
 0x1ae   :  { %v402_v34 = vsel %vm188_vm3, %v398_v29, -inf }
 0x1af   :  { %v192_v36 = vsel %vm188_vm3, %v187_v35, -inf }
 0x1b1   :  { %508 = vmax.xlane.f32.xlu2 %v507_v27  ;;  %190 = vmax.xlane.f32.xlu1 %v189_v28 }
 0x1b2   :  { %511 = vmax.xlane.f32.xlu0 %v510_v30 }
 0x1b9   :  { %403 = vmax.xlane.f32.xlu2 %v402_v34 }
 0x1c1   :  { %193 = vmax.xlane.f32.xlu2 %v192_v36 }
 0x21c   :  { %v296_v37 = vpop.xlane.xlu1 %295  ;;  %v293_v38 = vpop.xlane.xlu2 %292 }
 0x21d   :  { %v298_v39 = vsub.f32 %v290_v63, %v296_v37  ;;  %v401_v40 = vpop.xlane.xlu0 %400  ;;  %v297_v41 = vsub.f32 %v289_v1, %v293_v38 }
 0x21e   :  { %v405_v42 = vsub.f32 %v397_v2, %v401_v40 }
 0x21f   :  { %v301_v43 = vmul.f32 1.442695, %v298_v39  ;;  %v299_v44 = vmul.f32 1.442695, %v297_v41 }
 0x220   :  { %v407_v45 = vmul.f32 1.442695, %v405_v42 }
 0x221   :  { %2863 = vpow2.f32 %v301_v43 }
 0x222   :  { %2865 = vpow2.f32 %v407_v45 }
 0x223   :  { %2867 = vpow2.f32 %v299_v44 }
 0x224   :  { %v509_v46 = vpop.xlane.xlu2 %508  ;;  %v191_v10 = vpop.xlane.xlu1 %190 }
 0x225   :  { %v512_v49 = vpop.xlane.xlu0 %511  ;;  %v513_v50 = vsub.f32 %v505_v18, %v509_v46  ;;  %v195_v11 = vsub.f32 %v3307_v19, %v191_v10 }
 0x226   :  { %v514_v51 = vsub.f32 %v506_v23, %v512_v49 }
 0x227   :  { %v3321_v52 = vpop.eup %2863  ;;  %v515_v53 = vmul.f32 1.442695, %v513_v50  ;;  %v197_v12 = vmul.f32 1.442695, %v195_v11 }
 0x228   :  { %v3323_v54 = vpop.eup %2865  ;;  %v517_v55 = vmul.f32 1.442695, %v514_v51  ;;  %v306_v56 = vsel %vm188_vm3, %v3321_v52, 0.0 }
 0x229   :  { %v3327_v57 = vpop.eup %2867  ;;  %2869 = vpow2.f32 %v515_v53  ;;  %307 = vadd.xlane.f32.xlu2 %v306_v56  ;;  %v411_v58 = vsel %vm188_vm3, %v3323_v54, 0.0 }
 0x22a   :  { %2871 = vpow2.f32 %v517_v55  ;;  %v303_v59 = vsel %vm188_vm3, %v3327_v57, 0.0  ;;  %412 = vadd.xlane.f32.xlu1 %v411_v58 }
 0x22b   :  { %304 = vadd.xlane.f32.xlu0 %v303_v59 }
 0x22c   :  { %v404_v60 = vpop.xlane.xlu2 %403 }
 0x22d   :  { %v406_v61 = vsub.f32 %v398_v29, %v404_v60 }
 0x22f   :  { %v3333_v62 = vpop.eup %2869  ;;  %v409_v63 = vmul.f32 1.442695, %v406_v61 }
 0x230   :  { %v3335_v0 = vpop.eup %2871  ;;  %v519_v1 = vsel %vm188_vm3, %v3333_v62, 0.0 }
 0x231   :  { %2873 = vpow2.f32 %v409_v63  ;;  %v522_v2 = vsel %vm188_vm3, %v3335_v0, 0.0 }
 0x232   :  { %523 = vadd.xlane.f32.xlu2 %v522_v2  ;;  %2875 = vpow2.f32 %v197_v12 }
 0x233   :  { %520 = vadd.xlane.f32.xlu0 %v519_v1 }
 0x234   :  { %v194_v13 = vpop.xlane.xlu2 %193 }
 0x235   :  { %v196_v16 = vsub.f32 %v187_v35, %v194_v13 }
 0x237   :  { %v3341_v3 = vpop.eup %2873  ;;  %v199_v18 = vmul.f32 1.442695, %v196_v16 }
 0x238   :  { %v414_v7 = vsel %vm188_vm3, %v3341_v3, 0.0  ;;  %v3351_v17 = vpop.eup %2875 }
 0x239   :  { %415 = vadd.xlane.f32.xlu1 %v414_v7  ;;  %v201_v5 = vsel %vm188_vm3, %v3351_v17, 0.0  ;;  %2877 = vpow2.f32 %v199_v18 }
 0x23f   :  { %v3355_v6 = vpop.eup %2877 }
 0x240   :  { %v204_v21 = vsel %vm188_vm3, %v3355_v6, 0.0 }
 0x247   :  { %2819 = vrot.lane.b32.xlu0 %v2818_v9, %s3098_s22 }
 0x24a   :  { %2829 = vrot.lane.b32.xlu2 %v2818_v9, %s3099_s23 }
 0x252   :  { %2824 = vrot.lane.b32.xlu1 %v2818_v9, %s3100_s1 }
 0x271   :  { %202 = vadd.xlane.f32.xlu0 %v201_v5 }
 0x27c   :  { %205 = vadd.xlane.f32.xlu1 %v204_v21 }
 0x29c   :  { %v3359_v23 = vpop.xlane.xlu2 %307 }
 0x29d   :  { %v3364_v26 = vpop.xlane.xlu1 %412  ;;  %vm329_vm11 = vweird.f32 %v3359_v23 }
 0x29e   :  { %v305_v19 = vpop.xlane.xlu0 %304 }
 0x29f   :  { %2879 = vrcp.f32 %v305_v19  ;;  %v320_v55 = vand.u32 2147483648, %v305_v19  ;;  %vm314_vm15 = vweird.f32 %v305_v19  ;;  %v318_v60 = vand.u32 2147483647, %v305_v19 }
 0x2a0   :  { %2881 = vrcp.f32 %v3359_v23 }
 0x2a1   :  { %v321_v12 = vor.u32 1.1754944e-38, %v320_v55  ;;  %vm319_vm7 = vcmp.eq.f32.partialorder %v318_v60, 8.507059e+37 }
 0x2a5   :  { %v3361_v24 = vpop.eup %2879  ;;  %v3366_v27 = vpop.xlane.xlu2 %523 }
 0x2a6   :  { %v521_v28 = vpop.xlane.xlu0 %520  ;;  %2883 = vrcp.f32 %v3366_v27  ;;  %v310_v30 = vmul.f32 %v3361_v24, %v305_v19  ;;  %v3371_v31 = vpop.eup %2881  ;;  %vm315_vm13 = vweird.f32 %v3361_v24  ;;  %v551_v9 = vand.u32 2147483648, %v3366_v27 }
 0x2a7   :  { %2885 = vrcp.f32 %v521_v28  ;;  %v325_v40 = vmul.f32 %v3371_v31, %v3359_v23  ;;  %v536_v45 = vand.u32 2147483648, %v521_v28  ;;  %v534_v49 = vand.u32 2147483647, %v521_v28  ;;  %vm3390_vm4 = vmor %vm314_vm15, %vm315_vm13 }
 0x2a8   :  { %2887 = vrcp.f32 %v3364_v26  ;;  %v311_v32 = vsub.f32 1.0, %v310_v30  ;;  %vm530_vm14 = vweird.f32 %v521_v28  ;;  %vm545_vm6 = vweird.f32 %v3366_v27 }
 0x2a9   :  { %v326_v51 = vsub.f32 1.0, %v325_v40  ;;  %v537_v59 = vor.u32 1.1754944e-38, %v536_v45  ;;  %vm535_vm2 = vcmp.eq.f32.partialorder %v534_v49, 8.507059e+37  ;;  %v549_v16 = vand.u32 2147483647, %v3366_v27 }
 0x2aa   :  { %v312_v39 = vmul.f32 %v3361_v24, %v311_v32  ;;  %vm330_vm9 = vweird.f32 %v3371_v31  ;;  %v335_v32 = vand.u32 2147483648, %v3359_v23 }
 0x2ab   :  { %v327_v7 = vmul.f32 %v3371_v31, %v326_v51  ;;  %vm550_vm10 = vcmp.eq.f32.partialorder %v549_v16, 8.507059e+37  ;;  %vm331_vm13 = vmor %vm329_vm11, %vm330_vm9 }
 0x2ac   :  { %v3373_v29 = vpop.eup %2883  ;;  %v3379_v37 = vpop.xlane.xlu1 %415  ;;  %v313_v53 = vadd.f32 %v3361_v24, %v312_v39  ;;  %v428_v39 = vand.u32 2147483648, %v3364_v26 }
 0x2ad   :  { %v2886_v33 = vpop.eup %2885  ;;  %v541_v34 = vmul.f32 %v3373_v29, %v3366_v27  ;;  %v2830_v25 = vpop.permute.xlu2 %2829  ;;  %2889 = vrcp.f32 %v3379_v37  ;;  %vm546_vm5 = vweird.f32 %v3373_v29  ;;  %v552_v27 = vor.u32 1.1754944e-38, %v551_v9 }
 0x2ae   :  { %v3377_v35 = vpop.eup %2887  ;;  %v526_v36 = vmul.f32 %v2886_v33, %v521_v28  ;;  %v2831_v38 = vunpack.i.l.bf16 %v2830_v25  ;;  %v2832_v43 = vunpack.i.h.bf16 %v2830_v25  ;;  %vm531_vm12 = vweird.f32 %v2886_v33  ;;  %vm3407_vm8 = vmor %vm545_vm6, %vm546_vm5 }
 0x2af   :  { %v542_v41 = vsub.f32 1.0, %v541_v34  ;;  %v418_v44 = vmul.f32 %v3377_v35, %v3364_v26  ;;  %vm532_vm0 = vmor %vm530_vm14, %vm531_vm12  ;;  %v317_v11 = vsel %vm3390_vm4, %v3361_v24, %v313_v53  ;;  %v328_v30 = vadd.f32 %v3371_v31, %v327_v7 }
 0x2b0   :  { %v527_v42 = vsub.f32 1.0, %v526_v36  ;;  %581 = vmatpush.msrb.mxu0 %v2831_v38  ;;  %v322_v28 = vsel %vm319_vm7, %v321_v12, %v317_v11  ;;  %v333_v36 = vand.u32 2147483647, %v3359_v23  ;;  %vm423_vm12 = vweird.f32 %v3377_v35 }
 0x2b1   :  { %v543_v50 = vmul.f32 %v3373_v29, %v542_v41  ;;  %v419_v58 = vsub.f32 1.0, %v418_v44  ;;  %v323_v34 = vmul.f32 %v3327_v57, %v322_v28  ;;  %v332_v40 = vsel %vm331_vm13, %v3371_v31, %v328_v30 }
 0x2b2   :  { %v528_v46 = vmul.f32 %v2886_v33, %v527_v42  ;;  %582 = vmatpush.msrb.mxu0 %v2832_v43  ;;  %v336_v41 = vor.u32 1.1754944e-38, %v335_v32  ;;  %vm422_vm14 = vweird.f32 %v3364_v26  ;;  %v426_v57 = vand.u32 2147483647, %v3364_v26 }
 0x2b3   :  { %v544_v1 = vadd.f32 %v3373_v29, %v543_v50  ;;  %v3396_v2 = vpop.eup %2889  ;;  %v420_v18 = vmul.f32 %v3377_v35, %v419_v58  ;;  %vm424_vm15 = vmor %vm422_vm14, %vm423_vm12  ;;  %v429_v45 = vor.u32 1.1754944e-38, %v428_v39  ;;  %vm437_vm5 = vweird.f32 %v3379_v37 }
 0x2b4   :  { %v529_v56 = vadd.f32 %v2886_v33, %v528_v46  ;;  %v433_v19 = vmul.f32 %v3396_v2, %v3379_v37  ;;  %vm438_vm4 = vweird.f32 %v3396_v2  ;;  %v441_v53 = vand.u32 2147483647, %v3379_v37 }
 0x2b5   :  { %v421_v38 = vadd.f32 %v3377_v35, %v420_v18  ;;  %vm439_vm6 = vmor %vm437_vm5, %vm438_vm4  ;;  %vm638_vm4 = vcmask 261120  }
 0x2b6   :  { %v533_v61 = vsel %vm532_vm0, %v2886_v33, %v529_v56  ;;  %vm334_vm0 = vcmp.eq.f32.partialorder %v333_v36, 8.507059e+37  ;;  %vm442_vm7 = vcmp.eq.f32.partialorder %v441_v53, 8.507059e+37  ;;  %v636_v36 = vld [vmem:[%s4070_s9 + $0x10] sm:$0xff] }
 0x2b7   :  { %v538_v10 = vsel %vm535_vm2, %v537_v59, %v533_v61  ;;  %v337_v43 = vsel %vm334_vm0, %v336_v41, %v332_v40  ;;  %v425_v44 = vsel %vm424_vm15, %v3377_v35, %v421_v38  ;;  %vm427_vm2 = vcmp.eq.f32.partialorder %v426_v57, 8.507059e+37  ;;  %v635_v38 = vld [vmem:[%s4070_s9 + $0x8] sm:$0xff]  ;;  %v2854_v57 = vld [vmem:[%s4068_s7] ss:$0 sm:$0xff]  ;;  %s2720_s7 = sld [smem:[#allocation2 + $0x5]] }
 0x2b8   :  { %v539_v13 = vmul.f32 %v3333_v62, %v538_v10  ;;  %v548_v62 = vsel %vm3407_vm8, %v3373_v29, %v544_v1  ;;  %v434_v29 = vsub.f32 1.0, %v433_v19  ;;  %v338_v31 = vmul.f32 %v3321_v52, %v337_v43 }
 0x2b9   :  { %v2820_v5 = vpop.permute.xlu0 %2819  ;;  %v553_v25 = vsel %vm550_vm10, %v552_v27, %v548_v62  ;;  %v430_v50 = vsel %vm427_vm2, %v429_v45, %v425_v44  ;;  %vm614_vm0 = vcmask 64512   ;;  %vm619_vm2 = vcmask 195584   ;;  %v2855_v44 = vld [vmem:[%s4069_s8] ss:$0 sm:$0xff]  ;;  %s3503_s8 = sld [smem:[#allocation2 + $0x4]] }
 0x2ba   :  { %2712 = vmatmul.msk.f32.vlgmr.msrb.gmra.mxu0 %vm188_vm3, %v539_v13  ;;  %v2821_v24 = vunpack.i.l.bf16 %v2820_v5  ;;  %v2822_v33 = vunpack.i.h.bf16 %v2820_v5  ;;  %v554_v23 = vmul.f32 %v3335_v0, %v553_v25  ;;  %v435_v42 = vmul.f32 %v3396_v2, %v434_v29  ;;  %v637_v25 = vld [vmem:[%s4070_s9 + $0x18] sm:$0xff]  ;;  %v634_v29 = vld [vmem:[%s4070_s9] sm:$0xff]  ;;  %s2728_s9 = sld [smem:[#allocation2 + $0x7]] }
 0x2bb   :  { %v443_v0 = vand.u32 2147483648, %v3379_v37  ;;  %v431_v35 = vmul.f32 %v3323_v54, %v430_v50  ;;  %657 = vmatpush.msrb.mxu2 %v637_v25 }
 0x2bc   :  { %365 = vmatpush.msra.mxu3 %v2821_v24  ;;  %v436_v26 = vadd.f32 %v3396_v2, %v435_v42 }
 0x2bd   :  { %v444_v55 = vor.u32 1.1754944e-38, %v443_v0  ;;  %658 = vmatpush.msrb.mxu2 %v636_v36 }
 0x2be   :  { %366 = vmatpush.msra.mxu3 %v2822_v33  ;;  %v440_v52 = vsel %vm439_vm6, %v3396_v2, %v436_v26 }
 0x2bf   :  { %2706 = vmatmul.msk.f32.vlgmr.msra.gmra.mxu3 %vm188_vm3, %v323_v34  ;;  %v445_v56 = vsel %vm442_vm7, %v444_v55, %v440_v52  ;;  %659 = vmatpush.msrb.mxu2 %v635_v38 }
 0x2c0   :  { %v446_v58 = vmul.f32 %v3341_v3, %v445_v56 }
 0x2c1   :  { %660 = vmatpush.msrb.mxu2 %v634_v29 }
 0x2c2   :  { %2713 = vmatmul.msk.f32.gmra.mxu0 %vm188_vm3, %v554_v23 }
 0x2c4   :  { %v2825_v46 = vpop.permute.xlu1 %2824 }
 0x2c5   :  { %v2826_v49 = vunpack.i.l.bf16 %v2825_v46  ;;  %v2827_v51 = vunpack.i.h.bf16 %v2825_v46 }
 0x2c7   :  { %2707 = vmatmul.msk.f32.gmra.mxu3 %vm188_vm3, %v338_v31  ;;  %473 = vmatpush.msrb.mxu1 %v2826_v49 }
 0x2c9   :  { %474 = vmatpush.msrb.mxu1 %v2827_v51 }
 0x2ca   :  { %2709 = vmatmul.msk.f32.vlgmr.msrb.gmra.mxu1 %vm188_vm3, %v431_v35 }
 0x2d2   :  { %2710 = vmatmul.msk.f32.gmra.mxu1 %vm188_vm3, %v446_v58 }
 0x2e4   :  { %v203_v59 = vpop.xlane.xlu0 %202 }
 0x2e5   :  { %2891 = vrcp.f32 %v203_v59  ;;  %v218_v63 = vand.u32 2147483648, %v203_v59  ;;  %v216_v7 = vand.u32 2147483647, %v203_v59  ;;  %vm212_vm9 = vweird.f32 %v203_v59 }
 0x2e7   :  { %v219_v9 = vor.u32 1.1754944e-38, %v218_v63  ;;  %vm217_vm11 = vcmp.eq.f32.partialorder %v216_v7, 8.507059e+37  ;;  %v1030_v7 = vstv %s2728_s9 }
 0x2eb   :  { %v2892_v60 = vpop.eup %2891 }
 0x2ec   :  { %v208_v61 = vmul.f32 %v2892_v60, %v203_v59  ;;  %vm213_vm8 = vweird.f32 %v2892_v60 }
 0x2ed   :  { %vm214_vm10 = vmor %vm212_vm9, %vm213_vm8 }
 0x2ee   :  { %v209_v54 = vsub.f32 1.0, %v208_v61 }
 0x2ef   :  { %v206_v37 = vpop.xlane.xlu1 %205 }
 0x2f0   :  { %v210_v1 = vmul.f32 %v2892_v60, %v209_v54  ;;  %2893 = vrcp.f32 %v206_v37  ;;  %v233_v18 = vand.u32 2147483648, %v206_v37  ;;  %v231_v21 = vand.u32 2147483647, %v206_v37 }
 0x2f1   :  { %vm227_vm13 = vweird.f32 %v206_v37 }
 0x2f2   :  { %v211_v2 = vadd.f32 %v2892_v60, %v210_v1  ;;  %v234_v24 = vor.u32 1.1754944e-38, %v233_v18  ;;  %vm232_vm15 = vcmp.eq.f32.partialorder %v231_v21, 8.507059e+37  ;;  %v710_v1 = vstv %s3503_s8  ;;  %s3104_s8 = smov [#allocation5]  }
 0x2f3   :  { %v1031_v18 = vmul.f32 %v1030_v7, %v3270_v22  ;;  %v1032_v21 = vmul.f32 %v1030_v7, %v3265_v20  ;;  %s2684_s9 = sshll.u32 %s3104_s8, 4  ;;  %s2685_s9 = int_to_ptr.vmem [resolvable:$true] %s2684_s9 }
 0x2f4   :  { %v215_v10 = vsel %vm214_vm10, %v2892_v60, %v211_v2 }
 0x2f5   :  { %v220_v3 = vsel %vm217_vm11, %v219_v9, %v215_v10  ;;  %v711_v10 = vmul.f32 %v710_v1, %v3270_v22 }
 0x2f6   :  { %v2894_v11 = vpop.eup %2893  ;;  %v221_v12 = vmul.f32 %v3351_v17, %v220_v3 }
 0x2f7   :  { %v223_v13 = vmul.f32 %v2894_v11, %v206_v37  ;;  %vm228_vm12 = vweird.f32 %v2894_v11  ;;  %v783_v37 = vstv %s2720_s7  ;;  %s4116_s7 = sld [smem:[#allocation12_spill]] }
 0x2f8   :  { %2703 = vmatmul.msk.f32.vlgmr.msra.gmra.mxu2 %vm188_vm3, %v221_v12  ;;  %vm229_vm14 = vmor %vm227_vm13, %vm228_vm12  ;;  %v785_v3 = vmul.f32 %v783_v37, %v3265_v20 }
 0x2f9   :  { %v224_v16 = vsub.f32 1.0, %v223_v13 }
 0x2fb   :  { %v225_v5 = vmul.f32 %v2894_v11, %v224_v16 }
 0x2fd   :  { %v226_v19 = vadd.f32 %v2894_v11, %v225_v5 }
 0x2ff   :  { %v230_v28 = vsel %vm229_vm14, %v2894_v11, %v226_v19 }
 0x300   :  { %v235_v62 = vsel %vm232_vm15, %v234_v24, %v230_v28 }
 0x301   :  { %v236_v27 = vmul.f32 %v3355_v6, %v235_v62 }
 0x303   :  { %2704 = vmatmul.msk.f32.gmra.mxu2 %vm188_vm3, %v236_v27 }
 0x337   :  { %v584_v30 = vpop.f32.mrf.mxu0 }
 0x33f   :  { %v587_v6 = vpop.f32.mrf.mxu0 }
 0x342   :  { %v368_v33 = vpop.f32.mrf.mxu3 }
 0x347   :  { %v476_v17 = vpop.f32.mrf.mxu1 }
 0x348   :  { %600 = vrot.lane.b32.xlu2 %v476_v17, %s3101_s24 }
 0x34a   :  { %v371_v34 = vpop.f32.mrf.mxu3 }
 0x34f   :  { %v479_v32 = vpop.f32.mrf.mxu1 }
 0x350   :  { %608 = vrot.lane.b32.xlu2 %v584_v30, %s3102_s2  ;;  %602 = vrot.lane.b32.xlu0 %v479_v32, %s3101_s24 }
 0x358   :  { %592 = vrot.lane.b32.xlu2 %v368_v33, %s3103_s25 }
 0x360   :  { %594 = vrot.lane.b32.xlu2 %v371_v34, %s3103_s25 }
 0x368   :  { %610 = vrot.lane.b32.xlu2 %v587_v6, %s3102_s2  ;;  %v712_v6 = vmul.f32 %v710_v1, %v3265_v20 }
 0x37b   :  { %v260_v41 = vpop.f32.mrf.mxu2 }
 0x386   :  { %v263_v50 = vpop.f32.mrf.mxu2 }
 0x3a2   :  { %v601_v39 = vpop.permute.xlu2 %600 }
 0x3aa   :  { %v609_v40 = vpop.permute.xlu2 %608 }
 0x3b2   :  { %v593_v23 = vpop.permute.xlu2 %592 }
 0x3b3   :  { %v615_v42 = vsel %vm614_vm0, %v260_v41, %v593_v23 }
 0x3b4   :  { %v617_v43 = vsel %vm188_vm3, %v615_v42, %v601_v39 }
 0x3b5   :  { %v620_v45 = vsel %vm619_vm2, %v617_v43, %v609_v40 }
 0x3b6   :  { %v626_v46 = vmul.f32 %v2854_v57, %v620_v45 }
 0x3b8   :  { %v632_v31 = vadd.f32 %v2855_v44, %v626_v46 }
 0x3ba   :  { %2714 = vmatmul.msk.f32.vlgmr.msrb.gmra.mxu2 %vm638_vm4, %v632_v31  ;;  %v595_v49 = vpop.permute.xlu2 %594 }
 0x3bb   :  { %v616_v26 = vsel %vm614_vm0, %v263_v50, %v595_v49 }
 0x3c2   :  { %v611_v0 = vpop.permute.xlu2 %610  ;;  %v603_v51 = vpop.permute.xlu0 %602 }
 0x3c3   :  { %v618_v35 = vsel %vm188_vm3, %v616_v26, %v603_v51 }
 0x3c4   :  { %v621_v53 = vsel %vm619_vm2, %v618_v35, %v611_v0 }
 0x3c5   :  { %v627_v52 = vmul.f32 %v2854_v57, %v621_v53 }
 0x3c7   :  { %v633_v55 = vadd.f32 %v2855_v44, %v627_v52 }
 0x3c9   :  { %2715 = vmatmul.msk.f32.gmra.mxu2 %vm638_vm4, %v633_v55 }
 0x43d   :  { %v3478_v56 = vpop.f32.mrf.mxu2 }
 0x43e   :  { %670 = vrot.lane.b32.xlu2 %v3478_v56, %s3094_s6  ;;  %1019 = vperm.xlu0 %2834, %v3478_v56  }
 0x446   :  { %772 = vperm.xlu2 %2833, %v3478_v56  }
 0x44c   :  { %v3484_v58 = vpop.f32.mrf.mxu2 }
 0x44d   :  { %1023 = vperm.xlu0 %2834, %v3484_v58   ;;  %672 = vrot.lane.b32.xlu1 %v3484_v58, %s3094_s6  ;;  %s3505_s6 = sld [smem:[#allocation2 + $0x6]] }
 0x44e   :  { %899 = vmatpush.msra.mxu1 %v3484_v58  ;;  %2835 = vset.pattern.permute.xlu2 %v3096_v8 }
 0x44f   :  { %699 = vperm.xlu2 %2835, %v3478_v56  }
 0x450   :  { %900 = vmatpush.msra.mxu1 %v3478_v56 }
 0x453   :  { %v920_v2 = vstv %s3505_s6 }
 0x454   :  { %v921_v5 = vmul.f32 %v920_v2, %v3270_v22  ;;  %v922_v29 = vmul.f32 %v920_v2, %v3265_v20 }
 0x455   :  { %776 = vperm.xlu1 %2837, %v3484_v58  }
 0x457   :  { %2836 = vset.pattern.permute.xlu2 %v3093_v4 }
 0x458   :  { %909 = vperm.xlu2 %2836, %v3478_v56  }
 0x45d   :  { %2838 = vset.pattern.permute.xlu1 %v3096_v8 }
 0x45e   :  { %703 = vperm.xlu1 %2838, %v3484_v58  }
 0x460   :  { %913 = vperm.xlu2 %2836, %v3484_v58  }
 0x498   :  { %v671_v60 = vpop.permute.xlu2 %670 }
 0x4a0   :  { %v773_v61 = vpop.permute.xlu2 %772 }
 0x4a9   :  { %v700_v54 = vpop.permute.xlu2 %699 }
 0x4b0   :  { %v1020_v4 = vpop.permute.xlu0 %1019 }
 0x4b2   :  { %v910_v8 = vpop.permute.xlu2 %909 }
 0x4bf   :  { %v673_v59 = vpop.permute.xlu1 %672  ;;  %v1024_v19 = vpop.permute.xlu0 %1023 }
 0x4c0   :  { %2716 = vmatpush.xpose.msk.msrb.mxu3 %vm96_vm1, %v673_v59 }
 0x4c4   :  { %2717 = vmatpush.xpose.msk.msrb.mxu3 %vm96_vm1, %v671_v60 }
 0x4c7   :  { %2718 = vmatmul.msk.f32.vlgmr.msrb.gmra.mxu3 %vm96_vm1, %v3254_v15  ;;  %v777_v63 = vpop.permute.xlu1 %776  ;;  %v784_v15 = vmul.f32 %v783_v37, %v3270_v22  ;;  %v914_v22 = vpop.permute.xlu2 %913 }
 0x4d0   :  { %v704_v39 = vpop.permute.xlu1 %703 }
 0x54a   :  { %v695_v9 = vpop.f32.mrf.mxu3 }
 0x54b   :  { %v706_v11 = vperm.slane %v695_v9, 0  ;;  %v779_v12 = vperm.slane %v695_v9, 1  ;;  %v916_v13 = vperm.slane %v695_v9, 2  ;;  %v1026_v16 = vperm.slane %v695_v9, 3 }
 0x54d   :  { %v707_v24 = vadd.f32 %v706_v11, %v700_v54  ;;  %v780_v28 = vadd.f32 %v779_v12, %v773_v61  ;;  %v781_v62 = vadd.f32 %v779_v12, %v777_v63  ;;  %v917_v27 = vadd.f32 %v916_v13, %v910_v8 }
 0x54e   :  { %v1027_v17 = vadd.f32 %v1026_v16, %v1020_v4  ;;  %v1028_v30 = vadd.f32 %v1026_v16, %v1024_v19  ;;  %v708_v57 = vadd.f32 %v706_v11, %v704_v39  ;;  %v918_v23 = vadd.f32 %v916_v13, %v914_v22 }
 0x54f   :  { %v786_v32 = vadd.f32 %v784_v15, %v780_v28  ;;  %v713_v33 = vadd.f32 %v711_v10, %v707_v24  ;;  %v787_v34 = vadd.f32 %v785_v3, %v781_v62  ;;  %v923_v36 = vadd.f32 %v921_v5, %v917_v27 }
 0x550   :  { %v1033_v25 = vadd.f32 %v1031_v18, %v1027_v17  ;;  %v1034_v38 = vadd.f32 %v1032_v21, %v1028_v30  ;;  %v714_v52 = vadd.f32 %v712_v6, %v708_v57  ;;  %v924_v60 = vadd.f32 %v922_v29, %v918_v23 }
 0x551   :  { %vm788_vm1 = vcmp.gt.f32.partialorder %v786_v32, 0.0  ;;  %v790_v40 = vmul.f32 0.2, %v786_v32  ;;  %vm715_vm5 = vcmp.gt.f32.partialorder %v713_v33, 0.0  ;;  %v717_v41 = vmul.f32 0.2, %v713_v33 }
 0x552   :  { %vm1035_vm6 = vcmp.gt.f32.partialorder %v1033_v25, 0.0  ;;  %v1037_v42 = vmul.f32 0.2, %v1033_v25  ;;  %vm789_vm7 = vcmp.gt.f32.partialorder %v787_v34, 0.0  ;;  %v791_v45 = vmul.f32 0.2, %v787_v34 }
 0x553   :  { %v792_v43 = vsel %vm788_vm1, %v786_v32, %v790_v40  ;;  %v719_v44 = vsel %vm715_vm5, %v713_v33, %v717_v41  ;;  %v927_v20 = vmul.f32 0.2, %v923_v36  ;;  %vm925_vm8 = vcmp.gt.f32.partialorder %v923_v36, 0.0 }
 0x554   :  { %v794_v46 = vadd.f32 %v792_v43, %v3296_v48  ;;  %v721_v31 = vadd.f32 %v719_v44, %v3296_v48  ;;  %v1039_v49 = vsel %vm1035_vm6, %v1033_v25, %v1037_v42  ;;  %vm1036_vm9 = vcmp.gt.f32.partialorder %v1034_v38, 0.0 }
 0x555   :  { %v1041_v50 = vadd.f32 %v1039_v49, %v3296_v48  ;;  %v1038_v51 = vmul.f32 0.2, %v1034_v38  ;;  %v793_v53 = vsel %vm789_vm7, %v787_v34, %v791_v45  ;;  %v929_v55 = vsel %vm925_vm8, %v923_v36, %v927_v20 }
 0x556   :  { %v796_v26 = vsel %vm188_vm3, %v794_v46, -inf  ;;  %v723_v0 = vsel %vm188_vm3, %v721_v31, -inf  ;;  %v795_v61 = vadd.f32 %v793_v53, %v3291_v47  ;;  %v931_v4 = vadd.f32 %v929_v55, %v3296_v48 }
 0x557   :  { %797 = vmax.xlane.f32.xlu0 %v796_v26  ;;  %724 = vmax.xlane.f32.xlu2 %v723_v0  ;;  %v1043_v35 = vsel %vm188_vm3, %v1041_v50, -inf  ;;  %v1040_v59 = vsel %vm1036_vm9, %v1034_v38, %v1038_v51  ;;  %v718_v8 = vmul.f32 0.2, %v714_v52  ;;  %vm716_vm10 = vcmp.gt.f32.partialorder %v714_v52, 0.0 }
 0x558   :  { %1044 = vmax.xlane.f32.xlu1 %v1043_v35  ;;  %v1042_v54 = vadd.f32 %v1040_v59, %v3291_v47  ;;  %v928_v63 = vmul.f32 0.2, %v924_v60  ;;  %vm926_vm11 = vcmp.gt.f32.partialorder %v924_v60, 0.0  ;;  %v799_v37 = vsel %vm188_vm3, %v795_v61, -inf }
 0x559   :  { %v933_v7 = vsel %vm188_vm3, %v931_v4, -inf  ;;  %v720_v2 = vsel %vm716_vm10, %v714_v52, %v718_v8  ;;  %v2839_v51 = vpack.i.bf16 %v3478_v56, %v3484_v58 }
 0x55a   :  { %v1046_v1 = vsel %vm188_vm3, %v1042_v54, -inf  ;;  %v930_v9 = vsel %vm926_vm11, %v924_v60, %v928_v63  ;;  %v722_v15 = vadd.f32 %v720_v2, %v3291_v47 }
 0x55b   :  { %v932_v10 = vadd.f32 %v930_v9, %v3291_v47 }
 0x55c   :  { %v726_v48 = vsel %vm188_vm3, %v722_v15, -inf }
 0x55d   :  { %v936_v3 = vsel %vm188_vm3, %v932_v10, -inf }
 0x55f   :  { %800 = vmax.xlane.f32.xlu0 %v799_v37  ;;  %1047 = vmax.xlane.f32.xlu2 %v1046_v1 }
 0x560   :  { %934 = vmax.xlane.f32.xlu1 %v933_v7 }
 0x567   :  { %727 = vmax.xlane.f32.xlu0 %v726_v48 }
 0x568   :  { %937 = vmax.xlane.f32.xlu1 %v936_v3 }
 0x5ca   :  { %v725_v11 = vpop.xlane.xlu2 %724  ;;  %v798_v12 = vpop.xlane.xlu0 %797 }
 0x5cb   :  { %v729_v13 = vsub.f32 %v721_v31, %v725_v11  ;;  %v1045_v16 = vpop.xlane.xlu1 %1044  ;;  %v802_v18 = vsub.f32 %v794_v46, %v798_v12 }
 0x5cc   :  { %v1049_v5 = vsub.f32 %v1041_v50, %v1045_v16 }
 0x5cd   :  { %v731_v21 = vmul.f32 1.442695, %v729_v13  ;;  %v804_v19 = vmul.f32 1.442695, %v802_v18 }
 0x5ce   :  { %v1051_v24 = vmul.f32 1.442695, %v1049_v5 }
 0x5cf   :  { %2895 = vpow2.f32 %v731_v21 }
 0x5d0   :  { %2897 = vpow2.f32 %v1051_v24 }
 0x5d1   :  { %2899 = vpow2.f32 %v804_v19 }
 0x5d2   :  { %v1048_v28 = vpop.xlane.xlu2 %1047  ;;  %v801_v47 = vpop.xlane.xlu0 %800 }
 0x5d3   :  { %v935_v62 = vpop.xlane.xlu1 %934  ;;  %v1050_v27 = vsub.f32 %v1042_v54, %v1048_v28  ;;  %v803_v17 = vsub.f32 %v795_v61, %v801_v47 }
 0x5d4   :  { %v939_v30 = vsub.f32 %v931_v4, %v935_v62 }
 0x5d5   :  { %v3533_v32 = vpop.eup %2895  ;;  %v1053_v33 = vmul.f32 1.442695, %v1050_v27  ;;  %v806_v34 = vmul.f32 1.442695, %v803_v17 }
 0x5d6   :  { %v3535_v6 = vpop.eup %2897  ;;  %v941_v25 = vmul.f32 1.442695, %v939_v30  ;;  %v735_v36 = vsel %vm188_vm3, %v3533_v32, 0.0 }
 0x5d7   :  { %v3539_v38 = vpop.eup %2899  ;;  %2901 = vpow2.f32 %v1053_v33  ;;  %736 = vadd.xlane.f32.xlu1 %v735_v36  ;;  %v1055_v29 = vsel %vm188_vm3, %v3535_v6, 0.0 }
 0x5d8   :  { %2903 = vpow2.f32 %v941_v25  ;;  %1056 = vadd.xlane.f32.xlu0 %v1055_v29  ;;  %v808_v22 = vsel %vm188_vm3, %v3539_v38, 0.0 }
 0x5d9   :  { %2905 = vpow2.f32 %v806_v34  ;;  %809 = vadd.xlane.f32.xlu2 %v808_v22 }
 0x5da   :  { %v728_v39 = vpop.xlane.xlu0 %727 }
 0x5db   :  { %v938_v40 = vpop.xlane.xlu1 %937  ;;  %v730_v41 = vsub.f32 %v722_v15, %v728_v39 }
 0x5dc   :  { %v940_v57 = vsub.f32 %v932_v10, %v938_v40 }
 0x5dd   :  { %v3545_v23 = vpop.eup %2901  ;;  %v733_v42 = vmul.f32 1.442695, %v730_v41 }
 0x5de   :  { %v3547_v43 = vpop.eup %2903  ;;  %v943_v44 = vmul.f32 1.442695, %v940_v57  ;;  %v1058_v45 = vsel %vm188_vm3, %v3545_v23, 0.0 }
 0x5df   :  { %v3551_v46 = vpop.eup %2905  ;;  %2907 = vpow2.f32 %v733_v42  ;;  %v945_v31 = vsel %vm188_vm3, %v3547_v43, 0.0  ;;  %1059 = vadd.xlane.f32.xlu1 %v1058_v45 }
 0x5e0   :  { %2909 = vpow2.f32 %v943_v44  ;;  %946 = vadd.xlane.f32.xlu0 %v945_v31  ;;  %v811_v49 = vsel %vm188_vm3, %v3551_v46, 0.0 }
 0x5e1   :  { %812 = vadd.xlane.f32.xlu2 %v811_v49 }
 0x5e5   :  { %v3557_v20 = vpop.eup %2907 }
 0x5e6   :  { %v3559_v50 = vpop.eup %2909  ;;  %v738_v26 = vsel %vm188_vm3, %v3557_v20, 0.0 }
 0x5e7   :  { %v948_v0 = vsel %vm188_vm3, %v3559_v50, 0.0 }
 0x5e8   :  { %949 = vadd.xlane.f32.xlu0 %v948_v0 }
 0x5e9   :  { %739 = vadd.xlane.f32.xlu2 %v738_v26 }
 0x5f8   :  { %2840 = vrot.lane.b32.xlu1 %v2839_v51, %s3098_s22  ;;  %s2686_s22 = sshll.u32 %s4082_s21, 4  ;;  %s2687_s22 = int_to_ptr.hbm [resolvable:$true] %s2686_s22 }
 0x5fc   :  { %2850 = vrot.lane.b32.xlu0 %v2839_v51, %s3100_s1 }
 0x601   :  { %2845 = vrot.lane.b32.xlu2 %v2839_v51, %s3099_s23 }
 0x64a   :  { %v737_v35 = vpop.xlane.xlu1 %736 }
 0x64b   :  { %2911 = vrcp.f32 %v737_v35  ;;  %v1057_v53 = vpop.xlane.xlu0 %1056  ;;  %v752_v7 = vand.u32 2147483648, %v737_v35  ;;  %vm746_vm13 = vweird.f32 %v737_v35  ;;  %v750_v9 = vand.u32 2147483647, %v737_v35 }
 0x64c   :  { %v3570_v52 = vpop.xlane.xlu2 %809  ;;  %2913 = vrcp.f32 %v1057_v53  ;;  %v1070_v5 = vand.u32 2147483647, %v1057_v53  ;;  %v1072_v17 = vand.u32 2147483648, %v1057_v53  ;;  %vm1066_vm4 = vweird.f32 %v1057_v53 }
 0x64d   :  { %2915 = vrcp.f32 %v3570_v52  ;;  %v753_v13 = vor.u32 1.1754944e-38, %v752_v7  ;;  %vm751_vm15 = vcmp.eq.f32.partialorder %v750_v9, 8.507059e+37  ;;  %v823_v62 = vand.u32 2147483647, %v3570_v52 }
 0x64e   :  { %v825_v27 = vand.u32 2147483648, %v3570_v52  ;;  %vm819_vm1 = vweird.f32 %v3570_v52  ;;  %vm1071_vm7 = vcmp.eq.f32.partialorder %v1070_v5, 8.507059e+37  ;;  %v1073_v57 = vor.u32 1.1754944e-38, %v1072_v17 }
 0x64f   :  { %vm3627_vm8 = vcmp.eq.f32.partialorder %v823_v62, 8.507059e+37 }
 0x650   :  { %v826_v41 = vor.u32 1.1754944e-38, %v825_v27 }
 0x651   :  { %v2912_v55 = vpop.eup %2911 }
 0x652   :  { %v3573_v59 = vpop.eup %2913  ;;  %v742_v60 = vmul.f32 %v2912_v55, %v737_v35  ;;  %v3575_v61 = vpop.xlane.xlu1 %1059  ;;  %vm747_vm12 = vweird.f32 %v2912_v55 }
 0x653   :  { %v3577_v56 = vpop.eup %2915  ;;  %v1062_v58 = vmul.f32 %v3573_v59, %v1057_v53  ;;  %2917 = vrcp.f32 %v3575_v61  ;;  %v3581_v54 = vpop.xlane.xlu0 %946  ;;  %vm748_vm14 = vmor %vm746_vm13, %vm747_vm12  ;;  %vm1067_vm2 = vweird.f32 %v3573_v59  ;;  %v1087_v33 = vand.u32 2147483648, %v3575_v61 }
 0x654   :  { %v743_v4 = vsub.f32 1.0, %v742_v60  ;;  %v815_v8 = vmul.f32 %v3577_v56, %v3570_v52  ;;  %v3585_v63 = vpop.xlane.xlu2 %812  ;;  %vm3617_vm5 = vmor %vm1066_vm4, %vm1067_vm2  ;;  %vm820_vm6 = vweird.f32 %v3577_v56  ;;  %vm1081_vm9 = vweird.f32 %v3575_v61 }
 0x655   :  { %v1063_v37 = vsub.f32 1.0, %v1062_v58  ;;  %2919 = vrcp.f32 %v3585_v63  ;;  %v1088_v44 = vor.u32 1.1754944e-38, %v1087_v33  ;;  %v840_v31 = vand.u32 2147483648, %v3585_v63  ;;  %vm3637_vm10 = vmor %vm819_vm1, %vm820_vm6 }
 0x656   :  { %v744_v1 = vmul.f32 %v2912_v55, %v743_v4  ;;  %2921 = vrcp.f32 %v3581_v54  ;;  %v816_v15 = vsub.f32 1.0, %v815_v8  ;;  %v1085_v53 = vand.u32 2147483647, %v3575_v61 }
 0x657   :  { %v1064_v48 = vmul.f32 %v3573_v59, %v1063_v37  ;;  %vm834_vm13 = vweird.f32 %v3585_v63 }
 0x658   :  { %v745_v2 = vadd.f32 %v2912_v55, %v744_v1  ;;  %v817_v18 = vmul.f32 %v3577_v56, %v816_v15  ;;  %vm3671_vm4 = vcmp.eq.f32.partialorder %v1085_v53, 8.507059e+37 }
 0x659   :  { %v3589_v10 = vpop.eup %2917  ;;  %v1065_v28 = vadd.f32 %v3573_v59, %v1064_v48  ;;  %v960_v48 = vand.u32 2147483647, %v3581_v54 }
 0x65a   :  { %v749_v3 = vsel %vm748_vm14, %v2912_v55, %v745_v2  ;;  %v1077_v11 = vmul.f32 %v3589_v10, %v3575_v61  ;;  %v818_v22 = vadd.f32 %v3577_v56, %v817_v18  ;;  %vm1082_vm12 = vweird.f32 %v3589_v10 }
 0x65b   :  { %v3594_v12 = vpop.eup %2919  ;;  %v3602_v19 = vpop.xlane.xlu0 %949  ;;  %v754_v24 = vsel %vm751_vm15, %v753_v13, %v749_v3  ;;  %v1069_v39 = vsel %vm3617_vm5, %v3573_v59, %v1065_v28  ;;  %vm956_vm15 = vweird.f32 %v3581_v54  ;;  %v962_v3 = vand.u32 2147483648, %v3581_v54  ;;  %vm3667_vm2 = vmor %vm1081_vm9, %vm1082_vm12 }
 0x65c   :  { %v3596_v16 = vpop.eup %2921  ;;  %v3600_v21 = vpop.xlane.xlu2 %739  ;;  %v1078_v30 = vsub.f32 1.0, %v1077_v11  ;;  %v830_v34 = vmul.f32 %v3594_v12, %v3585_v63  ;;  %v755_v29 = vmul.f32 %v3533_v32, %v754_v24  ;;  %v1074_v26 = vsel %vm1071_vm7, %v1073_v57, %v1069_v39 }
 0x65d   :  { %v952_v47 = vmul.f32 %v3596_v16, %v3581_v54  ;;  %2923 = vrcp.f32 %v3600_v21  ;;  %v822_v59 = vsel %vm3637_vm10, %v3577_v56, %v818_v22  ;;  %vm957_vm11 = vweird.f32 %v3596_v16 }
 0x65e   :  { %2925 = vrcp.f32 %v3602_v19  ;;  %v1079_v42 = vmul.f32 %v3589_v10, %v1078_v30  ;;  %2723 = vmatmul.msk.f32.vlgmr.msra.gmra.mxu1 %vm188_vm3, %v755_v29  ;;  %v831_v45 = vsub.f32 1.0, %v830_v34  ;;  %v767_v58 = vand.u32 2147483648, %v3600_v21  ;;  %vm3679_vm1 = vmor %vm956_vm15, %vm957_vm11 }
 0x65f   :  { %v953_v36 = vsub.f32 1.0, %v952_v47  ;;  %v1075_v56 = vmul.f32 %v3535_v6, %v1074_v26  ;;  %v765_v7 = vand.u32 2147483647, %v3600_v21  ;;  %v827_v13 = vsel %vm3627_vm8, %v826_v41, %v822_v59  ;;  %v1144_v26 = vld [vmem:[%s4073_s12] sm:$0xff] }
 0x660   :  { %v1080_v8 = vadd.f32 %v3589_v10, %v1079_v42  ;;  %v832_v37 = vmul.f32 %v3594_v12, %v831_v45  ;;  %vm761_vm5 = vweird.f32 %v3600_v21  ;;  %v768_v24 = vor.u32 1.1754944e-38, %v767_v58  ;;  %v3733_v45 = vld [vmem:[%s4076_s15] sm:$0xff] }
 0x661   :  { %v954_v0 = vmul.f32 %v3596_v16, %v953_v36  ;;  %vm835_vm7 = vweird.f32 %v3594_v12  ;;  %vm766_vm8 = vcmp.eq.f32.partialorder %v765_v7, 8.507059e+37  ;;  %v963_v17 = vor.u32 1.1754944e-38, %v962_v3  ;;  %v3754_v7 = vld [vmem:[%s4077_s16] ss:$0 sm:$0xff] }
 0x662   :  { %v1084_v5 = vsel %vm3667_vm2, %v3589_v10, %v1080_v8  ;;  %v833_v47 = vadd.f32 %v3594_v12, %v832_v37  ;;  %vm961_vm9 = vcmp.eq.f32.partialorder %v960_v48, 8.507059e+37  ;;  %v828_v36 = vmul.f32 %v3539_v38, %v827_v13  ;;  %vm3704_vm10 = vmor %vm834_vm13, %vm835_vm7 }
 0x663   :  { %v2924_v32 = vpop.eup %2923  ;;  %v955_v2 = vadd.f32 %v3596_v16, %v954_v0  ;;  %v1089_v33 = vsel %vm3671_vm4, %v1088_v44, %v1084_v5  ;;  %v838_v29 = vand.u32 2147483647, %v3585_v63  ;;  %v841_v41 = vor.u32 1.1754944e-38, %v840_v31 }
 0x664   :  { %v757_v51 = vmul.f32 %v2924_v32, %v3600_v21  ;;  %v2846_v35 = vpop.permute.xlu2 %2845  ;;  %v3644_v55 = vpop.eup %2925  ;;  %vm762_vm14 = vweird.f32 %v2924_v32  ;;  %v837_v38 = vsel %vm3704_vm10, %v3594_v12, %v833_v47  ;;  %v977_v57 = vand.u32 2147483648, %v3602_v19 }
 0x665   :  { %v2847_v52 = vunpack.i.l.bf16 %v2846_v35  ;;  %v967_v4 = vmul.f32 %v3644_v55, %v3602_v19  ;;  %v2848_v1 = vunpack.i.h.bf16 %v2846_v35  ;;  %vm763_vm6 = vmor %vm761_vm5, %vm762_vm14  ;;  %v959_v21 = vsel %vm3679_vm1, %v3596_v16, %v955_v2 }
 0x666   :  { %v758_v60 = vsub.f32 1.0, %v757_v51  ;;  %v964_v16 = vsel %vm961_vm9, %v963_v17, %v959_v21  ;;  %vm972_vm11 = vweird.f32 %v3644_v55  ;;  %vm971_vm12 = vweird.f32 %v3602_v19 }
 0x667   :  { %1117 = vmatpush.msra.mxu2 %v2847_v52  ;;  %v968_v15 = vsub.f32 1.0, %v967_v4  ;;  %vm839_vm13 = vcmp.eq.f32.partialorder %v838_v29, 8.507059e+37  ;;  %v975_v12 = vand.u32 2147483647, %v3602_v19  ;;  %vm973_vm14 = vmor %vm971_vm12, %vm972_vm11  ;;  %v1142_v29 = vld [vmem:[%s4116_s7] sm:$0xff] }
 0x668   :  { %v759_v9 = vmul.f32 %v2924_v32, %v758_v60  ;;  %v842_v63 = vsel %vm839_vm13, %v841_v41, %v837_v38 }
 0x669   :  { %1118 = vmatpush.msra.mxu2 %v2848_v1  ;;  %v969_v62 = vmul.f32 %v3644_v55, %v968_v15  ;;  %v843_v19 = vmul.f32 %v3551_v46, %v842_v63  ;;  %vm976_vm15 = vcmp.eq.f32.partialorder %v975_v12, 8.507059e+37 }
 0x66a   :  { %2729 = vmatmul.msk.f32.vlgmr.msra.gmra.mxu2 %vm188_vm3, %v1075_v56  ;;  %v2841_v61 = vpop.permute.xlu1 %2840  ;;  %v760_v18 = vadd.f32 %v2924_v32, %v759_v9 }
 0x66b   :  { %v2842_v28 = vunpack.i.l.bf16 %v2841_v61  ;;  %v2843_v30 = vunpack.i.h.bf16 %v2841_v61  ;;  %v970_v40 = vadd.f32 %v3644_v55, %v969_v62 }
 0x66c   :  { %v764_v27 = vsel %vm763_vm6, %v2924_v32, %v760_v18  ;;  %v3726_v32 = vld [vmem:[%s4076_s15 + $0x8] sm:$0xff] }
 0x66d   :  { %870 = vmatpush.msra.mxu3 %v2842_v28  ;;  %v769_v10 = vsel %vm766_vm8, %v768_v24, %v764_v27  ;;  %v974_v44 = vsel %vm973_vm14, %v3644_v55, %v970_v40  ;;  %v2859_v40 = vld [vmem:[%s4074_s13] ss:$0 sm:$0xff]  ;;  %vm1321_vm8 = vcmask 123904  }
 0x66e   :  { %v2851_v34 = vpop.permute.xlu0 %2850  ;;  %v770_v25 = vmul.f32 %v3557_v20, %v769_v10  ;;  %v1090_v20 = vmul.f32 %v3545_v23, %v1089_v33  ;;  %v965_v23 = vmul.f32 %v3547_v43, %v964_v16  ;;  %v978_v43 = vor.u32 1.1754944e-38, %v977_v57  ;;  %v1143_v16 = vld [vmem:[%s4116_s7 + $0x8] sm:$0xff] }
 0x66f   :  { %v2852_v22 = vunpack.i.l.bf16 %v2851_v34  ;;  %871 = vmatpush.msra.mxu3 %v2843_v30  ;;  %v2853_v42 = vunpack.i.h.bf16 %v2851_v34 }
 0x670   :  { %2724 = vmatmul.msk.f32.gmra.mxu1 %vm188_vm3, %v770_v25  ;;  %2721 = vmatmul.msk.f32.vlgmr.msra.gmra.mxu3 %vm188_vm3, %v828_v36  ;;  %v979_v31 = vsel %vm976_vm15, %v978_v43, %v974_v44 }
 0x671   :  { %1007 = vmatpush.msra.mxu0 %v2852_v22  ;;  %v980_v49 = vmul.f32 %v3559_v50, %v979_v31  ;;  %1166 = vmatpush.msrb.mxu3 %v1144_v26  ;;  %v2856_v50 = vld [vmem:[%s4071_s10] ss:$0 sm:$0xff] }
 0x672   :  { %2730 = vmatmul.msk.f32.gmra.mxu2 %vm188_vm3, %v1090_v20 }
 0x673   :  { %1008 = vmatpush.msra.mxu0 %v2853_v42  ;;  %v2860_v42 = vld [vmem:[%s4075_s14] ss:$0 sm:$0xff] }
 0x674   :  { %2726 = vmatmul.msk.f32.vlgmr.msra.gmra.mxu0 %vm188_vm3, %v965_v23 }
 0x675   :  { %1247 = vmatpush.msrb.mxu0 %v3726_v32 }
 0x677   :  { %1248 = vmatpush.msrb.mxu0 %v3733_v45 }
 0x678   :  { %2722 = vmatmul.msk.f32.gmra.mxu3 %vm188_vm3, %v843_v19 }
 0x67c   :  { %2727 = vmatmul.msk.f32.gmra.mxu0 %vm188_vm3, %v980_v49 }
 0x684   :  { %1249 = vmatmul.f32.vlgmr.msrb.gmra.mxu0 %v3097_v14  ;;  %v2857_v14 = vld [vmem:[%s4072_s11] ss:$0 sm:$0xff] }
 0x6db   :  { %v902_v51 = vpop.f32.mrf.mxu1 }
 0x6ed   :  { %v1120_v53 = vpop.f32.mrf.mxu2  ;;  %v905_v58 = vpop.f32.mrf.mxu1 }
 0x6f1   :  { %v1010_v0 = vpop.f32.mrf.mxu0 }
 0x6f3   :  { %v873_v46 = vpop.f32.mrf.mxu3 }
 0x6f4   :  { %v903_v35 = vadd.f32 %v902_v51, %v873_v46 }
 0x6f5   :  { %v1123_v2 = vpop.f32.mrf.mxu2 }
 0x6f6   :  { %v1016_v55 = vadd.f32 %v1010_v0, %v903_v35 }
 0x6f8   :  { %v1126_v59 = vadd.f32 %v1120_v53, %v1016_v55  ;;  %v3812_v53 = vld [vmem:[%s4117_s29] sm:$0x3] }
 0x6f9   :  { %v1013_v52 = vpop.f32.mrf.mxu0 }
 0x6fa   :  { %v1128_v60 = vmul.f32 0.25, %v1126_v59 }
 0x6fb   :  { %v876_v4 = vpop.f32.mrf.mxu3 }
 0x6fc   :  { %v1134_v8 = vmul.f32 %v2856_v50, %v1128_v60  ;;  %v906_v37 = vadd.f32 %v905_v58, %v876_v4 }
 0x6fe   :  { %v1140_v1 = vadd.f32 %v2857_v14, %v1134_v8  ;;  %v1017_v56 = vadd.f32 %v1013_v52, %v906_v37 }
 0x700   :  { %v1127_v9 = vadd.f32 %v1123_v2, %v1017_v56  ;;  %2731 = vmatmul.msk.f32.vlgmr.msrb.gmra.mxu3 %vm614_vm0, %v1140_v1 }
 0x701   :  { %v1250_v15 = vpop.f32.mrf.mxu0 }
 0x702   :  { %v1129_v48 = vmul.f32 0.25, %v1127_v9  ;;  %v1251_v3 = vadd.f32 %v3754_v7, %v1250_v15 }
 0x704   :  { %2927 = vtanh.f32 %v1251_v3  ;;  %v1135_v6 = vmul.f32 %v2856_v50, %v1129_v48  ;;  %v2735_v54 = vmul.f32 -1.442695, %v1251_v3 }
 0x706   :  { %v1141_v11 = vadd.f32 %v2857_v14, %v1135_v6  ;;  %2929 = vpow2.f32 %v2735_v54 }
 0x708   :  { %2732 = vmatmul.msk.f32.gmra.mxu3 %vm614_vm0, %v1141_v11 }
 0x70a   :  { %v2928_v13 = vpop.eup %2927 }
 0x70b   :  { %1275 = vrot.lane.b32.xlu1 %v2928_v13, %s3100_s1 }
 0x70c   :  { %v2930_v61 = vpop.eup %2929 }
 0x70d   :  { %v1256_v18 = vadd.f32 1.0, %v2930_v61 }
 0x70f   :  { %2931 = vrcp.f32 %v1256_v18  ;;  %v1268_v62 = vand.u32 2147483648, %v1256_v18  ;;  %vm1262_vm4 = vweird.f32 %v1256_v18  ;;  %v1266_v27 = vand.u32 2147483647, %v1256_v18 }
 0x711   :  { %v1269_v30 = vor.u32 1.1754944e-38, %v1268_v62  ;;  %vm1267_vm5 = vcmp.eq.f32.partialorder %v1266_v27, 8.507059e+37 }
 0x715   :  { %v2932_v5 = vpop.eup %2931 }
 0x716   :  { %v1258_v24 = vmul.f32 %v2932_v5, %v1256_v18  ;;  %vm1263_vm2 = vweird.f32 %v2932_v5 }
 0x717   :  { %vm1264_vm1 = vmor %vm1262_vm4, %vm1263_vm2 }
 0x718   :  { %v1259_v28 = vsub.f32 1.0, %v1258_v24 }
 0x71a   :  { %v1260_v47 = vmul.f32 %v2932_v5, %v1259_v28 }
 0x71c   :  { %v1261_v21 = vadd.f32 %v2932_v5, %v1260_v47 }
 0x71e   :  { %v1265_v17 = vsel %vm1264_vm1, %v2932_v5, %v1261_v21 }
 0x71f   :  { %v1270_v33 = vsel %vm1267_vm5, %v1269_v30, %v1265_v17 }
 0x720   :  { %v1273_v22 = vmul.f32 0.0, %v1270_v33 }
 0x77d   :  { %v1276_v10 = vpop.permute.xlu1 %1275 }
 0x77e   :  { %v1278_v34 = vmul.f32 %v1276_v10, %v1270_v33 }
 0x780   :  { %1280 = vrot.lane.b32.xlu0 %v1278_v34, %s3103_s25 }
 0x783   :  { %v1168_v25 = vpop.f32.mrf.mxu3 }
 0x78b   :  { %v1171_v36 = vpop.f32.mrf.mxu3 }
 0x78c   :  { %1194 = vmatpush.msrb.mxu1 %v1171_v36 }
 0x78e   :  { %1195 = vmatpush.msrb.mxu1 %v1168_v25 }
 0x78f   :  { %2733 = vmatmul.msk.f32.vlgmr.msrb.gmra.mxu1 %vm188_vm3, %v1142_v29 }
 0x797   :  { %2734 = vmatmul.msk.f32.gmra.mxu1 %vm188_vm3, %v1143_v16 }
 0x7f2   :  { %v1281_v39 = vpop.permute.xlu0 %1280 }
 0x7f3   :  { %v3769_v20 = vadd.f32 %v1281_v39, %v1273_v22 }
 0x7f5   :  { %2933 = vtanh.f32 %v3769_v20 }
 0x7fb   :  { %v2934_v38 = vpop.eup %2933 }
 0x7fc   :  { %1286 = vrot.lane.b32.xlu2 %v2934_v38, %s3101_s24 }
 0x80c   :  { %v1197_v41 = vpop.f32.mrf.mxu1 }
 0x80d   :  { %v1207_v57 = vmul.f32 %v2859_v40, %v1197_v41 }
 0x80f   :  { %v1213_v23 = vadd.f32 %v2860_v42, %v1207_v57 }
 0x811   :  { %v1215_v44 = vadd.f32 %v1213_v23, %v1140_v1 }
 0x813   :  { %v1219_v31 = vmul.f32 0.01, %v1215_v44  ;;  %vm1217_vm7 = vcmp.gt.f32.partialorder %v1215_v44, 0.0 }
 0x814   :  { %v1200_v12 = vpop.f32.mrf.mxu1 }
 0x815   :  { %v1208_v63 = vmul.f32 %v2859_v40, %v1200_v12  ;;  %v3784_v0 = vsel %vm1217_vm7, %v1215_v44, %v1219_v31 }
 0x817   :  { %v1214_v43 = vadd.f32 %v2860_v42, %v1208_v63 }
 0x819   :  { %v1216_v19 = vadd.f32 %v1214_v43, %v1141_v11 }
 0x81b   :  { %vm1218_vm6 = vcmp.gt.f32.partialorder %v1216_v19, 0.0  ;;  %v1220_v49 = vmul.f32 0.01, %v1216_v19 }
 0x81d   :  { %v3779_v26 = vsel %vm1218_vm6, %v1216_v19, %v1220_v49 }
 0x81e   :  { %2736 = vmatpush.xpose.msk.msrb.mxu2 %vm614_vm0, %v3779_v26  ;;  %1363 = vmatpush.msra.mxu0 %v3779_v26 }
 0x81f   :  { %2742 = vmatpush.xpose.msk.msra.mxu3 %vm614_vm0, %v3779_v26  ;;  %1501 = vmatpush.msra.mxu1 %v3779_v26 }
 0x820   :  { %1364 = vmatpush.msra.mxu0 %v3784_v0 }
 0x821   :  { %1502 = vmatpush.msra.mxu1 %v3784_v0 }
 0x822   :  { %1530 = vmatpush.msrb.mxu0 %v3726_v32  ;;  %2737 = vmatpush.xpose.msk.msrb.mxu2 %vm614_vm0, %v3784_v0 }
 0x823   :  { %1668 = vmatpush.msrb.mxu1 %v3726_v32  ;;  %2743 = vmatpush.xpose.msk.msra.mxu3 %vm614_vm0, %v3784_v0 }
 0x824   :  { %1531 = vmatpush.msrb.mxu0 %v3733_v45 }
 0x825   :  { %1669 = vmatpush.msrb.mxu1 %v3733_v45 }
 0x826   :  { %1392 = vmatpush.msra.mxu2 %v3726_v32 }
 0x827   :  { %1639 = vmatpush.msrb.mxu3 %v3779_v26 }
 0x828   :  { %1393 = vmatpush.msra.mxu2 %v3733_v45 }
 0x829   :  { %1640 = vmatpush.msrb.mxu3 %v3784_v0 }
 0x856   :  { %v1287_v51 = vpop.permute.xlu2 %1286 }
 0x857   :  { %v1289_v46 = vmul.f32 %v1287_v51, %v1270_v33 }
 0x859   :  { %1291 = vrot.lane.b32.xlu1 %v1289_v46, %s3099_s23 }
 0x8cb   :  { %v1292_v35 = vpop.permute.xlu1 %1291 }
 0x8cc   :  { %2738 = vmatmul.msk.f32.vlgmr.msrb.gmra.mxu2 %vm614_vm0, %v1292_v35 }
 0x8cd   :  { %2748 = vmatpush.xpose.msk.msrb.mxu2 %vm614_vm0, %v3779_v26 }
 0x8d1   :  { %2749 = vmatpush.xpose.msk.msrb.mxu2 %vm614_vm0, %v3784_v0 }
 0x94f   :  { %v1318_v55 = vpop.f32.mrf.mxu2 }
 0x950   :  { %v1319_v59 = vadd.f32 %v1318_v55, %v3812_v53 }
 0x952   :  { %v1322_v50 = vsel %vm1321_vm8, %v1319_v59, -inf }
 0x953   :  { %1323 = vmax.xlane.f32.xlu0 %v1322_v50 }
 0x9c6   :  { %v1324_v52 = vpop.xlane.xlu0 %1323 }
 0x9c7   :  { %v1325_v60 = vsub.f32 %v1319_v59, %v1324_v52 }
 0x9c9   :  { %v1326_v14 = vmul.f32 1.442695, %v1325_v60 }
 0x9cb   :  { %2935 = vpow2.f32 %v1326_v14 }
 0x9d1   :  { %v2936_v58 = vpop.eup %2935 }
 0x9d2   :  { %v1328_v4 = vsel %vm1321_vm8, %v2936_v58, 0.0 }
 0x9d3   :  { %1329 = vadd.xlane.f32.xlu2 %v1328_v4 }
 0xa46   :  { %v1330_v8 = vpop.xlane.xlu2 %1329 }
 0xa47   :  { %2937 = vrcp.f32 %v1330_v8  ;;  %v1342_v2 = vand.u32 2147483648, %v1330_v8  ;;  %v1340_v15 = vand.u32 2147483647, %v1330_v8  ;;  %vm1336_vm10 = vweird.f32 %v1330_v8 }
 0xa49   :  { %v1343_v3 = vor.u32 1.1754944e-38, %v1342_v2  ;;  %vm1341_vm12 = vcmp.eq.f32.partialorder %v1340_v15, 8.507059e+37 }
 0xa4d   :  { %v2938_v37 = vpop.eup %2937 }
 0xa4e   :  { %v1332_v1 = vmul.f32 %v2938_v37, %v1330_v8  ;;  %vm1337_vm9 = vweird.f32 %v2938_v37 }
 0xa4f   :  { %vm1338_vm11 = vmor %vm1336_vm10, %vm1337_vm9 }
 0xa50   :  { %v1333_v56 = vsub.f32 1.0, %v1332_v1 }
 0xa52   :  { %v1334_v9 = vmul.f32 %v2938_v37, %v1333_v56 }
 0xa54   :  { %v1335_v48 = vadd.f32 %v2938_v37, %v1334_v9 }
 0xa56   :  { %v1339_v6 = vsel %vm1338_vm11, %v2938_v37, %v1335_v48 }
 0xa57   :  { %v1344_v11 = vsel %vm1341_vm12, %v1343_v3, %v1339_v6 }
 0xa58   :  { %v1345_v13 = vmul.f32 %v2936_v58, %v1344_v11 }
 0xa5a   :  { %2739 = vmatmul.msk.f32.vlgmr.msra.gmra.mxu0 %vm188_vm3, %v1345_v13 }
 0xa5b   :  { %2754 = vmatpush.xpose.msk.msra.mxu0 %vm614_vm0, %v3779_v26 }
 0xa5f   :  { %2755 = vmatpush.xpose.msk.msra.mxu0 %vm614_vm0, %v3784_v0 }
 0xad7   :  { %v1366_v54 = vpop.f32.mrf.mxu0 }
 0xad8   :  { %1371 = vrot.lane.b32.xlu1 %v1366_v54, %s3103_s25 }
 0xb4a   :  { %v1372_v61 = vpop.permute.xlu1 %1371 }
 0xb4b   :  { %v1374_v18 = vsel %vm614_vm0, %v1292_v35, %v1372_v61 }
 0xb4c   :  { %2740 = vmatmul.msk.f32.vlgmr.msra.gmra.mxu2 %vm188_vm3, %v1374_v18 }
 0xb4d   :  { %1777 = vmatpush.msra.mxu2 %v3779_v26 }
 0xb4f   :  { %1778 = vmatpush.msra.mxu2 %v3784_v0 }
 0xbcf   :  { %v1395_v5 = vpop.f32.mrf.mxu2 }
 0xbd0   :  { %v1396_v24 = vadd.f32 %v3754_v7, %v1395_v5 }
 0xbd2   :  { %2939 = vtanh.f32 %v1396_v24  ;;  %v2741_v47 = vmul.f32 -1.442695, %v1396_v24 }
 0xbd4   :  { %2941 = vpow2.f32 %v2741_v47 }
 0xbd8   :  { %v2940_v28 = vpop.eup %2939 }
 0xbd9   :  { %1420 = vrot.lane.b32.xlu1 %v2940_v28, %s3100_s1 }
 0xbda   :  { %v2942_v21 = vpop.eup %2941 }
 0xbdb   :  { %v1401_v62 = vadd.f32 1.0, %v2942_v21 }
 0xbdd   :  { %2943 = vrcp.f32 %v1401_v62  ;;  %v1413_v34 = vand.u32 2147483648, %v1401_v62  ;;  %vm1407_vm14 = vweird.f32 %v1401_v62  ;;  %v1411_v25 = vand.u32 2147483647, %v1401_v62 }
 0xbdf   :  { %v1414_v29 = vor.u32 1.1754944e-38, %v1413_v34  ;;  %vm1412_vm2 = vcmp.eq.f32.partialorder %v1411_v25, 8.507059e+37 }
 0xbe3   :  { %v2944_v27 = vpop.eup %2943 }
 0xbe4   :  { %v1403_v17 = vmul.f32 %v2944_v27, %v1401_v62  ;;  %vm1408_vm13 = vweird.f32 %v2944_v27 }
 0xbe5   :  { %vm1409_vm15 = vmor %vm1407_vm14, %vm1408_vm13 }
 0xbe6   :  { %v1404_v30 = vsub.f32 1.0, %v1403_v17 }
 0xbe8   :  { %v1405_v10 = vmul.f32 %v2944_v27, %v1404_v30 }
 0xbea   :  { %v1406_v33 = vadd.f32 %v2944_v27, %v1405_v10 }
 0xbec   :  { %v1410_v36 = vsel %vm1409_vm15, %v2944_v27, %v1406_v33 }
 0xbed   :  { %v1415_v22 = vsel %vm1412_vm2, %v1414_v29, %v1410_v36 }
 0xbee   :  { %v1418_v38 = vmul.f32 %v1415_v22, %v3769_v20 }
 0xc4b   :  { %v1421_v16 = vpop.permute.xlu1 %1420 }
 0xc4c   :  { %v1423_v39 = vmul.f32 %v1421_v16, %v1415_v22 }
 0xc4e   :  { %1425 = vrot.lane.b32.xlu1 %v1423_v39, %s3103_s25 }
 0xcc0   :  { %v1426_v40 = vpop.permute.xlu1 %1425 }
 0xcc1   :  { %v3831_v41 = vadd.f32 %v1426_v40, %v1418_v38 }
 0xcc3   :  { %2945 = vtanh.f32 %v3831_v41 }
 0xcc9   :  { %v2946_v57 = vpop.eup %2945 }
 0xcca   :  { %1431 = vrot.lane.b32.xlu1 %v2946_v57, %s3101_s24 }
 0xd3c   :  { %v1432_v42 = vpop.permute.xlu1 %1431 }
 0xd3d   :  { %v1434_v23 = vmul.f32 %v1432_v42, %v1415_v22 }
 0xd3f   :  { %1436 = vrot.lane.b32.xlu1 %v1434_v23, %s3099_s23 }
 0xdb1   :  { %v1437_v12 = vpop.permute.xlu1 %1436 }
 0xdb2   :  { %2744 = vmatmul.msk.f32.vlgmr.msra.gmra.mxu3 %vm614_vm0, %v1437_v12 }
 0xdb3   :  { %1806 = vmatpush.msra.mxu3 %v3726_v32 }
 0xdb5   :  { %1807 = vmatpush.msra.mxu3 %v3733_v45 }
 0xe35   :  { %v1457_v20 = vpop.f32.mrf.mxu3 }
 0xe36   :  { %v1458_v63 = vadd.f32 %v1457_v20, %v3812_v53 }
 0xe38   :  { %v1460_v44 = vsel %vm1321_vm8, %v1458_v63, -inf }
 0xe39   :  { %1461 = vmax.xlane.f32.xlu2 %v1460_v44 }
 0xeac   :  { %v1462_v43 = vpop.xlane.xlu2 %1461 }
 0xead   :  { %v1463_v19 = vsub.f32 %v1458_v63, %v1462_v43 }
 0xeaf   :  { %v1464_v31 = vmul.f32 1.442695, %v1463_v19 }
 0xeb1   :  { %2947 = vpow2.f32 %v1464_v31 }
 0xeb7   :  { %v2948_v49 = vpop.eup %2947 }
 0xeb8   :  { %v1466_v51 = vsel %vm1321_vm8, %v2948_v49, 0.0 }
 0xeb9   :  { %1467 = vadd.xlane.f32.xlu0 %v1466_v51 }
 0xf2c   :  { %v1468_v46 = vpop.xlane.xlu0 %1467 }
 0xf2d   :  { %2949 = vrcp.f32 %v1468_v46  ;;  %v1480_v50 = vand.u32 2147483648, %v1468_v46  ;;  %v1478_v60 = vand.u32 2147483647, %v1468_v46  ;;  %vm1474_vm1 = vweird.f32 %v1468_v46 }
 0xf2f   :  { %v1481_v58 = vor.u32 1.1754944e-38, %v1480_v50  ;;  %vm1479_vm6 = vcmp.eq.f32.partialorder %v1478_v60, 8.507059e+37 }
 0xf33   :  { %v2950_v35 = vpop.eup %2949 }
 0xf34   :  { %v1470_v55 = vmul.f32 %v2950_v35, %v1468_v46  ;;  %vm1475_vm4 = vweird.f32 %v2950_v35 }
 0xf35   :  { %vm1476_vm5 = vmor %vm1474_vm1, %vm1475_vm4 }
 0xf36   :  { %v1471_v59 = vsub.f32 1.0, %v1470_v55 }
 0xf38   :  { %v1472_v52 = vmul.f32 %v2950_v35, %v1471_v59 }
 0xf3a   :  { %v1473_v14 = vadd.f32 %v2950_v35, %v1472_v52 }
 0xf3c   :  { %v1477_v4 = vsel %vm1476_vm5, %v2950_v35, %v1473_v14 }
 0xf3d   :  { %v1482_v8 = vsel %vm1479_vm6, %v1481_v58, %v1477_v4 }
 0xf3e   :  { %v1483_v37 = vmul.f32 %v2948_v49, %v1482_v8 }
 0xf40   :  { %2745 = vmatmul.msk.f32.vlgmr.msra.gmra.mxu1 %vm188_vm3, %v1483_v37 }
 0xf41   :  { %2760 = vmatpush.xpose.msk.msra.mxu1 %vm614_vm0, %v3779_v26 }
 0xf45   :  { %2761 = vmatpush.xpose.msk.msra.mxu1 %vm614_vm0, %v3784_v0 }
 0xfbd   :  { %v1504_v1 = vpop.f32.mrf.mxu1 }
 0xfbe   :  { %1509 = vrot.lane.b32.xlu1 %v1504_v1, %s3103_s25 }
0x1030   :  { %v1510_v56 = vpop.permute.xlu1 %1509 }
0x1031   :  { %v1512_v2 = vsel %vm614_vm0, %v1437_v12, %v1510_v56 }
0x1032   :  { %2746 = vmatmul.msk.f32.vlgmr.msrb.gmra.mxu0 %vm188_vm3, %v1512_v2 }
0x1033   :  { %1915 = vmatpush.msrb.mxu0 %v3779_v26 }
0x1035   :  { %1916 = vmatpush.msrb.mxu0 %v3784_v0 }
0x10af   :  { %v1533_v9 = vpop.f32.mrf.mxu0 }
0x10b0   :  { %v1534_v15 = vadd.f32 %v3754_v7, %v1533_v9 }
0x10b2   :  { %2951 = vtanh.f32 %v1534_v15  ;;  %v2747_v3 = vmul.f32 -1.442695, %v1534_v15 }
0x10b4   :  { %2953 = vpow2.f32 %v2747_v3 }
0x10b8   :  { %v2952_v48 = vpop.eup %2951 }
0x10b9   :  { %1558 = vrot.lane.b32.xlu2 %v2952_v48, %s3100_s1 }
0x10ba   :  { %v2954_v6 = vpop.eup %2953 }
0x10bb   :  { %v1539_v11 = vadd.f32 1.0, %v2954_v6 }
0x10bd   :  { %2955 = vrcp.f32 %v1539_v11  ;;  %v1551_v24 = vand.u32 2147483648, %v1539_v11  ;;  %vm1545_vm9 = vweird.f32 %v1539_v11  ;;  %v1549_v28 = vand.u32 2147483647, %v1539_v11 }
0x10bf   :  { %v1552_v21 = vor.u32 1.1754944e-38, %v1551_v24  ;;  %vm1550_vm11 = vcmp.eq.f32.partialorder %v1549_v28, 8.507059e+37 }
0x10c3   :  { %v2956_v13 = vpop.eup %2955 }
0x10c4   :  { %v1541_v54 = vmul.f32 %v2956_v13, %v1539_v11  ;;  %vm1546_vm7 = vweird.f32 %v2956_v13 }
0x10c5   :  { %vm1547_vm10 = vmor %vm1545_vm9, %vm1546_vm7 }
0x10c6   :  { %v1542_v61 = vsub.f32 1.0, %v1541_v54 }
0x10c8   :  { %v1543_v18 = vmul.f32 %v2956_v13, %v1542_v61 }
0x10ca   :  { %v1544_v5 = vadd.f32 %v2956_v13, %v1543_v18 }
0x10cc   :  { %v1548_v47 = vsel %vm1547_vm10, %v2956_v13, %v1544_v5 }
0x10cd   :  { %v1553_v27 = vsel %vm1550_vm11, %v1552_v21, %v1548_v47 }
0x10ce   :  { %v1556_v30 = vmul.f32 %v1553_v27, %v3831_v41 }
0x1113   :  { %v1559_v62 = vpop.permute.xlu2 %1558 }
0x1114   :  { %v1561_v17 = vmul.f32 %v1559_v62, %v1553_v27 }
0x1116   :  { %1563 = vrot.lane.b32.xlu0 %v1561_v17, %s3103_s25 }
0x1188   :  { %v1564_v10 = vpop.permute.xlu0 %1563 }
0x1189   :  { %v3856_v33 = vadd.f32 %v1564_v10, %v1556_v30 }
0x118b   :  { %2957 = vtanh.f32 %v3856_v33 }
0x1191   :  { %v2958_v34 = vpop.eup %2957 }
0x1192   :  { %1569 = vrot.lane.b32.xlu1 %v2958_v34, %s3101_s24 }
0x1204   :  { %v1570_v25 = vpop.permute.xlu1 %1569 }
0x1205   :  { %v1572_v36 = vmul.f32 %v1570_v25, %v1553_v27 }
0x1207   :  { %1574 = vrot.lane.b32.xlu1 %v1572_v36, %s3099_s23 }
0x1279   :  { %v1575_v29 = vpop.permute.xlu1 %1574 }
0x127a   :  { %2750 = vmatmul.msk.f32.vlgmr.msrb.gmra.mxu2 %vm614_vm0, %v1575_v29 }
0x127b   :  { %1944 = vmatpush.msrb.mxu2 %v3726_v32 }
0x127d   :  { %1945 = vmatpush.msrb.mxu2 %v3733_v45 }
0x12fd   :  { %v1595_v16 = vpop.f32.mrf.mxu2 }
0x12fe   :  { %v1596_v22 = vadd.f32 %v1595_v16, %v3812_v53 }
0x1300   :  { %v1598_v39 = vsel %vm1321_vm8, %v1596_v22, -inf }
0x1301   :  { %1599 = vmax.xlane.f32.xlu0 %v1598_v39 }
0x1374   :  { %v1600_v38 = vpop.xlane.xlu0 %1599 }
0x1375   :  { %v1601_v40 = vsub.f32 %v1596_v22, %v1600_v38 }
0x1377   :  { %v1602_v41 = vmul.f32 1.442695, %v1601_v40 }
0x1379   :  { %2959 = vpow2.f32 %v1602_v41 }
0x137f   :  { %v2960_v57 = vpop.eup %2959 }
0x1380   :  { %v1604_v42 = vsel %vm1321_vm8, %v2960_v57, 0.0 }
0x1381   :  { %1605 = vadd.xlane.f32.xlu1 %v1604_v42 }
0x13f4   :  { %v1606_v23 = vpop.xlane.xlu1 %1605 }
0x13f5   :  { %2961 = vrcp.f32 %v1606_v23  ;;  %v1618_v44 = vand.u32 2147483648, %v1606_v23  ;;  %v1616_v19 = vand.u32 2147483647, %v1606_v23  ;;  %vm1612_vm13 = vweird.f32 %v1606_v23 }
0x13f7   :  { %v1619_v49 = vor.u32 1.1754944e-38, %v1618_v44  ;;  %vm1617_vm15 = vcmp.eq.f32.partialorder %v1616_v19, 8.507059e+37 }
0x13fb   :  { %v2962_v12 = vpop.eup %2961 }
0x13fc   :  { %v1608_v20 = vmul.f32 %v2962_v12, %v1606_v23  ;;  %vm1613_vm12 = vweird.f32 %v2962_v12 }
0x13fd   :  { %vm1614_vm14 = vmor %vm1612_vm13, %vm1613_vm12 }
0x13fe   :  { %v1609_v63 = vsub.f32 1.0, %v1608_v20 }
0x1400   :  { %v1610_v43 = vmul.f32 %v2962_v12, %v1609_v63 }
0x1402   :  { %v1611_v31 = vadd.f32 %v2962_v12, %v1610_v43 }
0x1404   :  { %v1615_v51 = vsel %vm1614_vm14, %v2962_v12, %v1611_v31 }
0x1405   :  { %v1620_v46 = vsel %vm1617_vm15, %v1619_v49, %v1615_v51 }
0x1406   :  { %v1621_v35 = vmul.f32 %v2960_v57, %v1620_v46 }
0x1408   :  { %2751 = vmatmul.msk.f32.vlgmr.msrb.gmra.mxu3 %vm188_vm3, %v1621_v35 }
0x1409   :  { %2766 = vmatpush.xpose.msk.msrb.mxu3 %vm614_vm0, %v3779_v26 }
0x140d   :  { %2767 = vmatpush.xpose.msk.msrb.mxu3 %vm614_vm0, %v3784_v0 }
0x148b   :  { %v1642_v55 = vpop.f32.mrf.mxu3 }
0x148c   :  { %1647 = vrot.lane.b32.xlu2 %v1642_v55, %s3103_s25 }
0x14e6   :  { %v1648_v59 = vpop.permute.xlu2 %1647 }
0x14e7   :  { %v1650_v50 = vsel %vm614_vm0, %v1575_v29, %v1648_v59 }
0x14e8   :  { %2752 = vmatmul.msk.f32.vlgmr.msrb.gmra.mxu1 %vm188_vm3, %v1650_v50 }
0x14e9   :  { %2053 = vmatpush.msrb.mxu1 %v3779_v26 }
0x14eb   :  { %2054 = vmatpush.msrb.mxu1 %v3784_v0 }
0x1565   :  { %v1671_v52 = vpop.f32.mrf.mxu1 }
0x1566   :  { %v1672_v60 = vadd.f32 %v3754_v7, %v1671_v52 }
0x1568   :  { %2963 = vtanh.f32 %v1672_v60  ;;  %v2753_v58 = vmul.f32 -1.442695, %v1672_v60 }
0x156a   :  { %2965 = vpow2.f32 %v2753_v58 }
0x156e   :  { %v2964_v14 = vpop.eup %2963 }
0x156f   :  { %1696 = vrot.lane.b32.xlu2 %v2964_v14, %s3100_s1 }
0x1570   :  { %v2966_v4 = vpop.eup %2965 }
0x1571   :  { %v1677_v8 = vadd.f32 1.0, %v2966_v4 }
0x1573   :  { %2967 = vrcp.f32 %v1677_v8  ;;  %v1689_v15 = vand.u32 2147483648, %v1677_v8  ;;  %vm1683_vm4 = vweird.f32 %v1677_v8  ;;  %v1687_v48 = vand.u32 2147483647, %v1677_v8 }
0x1575   :  { %v1690_v6 = vor.u32 1.1754944e-38, %v1689_v15  ;;  %vm1688_vm5 = vcmp.eq.f32.partialorder %v1687_v48, 8.507059e+37 }
0x1579   :  { %v2968_v37 = vpop.eup %2967 }
0x157a   :  { %v1679_v1 = vmul.f32 %v2968_v37, %v1677_v8  ;;  %vm1684_vm2 = vweird.f32 %v2968_v37 }
0x157b   :  { %vm1685_vm1 = vmor %vm1683_vm4, %vm1684_vm2 }
0x157c   :  { %v1680_v56 = vsub.f32 1.0, %v1679_v1 }
0x157e   :  { %v1681_v2 = vmul.f32 %v2968_v37, %v1680_v56 }
0x1580   :  { %v1682_v9 = vadd.f32 %v2968_v37, %v1681_v2 }
0x1582   :  { %v1686_v3 = vsel %vm1685_vm1, %v2968_v37, %v1682_v9 }
0x1583   :  { %v1691_v13 = vsel %vm1688_vm5, %v1690_v6, %v1686_v3 }
0x1584   :  { %v1694_v61 = vmul.f32 %v1691_v13, %v3856_v33 }
0x15c9   :  { %v1697_v11 = vpop.permute.xlu2 %1696 }
0x15ca   :  { %v1699_v54 = vmul.f32 %v1697_v11, %v1691_v13 }
0x15cc   :  { %1701 = vrot.lane.b32.xlu2 %v1699_v54, %s3103_s25 }
0x1626   :  { %v1702_v18 = vpop.permute.xlu2 %1701 }
0x1627   :  { %v3881_v5 = vadd.f32 %v1702_v18, %v1694_v61 }
0x1629   :  { %2969 = vtanh.f32 %v3881_v5 }
0x162f   :  { %v2970_v24 = vpop.eup %2969 }
0x1630   :  { %1707 = vrot.lane.b32.xlu2 %v2970_v24, %s3101_s24 }
0x168a   :  { %v1708_v28 = vpop.permute.xlu2 %1707 }
0x168b   :  { %v1710_v47 = vmul.f32 %v1708_v28, %v1691_v13 }
0x168d   :  { %1712 = vrot.lane.b32.xlu2 %v1710_v47, %s3099_s23 }
0x16e7   :  { %v1713_v21 = vpop.permute.xlu2 %1712 }
0x16e8   :  { %2756 = vmatmul.msk.f32.vlgmr.msra.gmra.mxu0 %vm614_vm0, %v1713_v21 }
0x16e9   :  { %2082 = vmatpush.msra.mxu0 %v3726_v32 }
0x16eb   :  { %2083 = vmatpush.msra.mxu0 %v3733_v45 }
0x1765   :  { %v1733_v62 = vpop.f32.mrf.mxu0 }
0x1766   :  { %v1734_v27 = vadd.f32 %v1733_v62, %v3812_v53 }
0x1768   :  { %v1736_v17 = vsel %vm1321_vm8, %v1734_v27, -inf }
0x1769   :  { %1737 = vmax.xlane.f32.xlu0 %v1736_v17 }
0x17dc   :  { %v1738_v30 = vpop.xlane.xlu0 %1737 }
0x17dd   :  { %v1739_v10 = vsub.f32 %v1734_v27, %v1738_v30 }
0x17df   :  { %v1740_v33 = vmul.f32 1.442695, %v1739_v10 }
0x17e1   :  { %2971 = vpow2.f32 %v1740_v33 }
0x17e7   :  { %v2972_v34 = vpop.eup %2971 }
0x17e8   :  { %v1742_v25 = vsel %vm1321_vm8, %v2972_v34, 0.0 }
0x17e9   :  { %1743 = vadd.xlane.f32.xlu1 %v1742_v25 }
0x185c   :  { %v1744_v36 = vpop.xlane.xlu1 %1743 }
0x185d   :  { %2973 = vrcp.f32 %v1744_v36  ;;  %v1756_v39 = vand.u32 2147483648, %v1744_v36  ;;  %v1754_v40 = vand.u32 2147483647, %v1744_v36  ;;  %vm1750_vm7 = vweird.f32 %v1744_v36 }
0x185f   :  { %v1757_v57 = vor.u32 1.1754944e-38, %v1756_v39  ;;  %vm1755_vm10 = vcmp.eq.f32.partialorder %v1754_v40, 8.507059e+37 }
0x1863   :  { %v2974_v29 = vpop.eup %2973 }
0x1864   :  { %v1746_v16 = vmul.f32 %v2974_v29, %v1744_v36  ;;  %vm1751_vm6 = vweird.f32 %v2974_v29 }
0x1865   :  { %vm1752_vm9 = vmor %vm1750_vm7, %vm1751_vm6 }
0x1866   :  { %v1747_v22 = vsub.f32 1.0, %v1746_v16 }
0x1868   :  { %v1748_v38 = vmul.f32 %v2974_v29, %v1747_v22 }
0x186a   :  { %v1749_v41 = vadd.f32 %v2974_v29, %v1748_v38 }
0x186c   :  { %v1753_v42 = vsel %vm1752_vm9, %v2974_v29, %v1749_v41 }
0x186d   :  { %v1758_v23 = vsel %vm1755_vm10, %v1757_v57, %v1753_v42 }
0x186e   :  { %v1759_v12 = vmul.f32 %v2972_v34, %v1758_v23 }
0x1870   :  { %2757 = vmatmul.msk.f32.vlgmr.msra.gmra.mxu2 %vm188_vm3, %v1759_v12 }
0x1871   :  { %2772 = vmatpush.xpose.msk.msra.mxu2 %vm614_vm0, %v3779_v26 }
0x1875   :  { %2773 = vmatpush.xpose.msk.msra.mxu2 %vm614_vm0, %v3784_v0 }
0x18f3   :  { %v1780_v20 = vpop.f32.mrf.mxu2 }
0x18f4   :  { %1785 = vrot.lane.b32.xlu2 %v1780_v20, %s3103_s25 }
0x194e   :  { %v1786_v63 = vpop.permute.xlu2 %1785 }
0x194f   :  { %v1788_v44 = vsel %vm614_vm0, %v1713_v21, %v1786_v63 }
0x1950   :  { %2758 = vmatmul.msk.f32.vlgmr.msra.gmra.mxu3 %vm188_vm3, %v1788_v44 }
0x1951   :  { %2191 = vmatpush.msra.mxu3 %v3779_v26 }
0x1953   :  { %2192 = vmatpush.msra.mxu3 %v3784_v0 }
0x19d3   :  { %v1809_v43 = vpop.f32.mrf.mxu3 }
0x19d4   :  { %v1810_v19 = vadd.f32 %v3754_v7, %v1809_v43 }
0x19d6   :  { %2975 = vtanh.f32 %v1810_v19  ;;  %v2759_v49 = vmul.f32 -1.442695, %v1810_v19 }
0x19d8   :  { %2977 = vpow2.f32 %v2759_v49 }
0x19dc   :  { %v2976_v31 = vpop.eup %2975 }
0x19dd   :  { %1834 = vrot.lane.b32.xlu0 %v2976_v31, %s3100_s1 }
0x19de   :  { %v2978_v51 = vpop.eup %2977 }
0x19df   :  { %v1815_v46 = vadd.f32 1.0, %v2978_v51 }
0x19e1   :  { %2979 = vrcp.f32 %v1815_v46  ;;  %v1827_v60 = vand.u32 2147483648, %v1815_v46  ;;  %vm1821_vm12 = vweird.f32 %v1815_v46  ;;  %v1825_v14 = vand.u32 2147483647, %v1815_v46 }
0x19e3   :  { %v1828_v4 = vor.u32 1.1754944e-38, %v1827_v60  ;;  %vm1826_vm14 = vcmp.eq.f32.partialorder %v1825_v14, 8.507059e+37 }
0x19e7   :  { %v2980_v35 = vpop.eup %2979 }
0x19e8   :  { %v1817_v55 = vmul.f32 %v2980_v35, %v1815_v46  ;;  %vm1822_vm11 = vweird.f32 %v2980_v35 }
0x19e9   :  { %vm1823_vm13 = vmor %vm1821_vm12, %vm1822_vm11 }
0x19ea   :  { %v1818_v59 = vsub.f32 1.0, %v1817_v55 }
0x19ec   :  { %v1819_v50 = vmul.f32 %v2980_v35, %v1818_v59 }
0x19ee   :  { %v1820_v52 = vadd.f32 %v2980_v35, %v1819_v50 }
0x19f0   :  { %v1824_v58 = vsel %vm1823_vm13, %v2980_v35, %v1820_v52 }
0x19f1   :  { %v1829_v37 = vsel %vm1826_vm14, %v1828_v4, %v1824_v58  ;;  %v3940_v58 = vld [vmem:[%s4076_s15 + $0x8] sm:$0xff] }
0x19f2   :  { %v1832_v56 = vmul.f32 %v1829_v37, %v3881_v5 }
0x1a4f   :  { %v1835_v8 = vpop.permute.xlu0 %1834 }
0x1a50   :  { %v1837_v1 = vmul.f32 %v1835_v8, %v1829_v37 }
0x1a52   :  { %1839 = vrot.lane.b32.xlu1 %v1837_v1, %s3103_s25 }
0x1ac4   :  { %v1840_v2 = vpop.permute.xlu1 %1839 }
0x1ac5   :  { %v3906_v9 = vadd.f32 %v1840_v2, %v1832_v56 }
0x1ac7   :  { %2981 = vtanh.f32 %v3906_v9 }
0x1acd   :  { %v2982_v15 = vpop.eup %2981 }
0x1ace   :  { %1845 = vrot.lane.b32.xlu2 %v2982_v15, %s3101_s24 }
0x1b28   :  { %v1846_v48 = vpop.permute.xlu2 %1845 }
0x1b29   :  { %v1848_v3 = vmul.f32 %v1846_v48, %v1829_v37 }
0x1b2b   :  { %1850 = vrot.lane.b32.xlu2 %v1848_v3, %s3099_s23 }
0x1b85   :  { %v1851_v6 = vpop.permute.xlu2 %1850 }
0x1b86   :  { %2762 = vmatmul.msk.f32.vlgmr.msra.gmra.mxu1 %vm614_vm0, %v1851_v6 }
0x1b87   :  { %2220 = vmatpush.msra.mxu1 %v3726_v32 }
0x1b89   :  { %2221 = vmatpush.msra.mxu1 %v3733_v45 }
0x1c03   :  { %v1871_v11 = vpop.f32.mrf.mxu1 }
0x1c04   :  { %v1872_v13 = vadd.f32 %v1871_v11, %v3812_v53 }
0x1c06   :  { %v1874_v54 = vsel %vm1321_vm8, %v1872_v13, -inf }
0x1c07   :  { %1875 = vmax.xlane.f32.xlu2 %v1874_v54 }
0x1c7a   :  { %v1876_v61 = vpop.xlane.xlu2 %1875 }
0x1c7b   :  { %v1877_v18 = vsub.f32 %v1872_v13, %v1876_v61 }
0x1c7d   :  { %v1878_v5 = vmul.f32 1.442695, %v1877_v18 }
0x1c7f   :  { %2983 = vpow2.f32 %v1878_v5 }
0x1c85   :  { %v2984_v24 = vpop.eup %2983 }
0x1c86   :  { %v1880_v28 = vsel %vm1321_vm8, %v2984_v24, 0.0 }
0x1c87   :  { %1881 = vadd.xlane.f32.xlu0 %v1880_v28 }
0x1cfa   :  { %v1882_v47 = vpop.xlane.xlu0 %1881 }
0x1cfb   :  { %2985 = vrcp.f32 %v1882_v47  ;;  %v1894_v27 = vand.u32 2147483648, %v1882_v47  ;;  %v1892_v30 = vand.u32 2147483647, %v1882_v47  ;;  %vm1888_vm2 = vweird.f32 %v1882_v47 }
0x1cfd   :  { %v1895_v33 = vor.u32 1.1754944e-38, %v1894_v27  ;;  %vm1893_vm1 = vcmp.eq.f32.partialorder %v1892_v30, 8.507059e+37  ;;  %v3960_v27 = vld [vmem:[%s4077_s16] ss:$0 sm:$0xff] }
0x1d01   :  { %v2986_v21 = vpop.eup %2985 }
0x1d02   :  { %v1884_v32 = vmul.f32 %v2986_v21, %v1882_v47  ;;  %vm1889_vm15 = vweird.f32 %v2986_v21 }
0x1d03   :  { %vm1890_vm4 = vmor %vm1888_vm2, %vm1889_vm15 }
0x1d04   :  { %v1885_v62 = vsub.f32 1.0, %v1884_v32 }
0x1d06   :  { %v1886_v17 = vmul.f32 %v2986_v21, %v1885_v62 }
0x1d08   :  { %v1887_v10 = vadd.f32 %v2986_v21, %v1886_v17 }
0x1d0a   :  { %v1891_v34 = vsel %vm1890_vm4, %v2986_v21, %v1887_v10 }
0x1d0b   :  { %v1896_v25 = vsel %vm1893_vm1, %v1895_v33, %v1891_v34 }
0x1d0c   :  { %v1897_v36 = vmul.f32 %v2984_v24, %v1896_v25 }
0x1d0e   :  { %2763 = vmatmul.msk.f32.vlgmr.msrb.gmra.mxu0 %vm188_vm3, %v1897_v36 }
0x1d0f   :  { %2778 = vmatpush.xpose.msk.msrb.mxu0 %vm614_vm0, %v3779_v26 }
0x1d13   :  { %2779 = vmatpush.xpose.msk.msrb.mxu0 %vm614_vm0, %v3784_v0 }
0x1d8b   :  { %v1918_v29 = vpop.f32.mrf.mxu0 }
0x1d8c   :  { %1923 = vrot.lane.b32.xlu1 %v1918_v29, %s3103_s25 }
0x1dfe   :  { %v1924_v16 = vpop.permute.xlu1 %1923 }
0x1dff   :  { %v1926_v22 = vsel %vm614_vm0, %v1851_v6, %v1924_v16 }
0x1e00   :  { %2764 = vmatmul.msk.f32.vlgmr.msrb.gmra.mxu2 %vm188_vm3, %v1926_v22 }
0x1e01   :  { %2329 = vmatpush.msrb.mxu2 %v3779_v26 }
0x1e03   :  { %2330 = vmatpush.msrb.mxu2 %v3784_v0 }
0x1e83   :  { %v1947_v39 = vpop.f32.mrf.mxu2 }
0x1e84   :  { %v1948_v38 = vadd.f32 %v3754_v7, %v1947_v39 }
0x1e86   :  { %2987 = vtanh.f32 %v1948_v38  ;;  %v2765_v41 = vmul.f32 -1.442695, %v1948_v38 }
0x1e88   :  { %2989 = vpow2.f32 %v2765_v41 }
0x1e8c   :  { %v2988_v40 = vpop.eup %2987 }
0x1e8d   :  { %1972 = vrot.lane.b32.xlu1 %v2988_v40, %s3100_s1 }
0x1e8e   :  { %v2990_v57 = vpop.eup %2989 }
0x1e8f   :  { %v1953_v42 = vadd.f32 1.0, %v2990_v57 }
0x1e91   :  { %2991 = vrcp.f32 %v1953_v42  ;;  %v1965_v43 = vand.u32 2147483648, %v1953_v42  ;;  %vm1959_vm6 = vweird.f32 %v1953_v42  ;;  %v1963_v19 = vand.u32 2147483647, %v1953_v42 }
0x1e93   :  { %v1966_v31 = vor.u32 1.1754944e-38, %v1965_v43  ;;  %vm1964_vm9 = vcmp.eq.f32.partialorder %v1963_v19, 8.507059e+37 }
0x1e97   :  { %v2992_v23 = vpop.eup %2991 }
0x1e98   :  { %v1955_v12 = vmul.f32 %v2992_v23, %v1953_v42  ;;  %vm1960_vm5 = vweird.f32 %v2992_v23 }
0x1e99   :  { %vm1961_vm7 = vmor %vm1959_vm6, %vm1960_vm5 }
0x1e9a   :  { %v1956_v20 = vsub.f32 1.0, %v1955_v12 }
0x1e9c   :  { %v1957_v63 = vmul.f32 %v2992_v23, %v1956_v20 }
0x1e9e   :  { %v1958_v44 = vadd.f32 %v2992_v23, %v1957_v63 }
0x1ea0   :  { %v1962_v7 = vsel %vm1961_vm7, %v2992_v23, %v1958_v44 }
0x1ea1   :  { %v1967_v51 = vsel %vm1964_vm9, %v1966_v31, %v1962_v7  ;;  %v3049_v31 = vld [vmem:[%s4076_s15] sm:$0xff] }
0x1ea2   :  { %v1970_v35 = vmul.f32 %v1967_v51, %v3906_v9 }
0x1eff   :  { %v1973_v49 = vpop.permute.xlu1 %1972 }
0x1f00   :  { %v1975_v46 = vmul.f32 %v1973_v49, %v1967_v51 }
0x1f02   :  { %1977 = vrot.lane.b32.xlu1 %v1975_v46, %s3103_s25 }
0x1f74   :  { %v1978_v55 = vpop.permute.xlu1 %1977 }
0x1f75   :  { %v3931_v59 = vadd.f32 %v1978_v55, %v1970_v35 }
0x1f77   :  { %2993 = vtanh.f32 %v3931_v59 }
0x1f7d   :  { %v2994_v50 = vpop.eup %2993 }
0x1f7e   :  { %1983 = vrot.lane.b32.xlu1 %v2994_v50, %s3101_s24 }
0x1ff0   :  { %v1984_v52 = vpop.permute.xlu1 %1983 }
0x1ff1   :  { %v1986_v60 = vmul.f32 %v1984_v52, %v1967_v51 }
0x1ff3   :  { %1988 = vrot.lane.b32.xlu1 %v1986_v60, %s3099_s23 }
0x2065   :  { %v1989_v14 = vpop.permute.xlu1 %1988 }
0x2066   :  { %2768 = vmatmul.msk.f32.vlgmr.msrb.gmra.mxu3 %vm614_vm0, %v1989_v14 }
0x2067   :  { %2358 = vmatpush.msrb.mxu3 %v3940_v58 }
0x2069   :  { %2359 = vmatpush.msrb.mxu3 %v3733_v45 }
0x20e9   :  { %v2009_v4 = vpop.f32.mrf.mxu3 }
0x20ea   :  { %v2010_v8 = vadd.f32 %v2009_v4, %v3812_v53 }
0x20ec   :  { %v2012_v37 = vsel %vm1321_vm8, %v2010_v8, -inf }
0x20ed   :  { %2013 = vmax.xlane.f32.xlu2 %v2012_v37 }
0x2160   :  { %v2014_v1 = vpop.xlane.xlu2 %2013 }
0x2161   :  { %v2015_v56 = vsub.f32 %v2010_v8, %v2014_v1 }
0x2163   :  { %v2016_v2 = vmul.f32 1.442695, %v2015_v56 }
0x2165   :  { %2995 = vpow2.f32 %v2016_v2 }
0x216b   :  { %v2996_v9 = vpop.eup %2995 }
0x216c   :  { %v2018_v15 = vsel %vm1321_vm8, %v2996_v9, 0.0 }
0x216d   :  { %2019 = vadd.xlane.f32.xlu0 %v2018_v15 }
0x21e0   :  { %v2020_v48 = vpop.xlane.xlu0 %2019 }
0x21e1   :  { %2997 = vrcp.f32 %v2020_v48  ;;  %v2032_v45 = vand.u32 2147483648, %v2020_v48  ;;  %v2030_v54 = vand.u32 2147483647, %v2020_v48  ;;  %vm2026_vm11 = vweird.f32 %v2020_v48 }
0x21e3   :  { %v2033_v18 = vor.u32 1.1754944e-38, %v2032_v45  ;;  %vm2031_vm13 = vcmp.eq.f32.partialorder %v2030_v54, 8.507059e+37 }
0x21e7   :  { %v2998_v3 = vpop.eup %2997 }
0x21e8   :  { %v2022_v6 = vmul.f32 %v2998_v3, %v2020_v48  ;;  %vm2027_vm10 = vweird.f32 %v2998_v3 }
0x21e9   :  { %vm2028_vm12 = vmor %vm2026_vm11, %vm2027_vm10 }
0x21ea   :  { %v2023_v11 = vsub.f32 1.0, %v2022_v6 }
0x21ec   :  { %v2024_v13 = vmul.f32 %v2998_v3, %v2023_v11 }
0x21ee   :  { %v2025_v61 = vadd.f32 %v2998_v3, %v2024_v13 }
0x21f0   :  { %v2029_v5 = vsel %vm2028_vm12, %v2998_v3, %v2025_v61 }
0x21f1   :  { %v2034_v24 = vsel %vm2031_vm13, %v2033_v18, %v2029_v5 }
0x21f2   :  { %v2035_v28 = vmul.f32 %v2996_v9, %v2034_v24 }
0x21f4   :  { %2769 = vmatmul.msk.f32.vlgmr.msrb.gmra.mxu1 %vm188_vm3, %v2035_v28 }
0x21f5   :  { %2784 = vmatpush.xpose.msk.msrb.mxu1 %vm614_vm0, %v3779_v26 }
0x21f9   :  { %2785 = vmatpush.xpose.msk.msrb.mxu1 %vm614_vm0, %v3784_v0 }
0x2271   :  { %v2056_v47 = vpop.f32.mrf.mxu1 }
0x2272   :  { %2061 = vrot.lane.b32.xlu1 %v2056_v47, %s3103_s25 }
0x22e4   :  { %v2062_v21 = vpop.permute.xlu1 %2061 }
0x22e5   :  { %v2064_v32 = vsel %vm614_vm0, %v1989_v14, %v2062_v21 }
0x22e6   :  { %2770 = vmatmul.msk.f32.vlgmr.msra.gmra.mxu0 %vm188_vm3, %v2064_v32 }
0x22e7   :  { %2467 = vmatpush.msra.mxu0 %v3779_v26 }
0x22e9   :  { %2468 = vmatpush.msra.mxu0 %v3784_v0 }
0x2363   :  { %v2085_v62 = vpop.f32.mrf.mxu0 }
0x2364   :  { %v2086_v17 = vadd.f32 %v3960_v27, %v2085_v62 }
0x2366   :  { %2999 = vtanh.f32 %v2086_v17  ;;  %v2771_v10 = vmul.f32 -1.442695, %v2086_v17 }
0x2368   :  { %3001 = vpow2.f32 %v2771_v10 }
0x236c   :  { %v3000_v30 = vpop.eup %2999 }
0x236d   :  { %2110 = vrot.lane.b32.xlu2 %v3000_v30, %s3100_s1 }
0x236e   :  { %v3002_v33 = vpop.eup %3001 }
0x236f   :  { %v2091_v34 = vadd.f32 1.0, %v3002_v33 }
0x2371   :  { %3003 = vrcp.f32 %v2091_v34  ;;  %v2103_v39 = vand.u32 2147483648, %v2091_v34  ;;  %vm2097_vm15 = vweird.f32 %v2091_v34  ;;  %v2101_v38 = vand.u32 2147483647, %v2091_v34 }
0x2373   :  { %v2104_v41 = vor.u32 1.1754944e-38, %v2103_v39  ;;  %vm2102_vm4 = vcmp.eq.f32.partialorder %v2101_v38, 8.507059e+37  ;;  %v4002_v38 = vld [vmem:[%s4117_s29] sm:$0x3] }
0x2377   :  { %v3004_v25 = vpop.eup %3003 }
0x2378   :  { %v2093_v36 = vmul.f32 %v3004_v25, %v2091_v34  ;;  %vm2098_vm14 = vweird.f32 %v3004_v25 }
0x2379   :  { %vm2099_vm2 = vmor %vm2097_vm15, %vm2098_vm14 }
0x237a   :  { %v2094_v29 = vsub.f32 1.0, %v2093_v36 }
0x237c   :  { %v2095_v16 = vmul.f32 %v3004_v25, %v2094_v29 }
0x237e   :  { %v2096_v22 = vadd.f32 %v3004_v25, %v2095_v16 }
0x2380   :  { %v2100_v40 = vsel %vm2099_vm2, %v3004_v25, %v2096_v22 }
0x2381   :  { %v2105_v42 = vsel %vm2102_vm4, %v2104_v41, %v2100_v40 }
0x2382   :  { %v2108_v12 = vmul.f32 %v2105_v42, %v3931_v59 }
0x23c7   :  { %v2111_v57 = vpop.permute.xlu2 %2110 }
0x23c8   :  { %v2113_v23 = vmul.f32 %v2111_v57, %v2105_v42 }
0x23ca   :  { %2115 = vrot.lane.b32.xlu0 %v2113_v23, %s3103_s25 }
0x243c   :  { %v2116_v20 = vpop.permute.xlu0 %2115 }
0x243d   :  { %v3966_v63 = vadd.f32 %v2116_v20, %v2108_v12 }
0x243f   :  { %3005 = vtanh.f32 %v3966_v63 }
0x2445   :  { %v3006_v44 = vpop.eup %3005 }
0x2446   :  { %2121 = vrot.lane.b32.xlu1 %v3006_v44, %s3101_s24 }
0x24b8   :  { %v2122_v43 = vpop.permute.xlu1 %2121 }
0x24b9   :  { %v2124_v19 = vmul.f32 %v2122_v43, %v2105_v42 }
0x24bb   :  { %2126 = vrot.lane.b32.xlu1 %v2124_v19, %s3099_s23 }
0x252d   :  { %v2127_v7 = vpop.permute.xlu1 %2126 }
0x252e   :  { %2774 = vmatmul.msk.f32.vlgmr.msra.gmra.mxu2 %vm614_vm0, %v2127_v7 }
0x252f   :  { %2496 = vmatpush.msra.mxu2 %v3940_v58 }
0x2531   :  { %2497 = vmatpush.msra.mxu2 %v3049_v31 }
0x25b1   :  { %v2147_v49 = vpop.f32.mrf.mxu2 }
0x25b2   :  { %v2148_v51 = vadd.f32 %v2147_v49, %v3812_v53 }
0x25b4   :  { %v2150_v46 = vsel %vm1321_vm8, %v2148_v51, -inf }
0x25b5   :  { %2151 = vmax.xlane.f32.xlu0 %v2150_v46 }
0x2628   :  { %v2152_v35 = vpop.xlane.xlu0 %2151 }
0x2629   :  { %v2153_v55 = vsub.f32 %v2148_v51, %v2152_v35 }
0x262b   :  { %v2154_v59 = vmul.f32 1.442695, %v2153_v55 }
0x262d   :  { %3007 = vpow2.f32 %v2154_v59 }
0x2633   :  { %v3008_v50 = vpop.eup %3007 }
0x2634   :  { %v2156_v52 = vsel %vm1321_vm8, %v3008_v50, 0.0 }
0x2635   :  { %2157 = vadd.xlane.f32.xlu1 %v2156_v52 }
0x26a8   :  { %v2158_v60 = vpop.xlane.xlu1 %2157 }
0x26a9   :  { %3009 = vrcp.f32 %v2158_v60  ;;  %v2170_v8 = vand.u32 2147483648, %v2158_v60  ;;  %v2168_v53 = vand.u32 2147483647, %v2158_v60  ;;  %vm2164_vm5 = vweird.f32 %v2158_v60 }
0x26ab   :  { %v2171_v56 = vor.u32 1.1754944e-38, %v2170_v8  ;;  %vm2169_vm7 = vcmp.eq.f32.partialorder %v2168_v53, 8.507059e+37 }
0x26af   :  { %v3010_v14 = vpop.eup %3009 }
0x26b0   :  { %v2160_v58 = vmul.f32 %v3010_v14, %v2158_v60  ;;  %vm2165_vm1 = vweird.f32 %v3010_v14 }
0x26b1   :  { %vm2166_vm6 = vmor %vm2164_vm5, %vm2165_vm1 }
0x26b2   :  { %v2161_v4 = vsub.f32 1.0, %v2160_v58 }
0x26b4   :  { %v2162_v37 = vmul.f32 %v3010_v14, %v2161_v4 }
0x26b6   :  { %v2163_v1 = vadd.f32 %v3010_v14, %v2162_v37 }
0x26b8   :  { %v2167_v2 = vsel %vm2166_vm6, %v3010_v14, %v2163_v1 }
0x26b9   :  { %v2172_v9 = vsel %vm2169_vm7, %v2171_v56, %v2167_v2 }
0x26ba   :  { %v2173_v15 = vmul.f32 %v3008_v50, %v2172_v9 }
0x26bc   :  { %2775 = vmatmul.msk.f32.vlgmr.msra.gmra.mxu3 %vm188_vm3, %v2173_v15 }
0x26bd   :  { %2790 = vmatpush.xpose.msk.msra.mxu3 %vm614_vm0, %v3779_v26 }
0x26c1   :  { %2791 = vmatpush.xpose.msk.msra.mxu3 %vm614_vm0, %v3784_v0 }
0x273f   :  { %v2194_v48 = vpop.f32.mrf.mxu3 }
0x2740   :  { %2199 = vrot.lane.b32.xlu2 %v2194_v48, %s3103_s25 }
0x279a   :  { %v2200_v3 = vpop.permute.xlu2 %2199 }
0x279b   :  { %v2202_v6 = vsel %vm614_vm0, %v2127_v7, %v2200_v3 }
0x279c   :  { %2776 = vmatmul.msk.f32.vlgmr.msra.gmra.mxu1 %vm188_vm3, %v2202_v6 }
0x279d   :  { %2605 = vmatpush.msra.mxu1 %v3779_v26 }
0x279f   :  { %2606 = vmatpush.msra.mxu1 %v3784_v0 }
0x2819   :  { %v2223_v11 = vpop.f32.mrf.mxu1 }
0x281a   :  { %v2224_v45 = vadd.f32 %v3960_v27, %v2223_v11 }
0x281c   :  { %3011 = vtanh.f32 %v2224_v45  ;;  %v2777_v54 = vmul.f32 -1.442695, %v2224_v45 }
0x281e   :  { %3013 = vpow2.f32 %v2777_v54 }
0x2822   :  { %v3012_v13 = vpop.eup %3011 }
0x2823   :  { %2248 = vrot.lane.b32.xlu2 %v3012_v13, %s3100_s1 }
0x2824   :  { %v3014_v61 = vpop.eup %3013 }
0x2825   :  { %v2229_v18 = vadd.f32 1.0, %v3014_v61 }
0x2827   :  { %3015 = vrcp.f32 %v2229_v18  ;;  %v2241_v26 = vand.u32 2147483648, %v2229_v18  ;;  %vm2235_vm10 = vweird.f32 %v2229_v18  ;;  %v2239_v0 = vand.u32 2147483647, %v2229_v18 }
0x2829   :  { %v2242_v62 = vor.u32 1.1754944e-38, %v2241_v26  ;;  %vm2240_vm12 = vcmp.eq.f32.partialorder %v2239_v0, 8.507059e+37 }
0x282d   :  { %v3016_v5 = vpop.eup %3015 }
0x282e   :  { %v2231_v24 = vmul.f32 %v3016_v5, %v2229_v18  ;;  %vm2236_vm9 = vweird.f32 %v3016_v5 }
0x282f   :  { %vm2237_vm11 = vmor %vm2235_vm10, %vm2236_vm9 }
0x2830   :  { %v2232_v28 = vsub.f32 1.0, %v2231_v24 }
0x2832   :  { %v2233_v47 = vmul.f32 %v3016_v5, %v2232_v28 }
0x2834   :  { %v2234_v21 = vadd.f32 %v3016_v5, %v2233_v47 }
0x2836   :  { %v2238_v32 = vsel %vm2237_vm11, %v3016_v5, %v2234_v21 }
0x2837   :  { %v2243_v30 = vsel %vm2240_vm12, %v2242_v62, %v2238_v32 }
0x2838   :  { %v2246_v33 = vmul.f32 %v2243_v30, %v3966_v63 }
0x287d   :  { %v2249_v17 = vpop.permute.xlu2 %2248 }
0x287e   :  { %v2251_v10 = vmul.f32 %v2249_v17, %v2243_v30 }
0x2880   :  { %2253 = vrot.lane.b32.xlu2 %v2251_v10, %s3103_s25 }
0x28da   :  { %v2254_v34 = vpop.permute.xlu2 %2253 }
0x28db   :  { %v3993_v25 = vadd.f32 %v2254_v34, %v2246_v33 }
0x28dd   :  { %3017 = vtanh.f32 %v3993_v25 }
0x28e3   :  { %v3018_v36 = vpop.eup %3017 }
0x28e4   :  { %2259 = vrot.lane.b32.xlu2 %v3018_v36, %s3101_s24 }
0x293e   :  { %v2260_v29 = vpop.permute.xlu2 %2259 }
0x293f   :  { %v2262_v16 = vmul.f32 %v2260_v29, %v2243_v30 }
0x2941   :  { %2264 = vrot.lane.b32.xlu2 %v2262_v16, %s3099_s23 }
0x299b   :  { %v2265_v22 = vpop.permute.xlu2 %2264 }
0x299c   :  { %2780 = vmatmul.msk.f32.vlgmr.msrb.gmra.mxu0 %vm614_vm0, %v2265_v22 }
0x2a19   :  { %v2285_v39 = vpop.f32.mrf.mxu0 }
0x2a1a   :  { %v2286_v40 = vadd.f32 %v4002_v38, %v2285_v39 }
0x2a1c   :  { %v2288_v41 = vsel %vm1321_vm8, %v2286_v40, -inf }
0x2a1d   :  { %2289 = vmax.xlane.f32.xlu2 %v2288_v41 }
0x2a90   :  { %v2290_v57 = vpop.xlane.xlu2 %2289 }
0x2a91   :  { %v2291_v42 = vsub.f32 %v2286_v40, %v2290_v57 }
0x2a93   :  { %v2292_v23 = vmul.f32 1.442695, %v2291_v42 }
0x2a95   :  { %3019 = vpow2.f32 %v2292_v23 }
0x2a9b   :  { %v3020_v12 = vpop.eup %3019 }
0x2a9c   :  { %v2294_v20 = vsel %vm1321_vm8, %v3020_v12, 0.0 }
0x2a9d   :  { %2295 = vadd.xlane.f32.xlu0 %v2294_v20 }
0x2b10   :  { %v2296_v63 = vpop.xlane.xlu0 %2295 }
0x2b11   :  { %3021 = vrcp.f32 %v2296_v63  ;;  %v2308_v7 = vand.u32 2147483648, %v2296_v63  ;;  %v2306_v49 = vand.u32 2147483647, %v2296_v63  ;;  %vm2302_vm14 = vweird.f32 %v2296_v63 }
0x2b13   :  { %v2309_v46 = vor.u32 1.1754944e-38, %v2308_v7  ;;  %vm2307_vm2 = vcmp.eq.f32.partialorder %v2306_v49, 8.507059e+37 }
0x2b17   :  { %v3022_v44 = vpop.eup %3021 }
0x2b18   :  { %v2298_v43 = vmul.f32 %v3022_v44, %v2296_v63  ;;  %vm2303_vm13 = vweird.f32 %v3022_v44 }
0x2b19   :  { %vm2304_vm15 = vmor %vm2302_vm14, %vm2303_vm13 }
0x2b1a   :  { %v2299_v19 = vsub.f32 1.0, %v2298_v43 }
0x2b1c   :  { %v2300_v31 = vmul.f32 %v3022_v44, %v2299_v19 }
0x2b1e   :  { %v2301_v51 = vadd.f32 %v3022_v44, %v2300_v31 }
0x2b20   :  { %v2305_v35 = vsel %vm2304_vm15, %v3022_v44, %v2301_v51 }
0x2b21   :  { %v2310_v55 = vsel %vm2307_vm2, %v2309_v46, %v2305_v35 }
0x2b22   :  { %v2311_v59 = vmul.f32 %v3020_v12, %v2310_v55 }
0x2b24   :  { %2781 = vmatmul.msk.f32.vlgmr.msrb.gmra.mxu2 %vm188_vm3, %v2311_v59 }
0x2ba7   :  { %v2332_v50 = vpop.f32.mrf.mxu2 }
0x2ba8   :  { %2337 = vrot.lane.b32.xlu1 %v2332_v50, %s3103_s25 }
0x2c1a   :  { %v2338_v52 = vpop.permute.xlu1 %2337 }
0x2c1b   :  { %v2340_v60 = vsel %vm614_vm0, %v2265_v22, %v2338_v52 }
0x2c1c   :  { %2782 = vmatmul.msk.f32.vlgmr.msrb.gmra.mxu3 %vm188_vm3, %v2340_v60 }
0x2c9f   :  { %v2361_v14 = vpop.f32.mrf.mxu3 }
0x2ca0   :  { %v2362_v58 = vadd.f32 %v3960_v27, %v2361_v14 }
0x2ca2   :  { %3023 = vtanh.f32 %v2362_v58  ;;  %v2783_v8 = vmul.f32 -1.442695, %v2362_v58 }
0x2ca4   :  { %3025 = vpow2.f32 %v2783_v8 }
0x2ca8   :  { %v3024_v4 = vpop.eup %3023 }
0x2ca9   :  { %2386 = vrot.lane.b32.xlu0 %v3024_v4, %s3100_s1 }
0x2caa   :  { %v3026_v37 = vpop.eup %3025 }
0x2cab   :  { %v2367_v53 = vadd.f32 1.0, %v3026_v37 }
0x2cad   :  { %3027 = vrcp.f32 %v2367_v53  ;;  %v2379_v48 = vand.u32 2147483648, %v2367_v53  ;;  %vm2373_vm1 = vweird.f32 %v2367_v53  ;;  %v2377_v3 = vand.u32 2147483647, %v2367_v53 }
0x2caf   :  { %v2380_v11 = vor.u32 1.1754944e-38, %v2379_v48  ;;  %vm2378_vm6 = vcmp.eq.f32.partialorder %v2377_v3, 8.507059e+37 }
0x2cb3   :  { %v3028_v1 = vpop.eup %3027 }
0x2cb4   :  { %v2369_v56 = vmul.f32 %v3028_v1, %v2367_v53  ;;  %vm2374_vm4 = vweird.f32 %v3028_v1 }
0x2cb5   :  { %vm2375_vm5 = vmor %vm2373_vm1, %vm2374_vm4 }
0x2cb6   :  { %v2370_v2 = vsub.f32 1.0, %v2369_v56 }
0x2cb8   :  { %v2371_v9 = vmul.f32 %v3028_v1, %v2370_v2 }
0x2cba   :  { %v2372_v15 = vadd.f32 %v3028_v1, %v2371_v9 }
0x2cbc   :  { %v2376_v6 = vsel %vm2375_vm5, %v3028_v1, %v2372_v15 }
0x2cbd   :  { %v2381_v13 = vsel %vm2378_vm6, %v2380_v11, %v2376_v6 }
0x2cbe   :  { %v2384_v61 = vmul.f32 %v2381_v13, %v3993_v25 }
0x2d1b   :  { %v2387_v45 = vpop.permute.xlu0 %2386 }
0x2d1c   :  { %v2389_v54 = vmul.f32 %v2387_v45, %v2381_v13 }
0x2d1e   :  { %2391 = vrot.lane.b32.xlu1 %v2389_v54, %s3103_s25 }
0x2d90   :  { %v2392_v18 = vpop.permute.xlu1 %2391 }
0x2d91   :  { %v4015_v5 = vadd.f32 %v2392_v18, %v2384_v61 }
0x2d93   :  { %3029 = vtanh.f32 %v4015_v5 }
0x2d99   :  { %v3030_v24 = vpop.eup %3029 }
0x2d9a   :  { %2397 = vrot.lane.b32.xlu0 %v3030_v24, %s3101_s24 }
0x2e0c   :  { %v2398_v28 = vpop.permute.xlu0 %2397 }
0x2e0d   :  { %v2400_v47 = vmul.f32 %v2398_v28, %v2381_v13 }
0x2e0f   :  { %2402 = vrot.lane.b32.xlu1 %v2400_v47, %s3099_s23 }
0x2e81   :  { %v2403_v21 = vpop.permute.xlu1 %2402 }
0x2e82   :  { %2786 = vmatmul.msk.f32.vlgmr.msrb.gmra.mxu1 %vm614_vm0, %v2403_v21 }
0x2eff   :  { %v2423_v26 = vpop.f32.mrf.mxu1 }
0x2f00   :  { %v2424_v0 = vadd.f32 %v4002_v38, %v2423_v26 }
0x2f02   :  { %v2426_v32 = vsel %vm1321_vm8, %v2424_v0, -inf }
0x2f03   :  { %2427 = vmax.xlane.f32.xlu0 %v2426_v32 }
0x2f76   :  { %v2428_v62 = vpop.xlane.xlu0 %2427 }
0x2f77   :  { %v2429_v17 = vsub.f32 %v2424_v0, %v2428_v62 }
0x2f79   :  { %v2430_v30 = vmul.f32 1.442695, %v2429_v17  ;;  %v2618_v17 = vld [vmem:[%s4078_s17 + $0x8] sm:$0xff] }
0x2f7a   :  { %2640 = vmatpush.msrb.mxu0 %v2618_v17 }
0x2f7b   :  { %3031 = vpow2.f32 %v2430_v30 }
0x2f81   :  { %v3032_v10 = vpop.eup %3031 }
0x2f82   :  { %v2432_v33 = vsel %vm1321_vm8, %v3032_v10, 0.0 }
0x2f83   :  { %2433 = vadd.xlane.f32.xlu2 %v2432_v33 }
0x2ff6   :  { %v2434_v34 = vpop.xlane.xlu2 %2433 }
0x2ff7   :  { %3033 = vrcp.f32 %v2434_v34  ;;  %v2446_v16 = vand.u32 2147483648, %v2434_v34  ;;  %v2444_v39 = vand.u32 2147483647, %v2434_v34  ;;  %vm2440_vm9 = vweird.f32 %v2434_v34 }
0x2ff9   :  { %v2447_v41 = vor.u32 1.1754944e-38, %v2446_v16  ;;  %vm2445_vm11 = vcmp.eq.f32.partialorder %v2444_v39, 8.507059e+37 }
0x2ffd   :  { %v3034_v25 = vpop.eup %3033 }
0x2ffe   :  { %v2436_v36 = vmul.f32 %v3034_v25, %v2434_v34  ;;  %vm2441_vm7 = vweird.f32 %v3034_v25 }
0x2fff   :  { %vm2442_vm10 = vmor %vm2440_vm9, %vm2441_vm7 }
0x3000   :  { %v2437_v29 = vsub.f32 1.0, %v2436_v36  ;;  %v2861_v36 = vld [vmem:[%s4079_s18] ss:$0 sm:$0xff] }
0x3002   :  { %v2438_v22 = vmul.f32 %v3034_v25, %v2437_v29 }
0x3004   :  { %v2439_v40 = vadd.f32 %v3034_v25, %v2438_v22 }
0x3006   :  { %v2443_v57 = vsel %vm2442_vm10, %v3034_v25, %v2439_v40  ;;  %v2649_v25 = vld [vmem:[%s4080_s19] sm:$0xff] }
0x3007   :  { %v2448_v42 = vsel %vm2445_vm11, %v2447_v41, %v2443_v57  ;;  %2672 = vmatpush.msrb.mxu2 %v2649_v25  ;;  %v2862_v40 = vld [vmem:[%s4081_s20] ss:$0 sm:$0xff] }
0x3008   :  { %v2449_v23 = vmul.f32 %v3032_v10, %v2448_v42  ;;  %v2617_v10 = vld [vmem:[%s4078_s17] sm:$0xff] }
0x3009   :  { %2641 = vmatpush.msrb.mxu0 %v2617_v10 }
0x300a   :  { %2787 = vmatmul.msk.f32.vlgmr.msra.gmra.mxu0 %vm188_vm3, %v2449_v23 }
0x3087   :  { %v2470_v12 = vpop.f32.mrf.mxu0 }
0x3088   :  { %2475 = vrot.lane.b32.xlu1 %v2470_v12, %s3103_s25 }
0x30fa   :  { %v2476_v20 = vpop.permute.xlu1 %2475 }
0x30fb   :  { %v2478_v63 = vsel %vm614_vm0, %v2403_v21, %v2476_v20 }
0x30fc   :  { %2788 = vmatmul.msk.f32.vlgmr.msra.gmra.mxu2 %vm188_vm3, %v2478_v63 }
0x317f   :  { %v2499_v44 = vpop.f32.mrf.mxu2 }
0x3180   :  { %v2500_v43 = vadd.f32 %v3960_v27, %v2499_v44 }
0x3182   :  { %3035 = vtanh.f32 %v2500_v43  ;;  %v2789_v7 = vmul.f32 -1.442695, %v2500_v43 }
0x3184   :  { %3037 = vpow2.f32 %v2789_v7 }
0x3188   :  { %v3036_v19 = vpop.eup %3035 }
0x3189   :  { %2524 = vrot.lane.b32.xlu2 %v3036_v19, %s3100_s1 }
0x318a   :  { %v3038_v31 = vpop.eup %3037 }
0x318b   :  { %v2505_v49 = vadd.f32 1.0, %v3038_v31 }
0x318d   :  { %3039 = vrcp.f32 %v2505_v49  ;;  %v2517_v50 = vand.u32 2147483648, %v2505_v49  ;;  %vm2511_vm13 = vweird.f32 %v2505_v49  ;;  %v2515_v52 = vand.u32 2147483647, %v2505_v49 }
0x318f   :  { %v2518_v60 = vor.u32 1.1754944e-38, %v2517_v50  ;;  %vm2516_vm15 = vcmp.eq.f32.partialorder %v2515_v52, 8.507059e+37 }
0x3193   :  { %v3040_v51 = vpop.eup %3039 }
0x3194   :  { %v2507_v46 = vmul.f32 %v3040_v51, %v2505_v49  ;;  %vm2512_vm12 = vweird.f32 %v3040_v51 }
0x3195   :  { %vm2513_vm14 = vmor %vm2511_vm13, %vm2512_vm12 }
0x3196   :  { %v2508_v35 = vsub.f32 1.0, %v2507_v46 }
0x3198   :  { %v2509_v55 = vmul.f32 %v3040_v51, %v2508_v35 }
0x319a   :  { %v2510_v59 = vadd.f32 %v3040_v51, %v2509_v55 }
0x319c   :  { %v2514_v27 = vsel %vm2513_vm14, %v3040_v51, %v2510_v59 }
0x319d   :  { %v2519_v58 = vsel %vm2516_vm15, %v2518_v60, %v2514_v27 }
0x319e   :  { %v2522_v8 = vmul.f32 %v2519_v58, %v4015_v5 }
0x31e3   :  { %v2525_v14 = vpop.permute.xlu2 %2524 }
0x31e4   :  { %v2527_v4 = vmul.f32 %v2525_v14, %v2519_v58 }
0x31e6   :  { %2529 = vrot.lane.b32.xlu1 %v2527_v4, %s3103_s25 }
0x3258   :  { %v2530_v37 = vpop.permute.xlu1 %2529 }
0x3259   :  { %v2532_v53 = vadd.f32 %v2530_v37, %v2522_v8 }
0x325b   :  { %3041 = vtanh.f32 %v2532_v53 }
0x3261   :  { %v3042_v1 = vpop.eup %3041 }
0x3262   :  { %2535 = vrot.lane.b32.xlu1 %v3042_v1, %s3101_s24 }
0x32d4   :  { %v2536_v56 = vpop.permute.xlu1 %2535 }
0x32d5   :  { %v2538_v2 = vmul.f32 %v2536_v56, %v2519_v58 }
0x32d7   :  { %2540 = vrot.lane.b32.xlu1 %v2538_v2, %s3099_s23 }
0x3349   :  { %v2541_v9 = vpop.permute.xlu1 %2540 }
0x334a   :  { %2792 = vmatmul.msk.f32.vlgmr.msra.gmra.mxu3 %vm614_vm0, %v2541_v9 }
0x33cd   :  { %v2561_v15 = vpop.f32.mrf.mxu3 }
0x33ce   :  { %v2562_v48 = vadd.f32 %v4002_v38, %v2561_v15 }
0x33d0   :  { %v2564_v3 = vsel %vm1321_vm8, %v2562_v48, -inf }
0x33d1   :  { %2565 = vmax.xlane.f32.xlu2 %v2564_v3 }
0x3444   :  { %v2566_v6 = vpop.xlane.xlu2 %2565 }
0x3445   :  { %v2567_v11 = vsub.f32 %v2562_v48, %v2566_v6 }
0x3447   :  { %v2568_v45 = vmul.f32 1.442695, %v2567_v11 }
0x3449   :  { %3043 = vpow2.f32 %v2568_v45 }
0x344f   :  { %v3044_v13 = vpop.eup %3043 }
0x3450   :  { %v2570_v54 = vsel %vm1321_vm8, %v3044_v13, 0.0 }
0x3451   :  { %2571 = vadd.xlane.f32.xlu1 %v2570_v54 }
0x34c4   :  { %v2572_v61 = vpop.xlane.xlu1 %2571 }
0x34c5   :  { %3045 = vrcp.f32 %v2572_v61  ;;  %v2584_v28 = vand.u32 2147483648, %v2572_v61  ;;  %v2582_v38 = vand.u32 2147483647, %v2572_v61  ;;  %vm2578_vm4 = vweird.f32 %v2572_v61 }
0x34c7   :  { %v2585_v26 = vor.u32 1.1754944e-38, %v2584_v28  ;;  %vm2583_vm5 = vcmp.eq.f32.partialorder %v2582_v38, 8.507059e+37 }
0x34cb   :  { %v3046_v18 = vpop.eup %3045 }
0x34cc   :  { %v2574_v5 = vmul.f32 %v3046_v18, %v2572_v61  ;;  %vm2579_vm2 = vweird.f32 %v3046_v18 }
0x34cd   :  { %vm2580_vm1 = vmor %vm2578_vm4, %vm2579_vm2 }
0x34ce   :  { %v2575_v24 = vsub.f32 1.0, %v2574_v5 }
0x34d0   :  { %v2576_v47 = vmul.f32 %v3046_v18, %v2575_v24 }
0x34d2   :  { %v2577_v21 = vadd.f32 %v3046_v18, %v2576_v47 }
0x34d4   :  { %v2581_v0 = vsel %vm2580_vm1, %v3046_v18, %v2577_v21 }
0x34d5   :  { %v2586_v32 = vsel %vm2583_vm5, %v2585_v26, %v2581_v0 }
0x34d6   :  { %v2587_v62 = vmul.f32 %v3044_v13, %v2586_v32 }
0x34d8   :  { %2793 = vmatmul.msk.f32.vlgmr.msra.gmra.mxu1 %vm188_vm3, %v2587_v62 }
0x3555   :  { %v2608_v30 = vpop.f32.mrf.mxu1 }
0x3556   :  { %2613 = vrot.lane.b32.xlu0 %v2608_v30, %s3103_s25 }
0x35c8   :  { %v2614_v33 = vpop.permute.xlu0 %2613 }
0x35c9   :  { %v2616_v34 = vsel %vm614_vm0, %v2541_v9, %v2614_v33 }
0x35ca   :  { %2794 = vmatmul.msk.f32.vlgmr.msrb.gmra.mxu0 %vm188_vm3, %v2616_v34  ;;  %vm2677_vm3 = vcmask 17408  }
0x3647   :  { %v2643_v29 = vpop.f32.mrf.mxu0 }
0x3648   :  { %v2644_v16 = vadd.f32 %v2861_v36, %v2643_v29 }
0x364a   :  { %vm2646_vm8 = vcmp.gt.f32.partialorder %v2644_v16, 0.0  ;;  %v2647_v22 = vmul.f32 0.01, %v2644_v16 }
0x364c   :  { %v2648_v39 = vsel %vm2646_vm8, %v2644_v16, %v2647_v22 }
0x364d   :  { %2795 = vmatmul.msk.f32.vlgmr.msrb.gmra.mxu2 %vm614_vm0, %v2648_v39 }
0x36d0   :  { %v2674_v41 = vpop.f32.mrf.mxu2 }
0x36d1   :  { %v2675_v57 = vadd.f32 %v2862_v40, %v2674_v41 }
0x36d3   :  { %2678 = vst.msk [vmem:[#allocation5] sm:$0x3] %vm2677_vm3, %v2675_v57 }
0x36d4   :  { %2689 = dma.vmem_to_hbm [thread:$0]  %s2685_s9, 32, %s2687_s22, [#allocation3]  }
0x36d5   :  { %3089 = dma.done.wait [#allocation3], 32  }
0x36d6   :  { %3090 = vsyncadd [#allocation3], 4294967264 }
0x36d7   :  { %2694 = vsyncpa [#allocation3], 1 }
0x36d8   :  { %2695 = vsyncpa [#allocation4], 1 }

</bundles_post_ra>
